<compile_context>
chip_gen: v7x
topology: tpu7x:2x2x1
jax: 0.10.0
libtpu: 0.0.40
codegen_flags: <defaults>
</compile_context>

<pallas_src>
import functools

import jax
import jax.numpy as jnp
from jax.experimental import pallas as pl
from jax.experimental.pallas import tpu as pltpu

FEAT_DIM = 1280   # EfficientNet-B0 final feature width
C_PAD = 8         # input channels padded to 8: [R, G, B, 1, 0, 0, 0, 0]


def _default_feat_dtype():
    """bf16 feature compute on v6e/v7x (bf16 VPU/EUP); f32 elsewhere (v5e...)."""
    try:
        kind = jax.devices()[0].device_kind.lower()
    except Exception:
        return jnp.float32
    if ("v6" in kind) or ("v7" in kind) or ("7x" in kind):
        return jnp.bfloat16
    return jnp.float32


def _pick_tile_hw(hw, cap):
    """Spatial tile size: a multiple of 128, as large as the cap allows."""
    cap = max(128, (cap // 128) * 128)
    hw_up = ((hw + 127) // 128) * 128
    return min(cap, hw_up)


# --------------------------------------------------------------------------- #
# Kernel: fused EfficientEncoder trunk (pose_net + code_net in one launch)
#   grid = (net, batch, hw_tile); hw_tile is the reduction axis ("arbitrary").
#   Per tile: (1280, 8) @ (8, tile_hw) on the MXU (normalization + bias folded
#   into the weight, ones-channel in x), SiLU via one EUP tanh, partial
#   avg-pool sums accumulated into an f32 (1280, 128) VMEM scratch, one lane
#   reduce + store in the last-tile epilogue.
# --------------------------------------------------------------------------- #
def _encoder_kernel(x_ref, w_ref, out_ref, acc_ref, *, feat_dtype):
    t = pl.program_id(2)

    @pl.when(t == 0)
    def _init():
        acc_ref[...] = jnp.zeros_like(acc_ref)

    x = x_ref[0, 0].astype(feat_dtype)      # (8, TILE_HW) NCHW tile, lane-dense
    w = w_ref[0]                            # (1280, 8)  [wf/std | folded bias | 0]
    z = jnp.dot(w, x)                       # (1280, TILE_HW) on the MXU (bias incl.)
    # SiLU via a single EUP tanh: x*sigmoid(x) == x*(0.5*tanh(0.5x)+0.5).
    s = z * (0.5 * jnp.tanh(0.5 * z) + 0.5)

    # Partial avg-pool sums: pure VPU adds of 128-lane chunks, f32 accumulate.
    tile_hw = s.shape[1]
    part = s[:, 0:128].astype(jnp.float32)
    for j in range(1, tile_hw // 128):
        part = part + s[:, j * 128:(j + 1) * 128].astype(jnp.float32)
    acc_ref[...] += part

    @pl.when(t == pl.num_programs(2) - 1)
    def _finalize():
        pooled = jnp.sum(acc_ref[...], axis=1, keepdims=True)   # (1280, 1)
        out_ref[...] = pooled.reshape(out_ref.shape)


# --------------------------------------------------------------------------- #
# Host-side parameter folding
# --------------------------------------------------------------------------- #
def _fold_normalization(p):
    """Fold (x - mean)/std into the feature weights: numerically equivalent."""
    wf, bf = p["wf"], p["bf"]
    mean = p["mean"].reshape(1, 3).astype(jnp.float32)
    std = p["std"].reshape(1, 3).astype(jnp.float32)
    wf_n = wf / std.reshape(3, 1)                  # (3, 1280)
    bf_n = bf - (mean / std) @ wf                  # (1, 1280)
    return wf_n, bf_n


def _build_fused_weight(p, feat_dtype):
    """(1280, 8): cols 0..2 = (wf/std)^T, col 3 = folded bias, cols 4..7 = 0."""
    wf_n, bf_n = _fold_normalization(p)
    w = jnp.concatenate(
        [wf_n.T, bf_n.reshape(FEAT_DIM, 1),
         jnp.zeros((FEAT_DIM, C_PAD - 4), jnp.float32)], axis=1)
    return w.astype(feat_dtype)


def fused_efficient_encoder(x_stack_nchw, net_params, *, feat_dtype=None,
                            tile_cap=None):
    """Run both EfficientEncoders in one pallas_call.

    x_stack_nchw: (N_net, B, 3, H, W) float32 images in [0, 1].
    Returns a list of per-network head outputs [(B, out_n), ...] (float32).
    """
    if feat_dtype is None:
        feat_dtype = _default_feat_dtype()
    N, B, C, H, W = x_stack_nchw.shape
    HW = H * W
    if tile_cap is None:
        tile_cap = 2048 if feat_dtype == jnp.bfloat16 else 1024
    tile_hw = _pick_tile_hw(HW, tile_cap)
    n_tiles = (HW + tile_hw - 1) // tile_hw
    hw_pad = n_tiles * tile_hw

    # NCHW -> (N, B, C, HW) is a free reshape (no transpose pass). Augment with
    # a ones-channel (bias term) and zero channels (K=8 for the MXU). Zero
    # spatial padding is exactly neutral: all-zero column -> z=0 -> SiLU(0)=0.
    x_flat = x_stack_nchw.reshape(N, B, C, HW)
    chans = [x_flat, jnp.ones((N, B, 1, HW), x_flat.dtype)]
    if C_PAD - C - 1 > 0:
        chans.append(jnp.zeros((N, B, C_PAD - C - 1, HW), x_flat.dtype))
    x_aug = jnp.concatenate(chans, axis=2)                 # (N, B, 8, HW)
    if hw_pad != HW:
        x_aug = jnp.pad(x_aug, ((0, 0), (0, 0), (0, 0), (0, hw_pad - HW)))

    w_all = jnp.stack([_build_fused_weight(p, feat_dtype) for p in net_params])

    kernel = functools.partial(_encoder_kernel, feat_dtype=feat_dtype)
    pooled = pl.pallas_call(
        kernel,
        out_shape=jax.ShapeDtypeStruct((N, B, FEAT_DIM, 1), jnp.float32),
        grid=(N, B, n_tiles),
        in_specs=[
            # lane-dense NCHW tile, no host transpose needed
            pl.BlockSpec((1, 1, C_PAD, tile_hw), lambda n, b, t: (n, b, 0, t)),
            # grid-invariant over (b, t); small now that head weights left the
            # kernel, so default double-buffering is fine.
            pl.BlockSpec((1, FEAT_DIM, C_PAD), lambda n, b, t: (n, 0, 0)),
        ],
        out_specs=pl.BlockSpec((1, 1, FEAT_DIM, 1),
                               lambda n, b, t: (n, b, 0, 0)),
        scratch_shapes=[pltpu.VMEM((FEAT_DIM, 128), jnp.float32)],
        compiler_params=pltpu.CompilerParams(
            dimension_semantics=("parallel", "parallel", "arbitrary"),
            vmem_limit_bytes=48 * 1024 * 1024),
    )(x_aug, w_all)

    avg = pooled[..., 0] * (1.0 / HW)                      # (N, B, 1280) f32
    # Head classifier in XLA: better MXU shape (M=B instead of 1), frees VMEM.
    return [avg[n] @ p["wh"] + p["bh"] for n, p in enumerate(net_params)]


# --------------------------------------------------------------------------- #
# Pose head post-processing (eval path) — plain JAX per perf review
# --------------------------------------------------------------------------- #
def pose_split(pose, n_heads):
    bsize = pose.shape[0]
    student = pose[:, :n_heads]                            # (B, n_heads)
    poses = pose[:, n_heads + 3:].reshape(bsize, 3, -1)    # (B, 3, K)
    norms = jnp.linalg.norm(poses, axis=-2, keepdims=True)
    poses = poses / norms                                  # matches torch exactly
    inds = jnp.argmax(student, axis=1)                     # first max, like torch
    sel = jnp.take_along_axis(poses, inds[:, None, None], axis=2)[..., 0]
    return student, sel                                    # (B, n_heads), (B, 3)


# --------------------------------------------------------------------------- #
# ViewNeRF forward (eval path, istrain=False)
# --------------------------------------------------------------------------- #
def view_nerf_forward(p_inp, c_inp, params, n_heads):
    bsize = p_inp.shape[0]

    # One fused launch for both encoders (pose_net = net 0, code_net = net 1).
    x_stack = jnp.stack([p_inp, c_inp], axis=0)            # (2, B, 3, H, W)
    pose_head, code_head = fused_efficient_encoder(
        x_stack, [params["pose_net"], params["code_net"]])

    pose = pose_head.reshape(bsize, -1)                    # (B, 3n+10)
    latent_code = code_head.reshape(bsize, -1)             # (B, cont_size)

    student, poses = pose_split(pose, n_heads)             # (B,n_heads), (B,3)

    # TODO(synk): CNeRF decoder (volume renderer) definition not provided;
    # outputs/segmask keep the pre-decoder assignment `outputs = segmask = p_inp`.
    outputs = p_inp
    segmask = p_inp
    return outputs, segmask, student, poses, latent_code


# --------------------------------------------------------------------------- #
# Deterministic parameter construction
# --------------------------------------------------------------------------- #
def init_encoder_params(key, out_size, in_ch=3):
    k1, k2, k3, k4 = jax.random.split(key, 4)
    return dict(
        wf=jax.random.normal(k1, (in_ch, FEAT_DIM), jnp.float32) * 0.1,
        bf=jax.random.normal(k2, (1, FEAT_DIM), jnp.float32) * 0.01,
        wh=jax.random.normal(k3, (FEAT_DIM, out_size), jnp.float32)
           * (1.0 / jnp.sqrt(FEAT_DIM)),
        bh=jax.random.normal(k4, (1, out_size), jnp.float32) * 0.01,
        mean=jnp.array([[0.485, 0.456, 0.406]], jnp.float32),
        std=jnp.array([[0.229, 0.224, 0.225]], jnp.float32),
    )


if __name__ == "__main__":
    B, C, H, W = 2, 3, 16, 16
    n_heads = 4            # mod_conf['n_heads']
    cont_size = 32         # mod_conf['cont_size']
    pose_out = 3 * n_heads + 3 + 3 + 3 + 1   # 22

    root = jax.random.PRNGKey(0)
    k_p, k_c, k_pose_net, k_code_net = jax.random.split(root, 4)

    params = {
        "pose_net": init_encoder_params(k_pose_net, pose_out),
        "code_net": init_encoder_params(k_code_net, cont_size),
    }

    p_inp = jax.random.uniform(k_p, (B, C, H, W), jnp.float32)  # image in [0,1]
    c_inp = jax.random.uniform(k_c, (B, C, H, W), jnp.float32)

    fwd = jax.jit(functools.partial(view_nerf_forward, n_heads=n_heads))
    outputs, segmask, student, poses, latent_code = fwd(p_inp, c_inp, params)
    jax.block_until_ready((outputs, segmask, student, poses, latent_code))

    assert outputs.shape == (B, C, H, W)
    assert segmask.shape == (B, C, H, W)
    assert student.shape == (B, n_heads)
    assert poses.shape == (B, 3)
    assert latent_code.shape == (B, cont_size)
    assert bool(jnp.all(jnp.isfinite(student)))
    assert bool(jnp.all(jnp.isfinite(poses)))
    assert bool(jnp.all(jnp.isfinite(latent_code)))

    print("KERNEL_OK")
</pallas_src>

<mosaic_0001>
module attributes {stable_mosaic.version = 11 : i64} {
  func.func @_encoder_kernel(%arg0: i32, %arg1: i32, %arg2: i32, %arg3: memref<1x1x8x256xf32, #tpu.memory_space<vmem>>, %arg4: memref<1x1280x8xf32, #tpu.memory_space<vmem>>, %arg5: memref<1x1x1280x1xf32, #tpu.memory_space<vmem>>, %arg6: memref<1280x128xf32, #tpu.memory_space<vmem>>) attributes {dimension_semantics = [#tpu.dimension_semantics<parallel>, #tpu.dimension_semantics<parallel>, #tpu.dimension_semantics<arbitrary>], iteration_bounds = array<i64: 2, 2, 1>, scalar_prefetch = 0 : i64, scratch_operands = 1 : i64, tpu.core_type = #tpu.core_type<tc>, window_params = [{transform_indices = @transform_0, window_bounds = array<i64: 1, 1, 8, 256>}, {transform_indices = @transform_1, window_bounds = array<i64: 1, 1280, 8>}, {transform_indices = @transform_2, window_bounds = array<i64: 1, 1, 1280, 1>}]} {
    %c0_i32 = arith.constant 0 : i32
    %0 = arith.cmpi eq, %arg2, %c0_i32 : i32
    %1 = arith.extui %0 : i1 to i32
    %c0_i32_0 = arith.constant 0 : i32
    %2 = arith.cmpi ne, %1, %c0_i32_0 : i32
    scf.if %2 {
      %cst_16 = arith.constant 0.000000e+00 : f32
      %25 = vector.broadcast %cst_16 : f32 to vector<1280x128xf32>
      %c0_17 = arith.constant 0 : index
      %c0_18 = arith.constant 0 : index
      %26 = vector.load %arg6[%c0_17, %c0_18] : memref<1280x128xf32, #tpu.memory_space<vmem>>, vector<1280x128xf32>
      tpu.vector_store %arg6[%c0_17, %c0_18], %25 {strides = array<i32>} : memref<1280x128xf32, #tpu.memory_space<vmem>>, vector<1280x128xf32>,
    } else {
    }
    %c0 = arith.constant 0 : index
    %c0_1 = arith.constant 0 : index
    %c0_2 = arith.constant 0 : index
    %c0_3 = arith.constant 0 : index
    %3 = vector.load %arg3[%c0, %c0_1, %c0_2, %c0_3] : memref<1x1x8x256xf32, #tpu.memory_space<vmem>>, vector<1x1x8x256xf32>
    %4 = vector.shape_cast %3 : vector<1x1x8x256xf32> to vector<8x256xf32>
    %c0_4 = arith.constant 0 : index
    %c0_5 = arith.constant 0 : index
    %c0_6 = arith.constant 0 : index
    %5 = vector.load %arg4[%c0_4, %c0_5, %c0_6] : memref<1x1280x8xf32, #tpu.memory_space<vmem>>, vector<1x1280x8xf32>
    %6 = vector.shape_cast %5 : vector<1x1280x8xf32> to vector<1280x8xf32>
    %cst = arith.constant dense<0.000000e+00> : vector<1280x256xf32>
    %7 = tpu.matmul %6, %4, %cst {dimension_numbers = #tpu.dot_dimension_numbers<[1], [0], [0], [1], [0, 0, 1, 1], [], []>} : vector<1280x8xf32>, vector<8x256xf32>, vector<1280x256xf32> -> vector<1280x256xf32>
    %cst_7 = arith.constant 5.000000e-01 : f32
    %8 = vector.broadcast %cst_7 : f32 to vector<1280x256xf32>
    %9 = arith.mulf %8, %7 : vector<1280x256xf32>
    %10 = math.tanh %9 : vector<1280x256xf32>
    %cst_8 = arith.constant 5.000000e-01 : f32
    %11 = vector.broadcast %cst_8 : f32 to vector<1280x256xf32>
    %12 = arith.mulf %11, %10 : vector<1280x256xf32>
    %cst_9 = arith.constant 5.000000e-01 : f32
    %13 = vector.broadcast %cst_9 : f32 to vector<1280x256xf32>
    %14 = arith.addf %12, %13 : vector<1280x256xf32>
    %15 = arith.mulf %7, %14 : vector<1280x256xf32>
    %16 = vector.extract_strided_slice %15 {offsets = [0, 0], sizes = [1280, 128], strides = [1, 1]} : vector<1280x256xf32> to vector<1280x128xf32>
    %17 = vector.extract_strided_slice %15 {offsets = [0, 128], sizes = [1280, 128], strides = [1, 1]} : vector<1280x256xf32> to vector<1280x128xf32>
    %18 = arith.addf %16, %17 : vector<1280x128xf32>
    %c0_10 = arith.constant 0 : index
    %c0_11 = arith.constant 0 : index
    %19 = vector.load %arg6[%c0_10, %c0_11] : memref<1280x128xf32, #tpu.memory_space<vmem>>, vector<1280x128xf32>
    %20 = arith.addf %19, %18 : vector<1280x128xf32>
    %c0_12 = arith.constant 0 : index
    %c0_13 = arith.constant 0 : index
    %21 = vector.load %arg6[%c0_12, %c0_13] : memref<1280x128xf32, #tpu.memory_space<vmem>>, vector<1280x128xf32>
    tpu.vector_store %arg6[%c0_12, %c0_13], %20 {strides = array<i32>} : memref<1280x128xf32, #tpu.memory_space<vmem>>, vector<1280x128xf32>,
    %c0_i32_14 = arith.constant 0 : i32
    %22 = arith.cmpi eq, %arg2, %c0_i32_14 : i32
    %23 = arith.extui %22 : i1 to i32
    %c0_i32_15 = arith.constant 0 : i32
    %24 = arith.cmpi ne, %23, %c0_i32_15 : i32
    scf.if %24 {
      %c0_16 = arith.constant 0 : index
      %c0_17 = arith.constant 0 : index
      %25 = vector.load %arg6[%c0_16, %c0_17] : memref<1280x128xf32, #tpu.memory_space<vmem>>, vector<1280x128xf32>
      %cst_18 = arith.constant dense<0.000000e+00> : vector<1280xf32>
      %26 = vector.multi_reduction <add>, %25, %cst_18 [1] : vector<1280x128xf32> to vector<1280xf32>
      %27 = vector.shape_cast %26 : vector<1280xf32> to vector<1280x1xf32>
      %28 = vector.shape_cast %27 : vector<1280x1xf32> to vector<1x1x1280x1xf32>
      %c0_19 = arith.constant 0 : index
      %c0_20 = arith.constant 0 : index
      %c0_21 = arith.constant 0 : index
      %c0_22 = arith.constant 0 : index
      %29 = vector.load %arg5[%c0_19, %c0_20, %c0_21, %c0_22] : memref<1x1x1280x1xf32, #tpu.memory_space<vmem>>, vector<1x1x1280x1xf32>
      tpu.vector_store %arg5[%c0_19, %c0_20, %c0_21, %c0_22], %28 {strides = array<i32>} : memref<1x1x1280x1xf32, #tpu.memory_space<vmem>>, vector<1x1x1280x1xf32>,
    } else {
    }
    return
  }
  func.func @transform_0(%arg0: i32, %arg1: i32, %arg2: i32) -> (i32, i32, i32, i32) {
    %c0_i32 = arith.constant 0 : i32
    %c0_i32_0 = arith.constant 0 : i32
    return %arg0, %arg1, %c0_i32, %arg2 : i32, i32, i32, i32
  }
  func.func @transform_1(%arg0: i32, %arg1: i32, %arg2: i32) -> (i32, i32, i32) {
    %c0_i32 = arith.constant 0 : i32
    %c0_i32_0 = arith.constant 0 : i32
    %c0_i32_1 = arith.constant 0 : i32
    return %arg0, %c0_i32, %c0_i32_0 : i32, i32, i32
  }
  func.func @transform_2(%arg0: i32, %arg1: i32, %arg2: i32) -> (i32, i32, i32, i32) {
    %c0_i32 = arith.constant 0 : i32
    %c0_i32_0 = arith.constant 0 : i32
    %c0_i32_1 = arith.constant 0 : i32
    return %arg0, %arg1, %c0_i32, %c0_i32_0 : i32, i32, i32, i32
  }
}

</mosaic_0001>

<bundles_post_ra>
// kernel: view_nerf_forward.1
= control target key start
LH: loop header
LB: loop body
LE: loop exit
PB: predicated region body
PF: predicated region fallthrough
CT: control target
= control target key end

     0   :  { %s5966_s9 = smov 0   ;;  %s5968_s10 = smov 0   ;;  %s8826_s0 = inlined_call_operand.vmem [shape: f32[2,2,8,256], index: 0, kind: input, shape index: {}]   ;;  %s8827_s1 = inlined_call_operand.vmem [shape: f32[2,1280,8], index: 1, kind: input, shape index: {}]   ;;  %s8828_s2 = inlined_call_operand.vmem [shape: f32[2,2,1280,1], index: 2, kind: output, shape index: {}]  }
   0x1   :  { %s5970_s11 = smov 0   ;;  %s5972_s12 = smov 0  }
   0x2   :  { %s5974_s13 = smov 0  }
   0x3 LB: > { %s27_s14 = sadd.s32 1, %s5940_s11  ;;  %s31_s15 = sadd.s32 1, %s5944_s12  ;;  %s5948_s13 = sphi %s5974_s13, %s12_s13   ;;  %s5944_s12 = sphi %s5972_s12, %s9325_s12   ;;  %s5940_s11 = sphi %s5970_s11, %s9324_s11   ;;  %s5936_s10 = sphi %s5968_s10, %s9323_s10   ;;  %s5932_s9 = sphi %s5966_s9, %s9322_s9  }
   0x4   : > { %p29_p0 = scmp.ge.s32.totalorder %s27_s14, 2  ;;  %p5056_p1 = scmp.ge.s32.totalorder %s5948_s13, 1 }
   0x5   : > { %p156_p2 = scmp.lt.s32.totalorder %s5948_s13, 5 }
   0x6   : > { %s9327_s14 = smov (%p29_p0, %s27_s14), 0  ;;  %s9329_s15 = smov (!%p29_p0, %s31_s15), %s5944_s12 }
   0x7   : > { %p157_p3 = pnand %p5056_p1, %p156_p2  ;;  %p33_p4 = scmp.ge.s32.totalorder %s9329_s15, 2 }
   0x9   : > { %s9331_s15 = smov (%p33_p4, %s9329_s15), 0  ;;  %160 = sbr.rel (%p157_p3) target bundleno = 852 (0x354), region = 28 }
  0x10   : > { %p196_p5 = scmp.lt.s32.totalorder %s5936_s10, 1  ;;  %p198_p6 = scmp.lt.s32.totalorder %s5932_s9, 1  ;;  %v8830_v0 = vmov 0.0   ;;  %vm549_vm0 = vcmask 64512   ;;  %vm4778_vm1 = vcmask 7168  }
  0x11   : > { %1094 = vmatprep.mubr.f32.mxu0 %v8830_v0  ;;  %1574 = vmatprep.mubr.f32.mxu1 %v8830_v0 }
  0x12   : > { %s9333_s10 = smov (!%p196_p5, %s5936_s10), 1  ;;  %s9335_s9 = smov (!%p198_p6, %s5932_s9), 1 }
  0x13   : > { %s5058_s16 = sshll.u32 %s9333_s10, 2  ;;  %s5226_s17 = smul.u32 1280, %s9333_s10 }
  0x14   : > { %s5057_s18 = sshll.u32 %s9335_s9, 1  ;;  %s5227_s27 = smul.u32 160, %s9335_s9 }
  0x15   : > { %s205_s19 = sadd.s32 %s5058_s16, %s5057_s18  ;;  %s6008_s22 = scalar_lea.vmem %s8827_s1, %s5226_s17 }
  0x16   : > { %s5059_s23 = sshll.u32 %s205_s19, 3  ;;  %v389_v1 = vld [vmem:[%s6008_s22] sm:$0xff]  ;;  %v390_v5 = vld [vmem:[%s6008_s22 + $0x8] sm:$0xff]  ;;  %v391_v7 = vld [vmem:[%s6008_s22 + $0x10] sm:$0xff]  ;;  %s5228_s28 = smul.u32 320, %s9333_s10 }
  0x17   : > { %s207_s26 = scalar_lea.vmem %s8826_s0, %s5059_s23  ;;  %v469_v4 = vld [vmem:[%s6008_s22 + $0x280] sm:$0xff]  ;;  %v470_v6 = vld [vmem:[%s6008_s22 + $0x288] sm:$0xff]  ;;  %v471_v8 = vld [vmem:[%s6008_s22 + $0x290] sm:$0xff] }
  0x18   : > { %v388_v2 = vld [vmem:[%s207_s26 + $0x8] sm:$0xff]  ;;  %v387_v3 = vld [vmem:[%s207_s26] sm:$0xff]  ;;  %v392_v9 = vld [vmem:[%s6008_s22 + $0x18] sm:$0xff]  ;;  %s7712_s29 = sadd.s32 %s5228_s28, %s5227_s27 }
  0x19   : > { %1030 = vmatprep.subr.mxu0 %v388_v2  ;;  %5224 = vmatprep.subr.mxu1 %v388_v2  ;;  %v472_v10 = vld [vmem:[%s6008_s22 + $0x298] sm:$0xff]  ;;  %v393_v11 = vld [vmem:[%s6008_s22 + $0x20] sm:$0xff]  ;;  %v394_v13 = vld [vmem:[%s6008_s22 + $0x28] sm:$0xff]  ;;  %s5061_s30 = sshll.u32 %s7712_s29, 3 }
  0x1a   : > { %1031 = vmatpush1.msra.mxu0 %v387_v3  ;;  %5225 = vmatpush1.msra.mxu1 %v387_v3  ;;  %v473_v12 = vld [vmem:[%s6008_s22 + $0x2a0] sm:$0xff]  ;;  %v474_v14 = vld [vmem:[%s6008_s22 + $0x2a8] sm:$0xff]  ;;  %v395_v15 = vld [vmem:[%s6008_s22 + $0x30] sm:$0xff]  ;;  %s7755_s5 = scalar_lea.vmem %s8828_s2, %s5061_s30 }
  0x1b   : > { %5062 = vmatmul.mubr.msk.f32.vlgmr.msra.gmra.mrb[0].mxu0 %vm549_vm0, %v389_v1  ;;  %5142 = vmatmul.mubr.msk.f32.vlgmr.msra.gmra.mrb[0].mxu1 %vm549_vm0, %v469_v4  ;;  %v475_v16 = vld [vmem:[%s6008_s22 + $0x2b0] sm:$0xff]  ;;  %v396_v17 = vld [vmem:[%s6008_s22 + $0x38] sm:$0xff]  ;;  %v397_v19 = vld [vmem:[%s6008_s22 + $0x40] sm:$0xff] }
  0x1c   : > { %1100 = vmatprep.mubr.f32.mxu0 %v8830_v0  ;;  %1580 = vmatprep.mubr.f32.mxu1 %v8830_v0  ;;  %v476_v18 = vld [vmem:[%s6008_s22 + $0x2b8] sm:$0xff]  ;;  %v477_v20 = vld [vmem:[%s6008_s22 + $0x2c0] sm:$0xff]  ;;  %v398_v21 = vld [vmem:[%s6008_s22 + $0x48] sm:$0xff] }
  0x1d   : > { %v478_v22 = vld [vmem:[%s6008_s22 + $0x2c8] sm:$0xff]  ;;  %v399_v23 = vld [vmem:[%s6008_s22 + $0x50] sm:$0xff]  ;;  %v400_v25 = vld [vmem:[%s6008_s22 + $0x58] sm:$0xff] }
  0x1e   : > { %v479_v24 = vld [vmem:[%s6008_s22 + $0x2d0] sm:$0xff]  ;;  %v480_v26 = vld [vmem:[%s6008_s22 + $0x2d8] sm:$0xff]  ;;  %v401_v27 = vld [vmem:[%s6008_s22 + $0x60] sm:$0xff] }
  0x1f   : > { %5063 = vmatmul.mubr.msk.f32.gmra.mrb[2].mxu0 %vm549_vm0, %v390_v5  ;;  %5143 = vmatmul.mubr.msk.f32.gmra.mrb[2].mxu1 %vm549_vm0, %v470_v6  ;;  %v481_v28 = vld [vmem:[%s6008_s22 + $0x2e0] sm:$0xff]  ;;  %v402_v29 = vld [vmem:[%s6008_s22 + $0x68] sm:$0xff]  ;;  %v403_v31 = vld [vmem:[%s6008_s22 + $0x70] sm:$0xff] }
  0x20   : > { %1106 = vmatprep.mubr.f32.mxu0 %v8830_v0  ;;  %1586 = vmatprep.mubr.f32.mxu1 %v8830_v0  ;;  %v482_v30 = vld [vmem:[%s6008_s22 + $0x2e8] sm:$0xff]  ;;  %v483_v32 = vld [vmem:[%s6008_s22 + $0x2f0] sm:$0xff]  ;;  %v404_v33 = vld [vmem:[%s6008_s22 + $0x78] sm:$0xff] }
  0x21   : > { %v484_v34 = vld [vmem:[%s6008_s22 + $0x2f8] sm:$0xff]  ;;  %v405_v35 = vld [vmem:[%s6008_s22 + $0x80] sm:$0xff]  ;;  %v406_v37 = vld [vmem:[%s6008_s22 + $0x88] sm:$0xff] }
  0x22   : > { %v485_v36 = vld [vmem:[%s6008_s22 + $0x300] sm:$0xff]  ;;  %v486_v38 = vld [vmem:[%s6008_s22 + $0x308] sm:$0xff]  ;;  %v407_v39 = vld [vmem:[%s6008_s22 + $0x90] sm:$0xff] }
  0x23   : > { %5064 = vmatmul.mubr.msk.f32.gmra.mrb[4].mxu0 %vm549_vm0, %v391_v7  ;;  %5144 = vmatmul.mubr.msk.f32.gmra.mrb[4].mxu1 %vm549_vm0, %v471_v8  ;;  %v487_v40 = vld [vmem:[%s6008_s22 + $0x310] sm:$0xff]  ;;  %v408_v41 = vld [vmem:[%s6008_s22 + $0x98] sm:$0xff]  ;;  %v409_v43 = vld [vmem:[%s6008_s22 + $0xa0] sm:$0xff] }
  0x24   : > { %1112 = vmatprep.mubr.f32.mxu0 %v8830_v0  ;;  %1592 = vmatprep.mubr.f32.mxu1 %v8830_v0  ;;  %v488_v42 = vld [vmem:[%s6008_s22 + $0x318] sm:$0xff]  ;;  %v489_v44 = vld [vmem:[%s6008_s22 + $0x320] sm:$0xff]  ;;  %v410_v45 = vld [vmem:[%s6008_s22 + $0xa8] sm:$0xff] }
  0x25   : > { %v490_v46 = vld [vmem:[%s6008_s22 + $0x328] sm:$0xff]  ;;  %v411_v47 = vld [vmem:[%s6008_s22 + $0xb0] sm:$0xff]  ;;  %v412_v49 = vld [vmem:[%s6008_s22 + $0xb8] sm:$0xff] }
  0x26   : > { %v491_v48 = vld [vmem:[%s6008_s22 + $0x330] sm:$0xff]  ;;  %v492_v50 = vld [vmem:[%s6008_s22 + $0x338] sm:$0xff]  ;;  %v413_v51 = vld [vmem:[%s6008_s22 + $0xc0] sm:$0xff] }
  0x27   : > { %5065 = vmatmul.mubr.msk.f32.gmra.mrb[6].mxu0 %vm549_vm0, %v392_v9  ;;  %5145 = vmatmul.mubr.msk.f32.gmra.mrb[6].mxu1 %vm549_vm0, %v472_v10  ;;  %v493_v52 = vld [vmem:[%s6008_s22 + $0x340] sm:$0xff]  ;;  %v414_v53 = vld [vmem:[%s6008_s22 + $0xc8] sm:$0xff]  ;;  %v415_v55 = vld [vmem:[%s6008_s22 + $0xd0] sm:$0xff] }
  0x28   : > { %1118 = vmatprep.mubr.f32.mxu0 %v8830_v0  ;;  %1598 = vmatprep.mubr.f32.mxu1 %v8830_v0  ;;  %v494_v54 = vld [vmem:[%s6008_s22 + $0x348] sm:$0xff]  ;;  %v495_v56 = vld [vmem:[%s6008_s22 + $0x350] sm:$0xff]  ;;  %v416_v57 = vld [vmem:[%s6008_s22 + $0xd8] sm:$0xff] }
  0x29   : > { %v496_v58 = vld [vmem:[%s6008_s22 + $0x358] sm:$0xff]  ;;  %v417_v59 = vld [vmem:[%s6008_s22 + $0xe0] sm:$0xff]  ;;  %v418_v61 = vld [vmem:[%s6008_s22 + $0xe8] sm:$0xff] }
  0x2a   : > { %v497_v60 = vld [vmem:[%s6008_s22 + $0x360] sm:$0xff]  ;;  %v498_v62 = vld [vmem:[%s6008_s22 + $0x368] sm:$0xff]  ;;  %v419_v63 = vld [vmem:[%s6008_s22 + $0xf0] sm:$0xff] }
  0x2b   : > { %5066 = vmatmul.mubr.msk.f32.gmra.mrb[8].mxu0 %vm549_vm0, %v393_v11  ;;  %5146 = vmatmul.mubr.msk.f32.gmra.mrb[8].mxu1 %vm549_vm0, %v473_v12  ;;  %v499_v1 = vld [vmem:[%s6008_s22 + $0x370] sm:$0xff]  ;;  %v420_v2 = vld [vmem:[%s6008_s22 + $0xf8] sm:$0xff]  ;;  %v421_v4 = vld [vmem:[%s6008_s22 + $0x100] sm:$0xff] }
  0x2c   : > { %1124 = vmatprep.mubr.f32.mxu0 %v8830_v0  ;;  %1604 = vmatprep.mubr.f32.mxu1 %v8830_v0  ;;  %v500_v3 = vld [vmem:[%s6008_s22 + $0x378] sm:$0xff]  ;;  %v501_v5 = vld [vmem:[%s6008_s22 + $0x380] sm:$0xff]  ;;  %v422_v6 = vld [vmem:[%s6008_s22 + $0x108] sm:$0xff] }
  0x2d   : > { %v502_v7 = vld [vmem:[%s6008_s22 + $0x388] sm:$0xff]  ;;  %v423_v8 = vld [vmem:[%s6008_s22 + $0x110] sm:$0xff]  ;;  %v424_v10 = vld [vmem:[%s6008_s22 + $0x118] sm:$0xff] }
  0x2e   : > { %v503_v9 = vld [vmem:[%s6008_s22 + $0x390] sm:$0xff]  ;;  %v504_v11 = vld [vmem:[%s6008_s22 + $0x398] sm:$0xff]  ;;  %v425_v12 = vld [vmem:[%s6008_s22 + $0x120] sm:$0xff] }
  0x2f   : > { %5067 = vmatmul.mubr.msk.f32.gmra.mrb[10].mxu0 %vm549_vm0, %v394_v13  ;;  %5147 = vmatmul.mubr.msk.f32.gmra.mrb[10].mxu1 %vm549_vm0, %v474_v14  ;;  %v505_v13 = vld [vmem:[%s6008_s22 + $0x3a0] sm:$0xff]  ;;  %v426_v14 = vld [vmem:[%s6008_s22 + $0x128] sm:$0xff] }
  0x30   : > { %1130 = vmatprep.mubr.f32.mxu0 %v8830_v0  ;;  %1610 = vmatprep.mubr.f32.mxu1 %v8830_v0 }
  0x33   : > { %5068 = vmatmul.mubr.msk.f32.gmra.mrb[12].mxu0 %vm549_vm0, %v395_v15  ;;  %5148 = vmatmul.mubr.msk.f32.gmra.mrb[12].mxu1 %vm549_vm0, %v475_v16  ;;  %v506_v15 = vld [vmem:[%s6008_s22 + $0x3a8] sm:$0xff]  ;;  %v427_v16 = vld [vmem:[%s6008_s22 + $0x130] sm:$0xff] }
  0x34   : > { %1136 = vmatprep.mubr.f32.mxu0 %v8830_v0  ;;  %1616 = vmatprep.mubr.f32.mxu1 %v8830_v0 }
  0x37   : > { %5069 = vmatmul.mubr.msk.f32.gmra.mrb[14].mxu0 %vm549_vm0, %v396_v17  ;;  %5149 = vmatmul.mubr.msk.f32.gmra.mrb[14].mxu1 %vm549_vm0, %v476_v18  ;;  %v507_v17 = vld [vmem:[%s6008_s22 + $0x3b0] sm:$0xff]  ;;  %v428_v18 = vld [vmem:[%s6008_s22 + $0x138] sm:$0xff] }
  0x38   : > { %1142 = vmatprep.mubr.f32.mxu0 %v8830_v0  ;;  %1622 = vmatprep.mubr.f32.mxu1 %v8830_v0 }
  0x3b   : > { %5070 = vmatmul.mubr.msk.f32.gmra.mrb[16].mxu0 %vm549_vm0, %v397_v19  ;;  %5150 = vmatmul.mubr.msk.f32.gmra.mrb[16].mxu1 %vm549_vm0, %v477_v20  ;;  %v508_v19 = vld [vmem:[%s6008_s22 + $0x3b8] sm:$0xff]  ;;  %v429_v20 = vld [vmem:[%s6008_s22 + $0x140] sm:$0xff] }
  0x3c   : > { %1148 = vmatprep.mubr.f32.mxu0 %v8830_v0  ;;  %1628 = vmatprep.mubr.f32.mxu1 %v8830_v0 }
  0x3f   : > { %5071 = vmatmul.mubr.msk.f32.gmra.mrb[18].mxu0 %vm549_vm0, %v398_v21  ;;  %5151 = vmatmul.mubr.msk.f32.gmra.mrb[18].mxu1 %vm549_vm0, %v478_v22  ;;  %v509_v21 = vld [vmem:[%s6008_s22 + $0x3c0] sm:$0xff]  ;;  %v430_v22 = vld [vmem:[%s6008_s22 + $0x148] sm:$0xff] }
  0x40   : > { %1154 = vmatprep.mubr.f32.mxu0 %v8830_v0  ;;  %1634 = vmatprep.mubr.f32.mxu1 %v8830_v0 }
  0x43   : > { %5072 = vmatmul.mubr.msk.f32.gmra.mrb[20].mxu0 %vm549_vm0, %v399_v23  ;;  %5152 = vmatmul.mubr.msk.f32.gmra.mrb[20].mxu1 %vm549_vm0, %v479_v24  ;;  %v510_v23 = vld [vmem:[%s6008_s22 + $0x3c8] sm:$0xff]  ;;  %v431_v24 = vld [vmem:[%s6008_s22 + $0x150] sm:$0xff] }
  0x44   : > { %1160 = vmatprep.mubr.f32.mxu0 %v8830_v0  ;;  %1640 = vmatprep.mubr.f32.mxu1 %v8830_v0 }
  0x47   : > { %5073 = vmatmul.mubr.msk.f32.gmra.mrb[22].mxu0 %vm549_vm0, %v400_v25  ;;  %5153 = vmatmul.mubr.msk.f32.gmra.mrb[22].mxu1 %vm549_vm0, %v480_v26  ;;  %v511_v25 = vld [vmem:[%s6008_s22 + $0x3d0] sm:$0xff]  ;;  %v432_v26 = vld [vmem:[%s6008_s22 + $0x158] sm:$0xff] }
  0x48   : > { %1166 = vmatprep.mubr.f32.mxu0 %v8830_v0  ;;  %1646 = vmatprep.mubr.f32.mxu1 %v8830_v0 }
  0x4b   : > { %5074 = vmatmul.mubr.msk.f32.gmra.mrb[24].mxu0 %vm549_vm0, %v401_v27  ;;  %5154 = vmatmul.mubr.msk.f32.gmra.mrb[24].mxu1 %vm549_vm0, %v481_v28  ;;  %v512_v27 = vld [vmem:[%s6008_s22 + $0x3d8] sm:$0xff]  ;;  %v433_v28 = vld [vmem:[%s6008_s22 + $0x160] sm:$0xff] }
  0x4c   : > { %1172 = vmatprep.mubr.f32.mxu0 %v8830_v0  ;;  %1652 = vmatprep.mubr.f32.mxu1 %v8830_v0 }
  0x4f   : > { %5075 = vmatmul.mubr.msk.f32.gmra.mrb[26].mxu0 %vm549_vm0, %v402_v29  ;;  %5155 = vmatmul.mubr.msk.f32.gmra.mrb[26].mxu1 %vm549_vm0, %v482_v30  ;;  %v513_v29 = vld [vmem:[%s6008_s22 + $0x3e0] sm:$0xff]  ;;  %v434_v30 = vld [vmem:[%s6008_s22 + $0x168] sm:$0xff] }
  0x50   : > { %1178 = vmatprep.mubr.f32.mxu0 %v8830_v0  ;;  %1658 = vmatprep.mubr.f32.mxu1 %v8830_v0 }
  0x53   : > { %5076 = vmatmul.mubr.msk.f32.gmra.mrb[28].mxu0 %vm549_vm0, %v403_v31  ;;  %5156 = vmatmul.mubr.msk.f32.gmra.mrb[28].mxu1 %vm549_vm0, %v483_v32  ;;  %v514_v31 = vld [vmem:[%s6008_s22 + $0x3e8] sm:$0xff]  ;;  %v435_v32 = vld [vmem:[%s6008_s22 + $0x170] sm:$0xff] }
  0x54   : > { %1184 = vmatprep.mubr.f32.mxu0 %v8830_v0  ;;  %1664 = vmatprep.mubr.f32.mxu1 %v8830_v0 }
  0x57   : > { %5077 = vmatmul.mubr.msk.f32.gmra.mrb[30].mxu0 %vm549_vm0, %v404_v33  ;;  %5157 = vmatmul.mubr.msk.f32.gmra.mrb[30].mxu1 %vm549_vm0, %v484_v34  ;;  %v515_v33 = vld [vmem:[%s6008_s22 + $0x3f0] sm:$0xff]  ;;  %v436_v34 = vld [vmem:[%s6008_s22 + $0x178] sm:$0xff] }
  0x58   : > { %1190 = vmatprep.mubr.f32.mxu0 %v8830_v0  ;;  %1670 = vmatprep.mubr.f32.mxu1 %v8830_v0 }
  0x5b   : > { %5078 = vmatmul.mubr.msk.f32.gmra.mrb[32].mxu0 %vm549_vm0, %v405_v35  ;;  %5158 = vmatmul.mubr.msk.f32.gmra.mrb[32].mxu1 %vm549_vm0, %v485_v36  ;;  %v516_v35 = vld [vmem:[%s6008_s22 + $0x3f8] sm:$0xff]  ;;  %v437_v36 = vld [vmem:[%s6008_s22 + $0x180] sm:$0xff] }
  0x5c   : > { %1196 = vmatprep.mubr.f32.mxu0 %v8830_v0  ;;  %1676 = vmatprep.mubr.f32.mxu1 %v8830_v0 }
  0x5f   : > { %5079 = vmatmul.mubr.msk.f32.gmra.mrb[34].mxu0 %vm549_vm0, %v406_v37  ;;  %5159 = vmatmul.mubr.msk.f32.gmra.mrb[34].mxu1 %vm549_vm0, %v486_v38  ;;  %v517_v37 = vld [vmem:[%s6008_s22 + $0x400] sm:$0xff]  ;;  %v438_v38 = vld [vmem:[%s6008_s22 + $0x188] sm:$0xff] }
  0x60   : > { %1202 = vmatprep.mubr.f32.mxu0 %v8830_v0  ;;  %1682 = vmatprep.mubr.f32.mxu1 %v8830_v0 }
  0x63   : > { %5080 = vmatmul.mubr.msk.f32.gmra.mrb[36].mxu0 %vm549_vm0, %v407_v39  ;;  %5160 = vmatmul.mubr.msk.f32.gmra.mrb[36].mxu1 %vm549_vm0, %v487_v40  ;;  %v518_v39 = vld [vmem:[%s6008_s22 + $0x408] sm:$0xff]  ;;  %v439_v40 = vld [vmem:[%s6008_s22 + $0x190] sm:$0xff] }
  0x64   : > { %1208 = vmatprep.mubr.f32.mxu0 %v8830_v0  ;;  %1688 = vmatprep.mubr.f32.mxu1 %v8830_v0 }
  0x67   : > { %5081 = vmatmul.mubr.msk.f32.gmra.mrb[38].mxu0 %vm549_vm0, %v408_v41  ;;  %5161 = vmatmul.mubr.msk.f32.gmra.mrb[38].mxu1 %vm549_vm0, %v488_v42  ;;  %v519_v41 = vld [vmem:[%s6008_s22 + $0x410] sm:$0xff]  ;;  %v440_v42 = vld [vmem:[%s6008_s22 + $0x198] sm:$0xff] }
  0x68   : > { %1214 = vmatprep.mubr.f32.mxu0 %v8830_v0  ;;  %1694 = vmatprep.mubr.f32.mxu1 %v8830_v0 }
  0x6b   : > { %5082 = vmatmul.mubr.msk.f32.gmra.mrb[40].mxu0 %vm549_vm0, %v409_v43  ;;  %5162 = vmatmul.mubr.msk.f32.gmra.mrb[40].mxu1 %vm549_vm0, %v489_v44  ;;  %v520_v43 = vld [vmem:[%s6008_s22 + $0x418] sm:$0xff]  ;;  %v441_v44 = vld [vmem:[%s6008_s22 + $0x1a0] sm:$0xff] }
  0x6c   : > { %1220 = vmatprep.mubr.f32.mxu0 %v8830_v0  ;;  %1700 = vmatprep.mubr.f32.mxu1 %v8830_v0 }
  0x6f   : > { %5083 = vmatmul.mubr.msk.f32.gmra.mrb[42].mxu0 %vm549_vm0, %v410_v45  ;;  %5163 = vmatmul.mubr.msk.f32.gmra.mrb[42].mxu1 %vm549_vm0, %v490_v46  ;;  %v521_v45 = vld [vmem:[%s6008_s22 + $0x420] sm:$0xff]  ;;  %v442_v46 = vld [vmem:[%s6008_s22 + $0x1a8] sm:$0xff] }
  0x70   : > { %1226 = vmatprep.mubr.f32.mxu0 %v8830_v0  ;;  %1706 = vmatprep.mubr.f32.mxu1 %v8830_v0 }
  0x73   : > { %5084 = vmatmul.mubr.msk.f32.gmra.mrb[44].mxu0 %vm549_vm0, %v411_v47  ;;  %5164 = vmatmul.mubr.msk.f32.gmra.mrb[44].mxu1 %vm549_vm0, %v491_v48  ;;  %v522_v47 = vld [vmem:[%s6008_s22 + $0x428] sm:$0xff] }
  0x74   : > { %1232 = vmatprep.mubr.f32.mxu0 %v8830_v0  ;;  %1712 = vmatprep.mubr.f32.mxu1 %v8830_v0 }
  0x77   : > { %5085 = vmatmul.mubr.msk.f32.gmra.mrb[46].mxu0 %vm549_vm0, %v412_v49  ;;  %5165 = vmatmul.mubr.msk.f32.gmra.mrb[46].mxu1 %vm549_vm0, %v492_v50 }
  0x78   : > { %1238 = vmatprep.mubr.f32.mxu0 %v8830_v0  ;;  %1718 = vmatprep.mubr.f32.mxu1 %v8830_v0 }
  0x7b   : > { %5086 = vmatmul.mubr.msk.f32.gmra.mrb[48].mxu0 %vm549_vm0, %v413_v51  ;;  %5166 = vmatmul.mubr.msk.f32.gmra.mrb[48].mxu1 %vm549_vm0, %v493_v52 }
  0x7c   : > { %1244 = vmatprep.mubr.f32.mxu0 %v8830_v0  ;;  %1724 = vmatprep.mubr.f32.mxu1 %v8830_v0 }
  0x7f   : > { %5087 = vmatmul.mubr.msk.f32.gmra.mrb[50].mxu0 %vm549_vm0, %v414_v53  ;;  %5167 = vmatmul.mubr.msk.f32.gmra.mrb[50].mxu1 %vm549_vm0, %v494_v54 }
  0x80   : > { %1250 = vmatprep.mubr.f32.mxu0 %v8830_v0  ;;  %1730 = vmatprep.mubr.f32.mxu1 %v8830_v0 }
  0x83   : > { %5088 = vmatmul.mubr.msk.f32.gmra.mrb[52].mxu0 %vm549_vm0, %v415_v55  ;;  %5168 = vmatmul.mubr.msk.f32.gmra.mrb[52].mxu1 %vm549_vm0, %v495_v56  ;;  %v443_v56 = vld [vmem:[%s6008_s22 + $0x1b0] sm:$0xff] }
  0x84   : > { %1256 = vmatprep.mubr.f32.mxu0 %v8830_v0  ;;  %1736 = vmatprep.mubr.f32.mxu1 %v8830_v0 }
  0x87   : > { %5089 = vmatmul.mubr.msk.f32.gmra.mrb[54].mxu0 %vm549_vm0, %v416_v57  ;;  %5169 = vmatmul.mubr.msk.f32.gmra.mrb[54].mxu1 %vm549_vm0, %v496_v58  ;;  %v523_v57 = vld [vmem:[%s6008_s22 + $0x430] sm:$0xff] }
  0x88   : > { %1262 = vmatprep.mubr.f32.mxu0 %v8830_v0  ;;  %1742 = vmatprep.mubr.f32.mxu1 %v8830_v0 }
  0x8b   : > { %5090 = vmatmul.mubr.msk.f32.gmra.mrb[56].mxu0 %vm549_vm0, %v417_v59  ;;  %5170 = vmatmul.mubr.msk.f32.gmra.mrb[56].mxu1 %vm549_vm0, %v497_v60 }
  0x8c   : > { %1268 = vmatprep.mubr.f32.mxu0 %v8830_v0  ;;  %1748 = vmatprep.mubr.f32.mxu1 %v8830_v0 }
  0x8f   : > { %5091 = vmatmul.mubr.msk.f32.gmra.mrb[58].mxu0 %vm549_vm0, %v418_v61  ;;  %5171 = vmatmul.mubr.msk.f32.gmra.mrb[58].mxu1 %vm549_vm0, %v498_v62 }
  0x90   : > { %1274 = vmatprep.mubr.f32.mxu0 %v8830_v0  ;;  %1754 = vmatprep.mubr.f32.mxu1 %v8830_v0 }
  0x93   : > { %5092 = vmatmul.mubr.msk.f32.gmra.mrb[60].mxu0 %vm549_vm0, %v419_v63  ;;  %5172 = vmatmul.mubr.msk.f32.gmra.mrb[60].mxu1 %vm549_vm0, %v499_v1 }
  0x94   : > { %1280 = vmatprep.mubr.f32.mxu0 %v8830_v0  ;;  %1760 = vmatprep.mubr.f32.mxu1 %v8830_v0 }
  0x97   : > { %5093 = vmatmul.mubr.msk.f32.gmra.mrb[62].mxu0 %vm549_vm0, %v420_v2  ;;  %5173 = vmatmul.mubr.msk.f32.gmra.mrb[62].mxu1 %vm549_vm0, %v500_v3  ;;  %v444_v3 = vld [vmem:[%s6008_s22 + $0x1b8] sm:$0xff] }
  0x98   : > { %1286 = vmatprep.mubr.f32.mxu0 %v8830_v0  ;;  %1766 = vmatprep.mubr.f32.mxu1 %v8830_v0 }
  0x9b   : > { %5094 = vmatmul.mubr.msk.f32.gmra.mrb[64].mxu0 %vm549_vm0, %v421_v4  ;;  %5174 = vmatmul.mubr.msk.f32.gmra.mrb[64].mxu1 %vm549_vm0, %v501_v5  ;;  %v524_v4 = vld [vmem:[%s6008_s22 + $0x438] sm:$0xff] }
  0x9c   : > { %1292 = vmatprep.mubr.f32.mxu0 %v8830_v0  ;;  %1772 = vmatprep.mubr.f32.mxu1 %v8830_v0 }
  0x9f   : > { %5095 = vmatmul.mubr.msk.f32.gmra.mrb[66].mxu0 %vm549_vm0, %v422_v6  ;;  %5175 = vmatmul.mubr.msk.f32.gmra.mrb[66].mxu1 %vm549_vm0, %v502_v7 }
  0xa0   : > { %1298 = vmatprep.mubr.f32.mxu0 %v8830_v0  ;;  %1778 = vmatprep.mubr.f32.mxu1 %v8830_v0 }
  0xa3   : > { %5096 = vmatmul.mubr.msk.f32.gmra.mrb[68].mxu0 %vm549_vm0, %v423_v8  ;;  %5176 = vmatmul.mubr.msk.f32.gmra.mrb[68].mxu1 %vm549_vm0, %v503_v9 }
  0xa4   : > { %1304 = vmatprep.mubr.f32.mxu0 %v8830_v0  ;;  %1784 = vmatprep.mubr.f32.mxu1 %v8830_v0 }
  0xa7   : > { %5097 = vmatmul.mubr.msk.f32.gmra.mrb[70].mxu0 %vm549_vm0, %v424_v10  ;;  %5177 = vmatmul.mubr.msk.f32.gmra.mrb[70].mxu1 %vm549_vm0, %v504_v11 }
  0xa8   : > { %1310 = vmatprep.mubr.f32.mxu0 %v8830_v0  ;;  %1790 = vmatprep.mubr.f32.mxu1 %v8830_v0 }
  0xab   : > { %5098 = vmatmul.mubr.msk.f32.gmra.mrb[72].mxu0 %vm549_vm0, %v425_v12  ;;  %5178 = vmatmul.mubr.msk.f32.gmra.mrb[72].mxu1 %vm549_vm0, %v505_v13  ;;  %v445_v13 = vld [vmem:[%s6008_s22 + $0x1c0] sm:$0xff] }
  0xac   : > { %1316 = vmatprep.mubr.f32.mxu0 %v8830_v0  ;;  %1796 = vmatprep.mubr.f32.mxu1 %v8830_v0 }
  0xaf   : > { %5099 = vmatmul.mubr.msk.f32.gmra.mrb[74].mxu0 %vm549_vm0, %v426_v14  ;;  %5179 = vmatmul.mubr.msk.f32.gmra.mrb[74].mxu1 %vm549_vm0, %v506_v15  ;;  %v525_v14 = vld [vmem:[%s6008_s22 + $0x440] sm:$0xff] }
  0xb0   : > { %1322 = vmatprep.mubr.f32.mxu0 %v8830_v0  ;;  %1802 = vmatprep.mubr.f32.mxu1 %v8830_v0 }
  0xb3   : > { %5100 = vmatmul.mubr.msk.f32.gmra.mrb[76].mxu0 %vm549_vm0, %v427_v16  ;;  %5180 = vmatmul.mubr.msk.f32.gmra.mrb[76].mxu1 %vm549_vm0, %v507_v17 }
  0xb4   : > { %1328 = vmatprep.mubr.f32.mxu0 %v8830_v0  ;;  %1808 = vmatprep.mubr.f32.mxu1 %v8830_v0 }
  0xb7   : > { %5101 = vmatmul.mubr.msk.f32.gmra.mrb[78].mxu0 %vm549_vm0, %v428_v18  ;;  %5181 = vmatmul.mubr.msk.f32.gmra.mrb[78].mxu1 %vm549_vm0, %v508_v19 }
  0xb8   : > { %1334 = vmatprep.mubr.f32.mxu0 %v8830_v0  ;;  %1814 = vmatprep.mubr.f32.mxu1 %v8830_v0 }
  0xbb   : > { %5102 = vmatmul.mubr.msk.f32.gmra.mrb[80].mxu0 %vm549_vm0, %v429_v20  ;;  %5182 = vmatmul.mubr.msk.f32.gmra.mrb[80].mxu1 %vm549_vm0, %v509_v21 }
  0xbc   : > { %1340 = vmatprep.mubr.f32.mxu0 %v8830_v0  ;;  %1820 = vmatprep.mubr.f32.mxu1 %v8830_v0 }
  0xbf   : > { %5103 = vmatmul.mubr.msk.f32.gmra.mrb[82].mxu0 %vm549_vm0, %v430_v22  ;;  %5183 = vmatmul.mubr.msk.f32.gmra.mrb[82].mxu1 %vm549_vm0, %v510_v23 }
  0xc0   : > { %1346 = vmatprep.mubr.f32.mxu0 %v8830_v0  ;;  %1826 = vmatprep.mubr.f32.mxu1 %v8830_v0 }
  0xc3   : > { %5104 = vmatmul.mubr.msk.f32.gmra.mrb[84].mxu0 %vm549_vm0, %v431_v24  ;;  %5184 = vmatmul.mubr.msk.f32.gmra.mrb[84].mxu1 %vm549_vm0, %v511_v25 }
  0xc4   : > { %1352 = vmatprep.mubr.f32.mxu0 %v8830_v0  ;;  %1832 = vmatprep.mubr.f32.mxu1 %v8830_v0 }
  0xc7   : > { %5105 = vmatmul.mubr.msk.f32.gmra.mrb[86].mxu0 %vm549_vm0, %v432_v26  ;;  %5185 = vmatmul.mubr.msk.f32.gmra.mrb[86].mxu1 %vm549_vm0, %v512_v27  ;;  %v446_v26 = vld [vmem:[%s6008_s22 + $0x1c8] sm:$0xff] }
  0xc8   : > { %1358 = vmatprep.mubr.f32.mxu0 %v8830_v0  ;;  %1838 = vmatprep.mubr.f32.mxu1 %v8830_v0  ;;  %v526_v27 = vld [vmem:[%s6008_s22 + $0x448] sm:$0xff] }
  0xcb   : > { %5106 = vmatmul.mubr.msk.f32.gmra.mrb[88].mxu0 %vm549_vm0, %v433_v28  ;;  %5186 = vmatmul.mubr.msk.f32.gmra.mrb[88].mxu1 %vm549_vm0, %v513_v29 }
  0xcc   : > { %1364 = vmatprep.mubr.f32.mxu0 %v8830_v0  ;;  %1844 = vmatprep.mubr.f32.mxu1 %v8830_v0 }
  0xcf   : > { %5107 = vmatmul.mubr.msk.f32.gmra.mrb[90].mxu0 %vm549_vm0, %v434_v30  ;;  %5187 = vmatmul.mubr.msk.f32.gmra.mrb[90].mxu1 %vm549_vm0, %v514_v31 }
  0xd0   : > { %1370 = vmatprep.mubr.f32.mxu0 %v8830_v0  ;;  %1850 = vmatprep.mubr.f32.mxu1 %v8830_v0 }
  0xd3   : > { %5108 = vmatmul.mubr.msk.f32.gmra.mrb[92].mxu0 %vm549_vm0, %v435_v32  ;;  %5188 = vmatmul.mubr.msk.f32.gmra.mrb[92].mxu1 %vm549_vm0, %v515_v33 }
  0xd4   : > { %1376 = vmatprep.mubr.f32.mxu0 %v8830_v0  ;;  %1856 = vmatprep.mubr.f32.mxu1 %v8830_v0 }
  0xd7   : > { %5109 = vmatmul.mubr.msk.f32.gmra.mrb[94].mxu0 %vm549_vm0, %v436_v34  ;;  %5189 = vmatmul.mubr.msk.f32.gmra.mrb[94].mxu1 %vm549_vm0, %v516_v35 }
  0xd8   : > { %1382 = vmatprep.mubr.f32.mxu0 %v8830_v0  ;;  %1862 = vmatprep.mubr.f32.mxu1 %v8830_v0 }
  0xdb   : > { %5110 = vmatmul.mubr.msk.f32.gmra.mrb[96].mxu0 %vm549_vm0, %v437_v36  ;;  %5190 = vmatmul.mubr.msk.f32.gmra.mrb[96].mxu1 %vm549_vm0, %v517_v37 }
  0xdc   : > { %1388 = vmatprep.mubr.f32.mxu0 %v8830_v0  ;;  %1868 = vmatprep.mubr.f32.mxu1 %v8830_v0 }
  0xdf   : > { %5111 = vmatmul.mubr.msk.f32.gmra.mrb[98].mxu0 %vm549_vm0, %v438_v38  ;;  %5191 = vmatmul.mubr.msk.f32.gmra.mrb[98].mxu1 %vm549_vm0, %v518_v39 }
  0xe0   : > { %1394 = vmatprep.mubr.f32.mxu0 %v8830_v0  ;;  %1874 = vmatprep.mubr.f32.mxu1 %v8830_v0 }
  0xe3   : > { %5112 = vmatmul.mubr.msk.f32.gmra.mrb[100].mxu0 %vm549_vm0, %v439_v40  ;;  %5192 = vmatmul.mubr.msk.f32.gmra.mrb[100].mxu1 %vm549_vm0, %v519_v41 }
  0xe4   : > { %1400 = vmatprep.mubr.f32.mxu0 %v8830_v0  ;;  %1880 = vmatprep.mubr.f32.mxu1 %v8830_v0 }
  0xe7   : > { %5113 = vmatmul.mubr.msk.f32.gmra.mrb[102].mxu0 %vm549_vm0, %v440_v42  ;;  %5193 = vmatmul.mubr.msk.f32.gmra.mrb[102].mxu1 %vm549_vm0, %v520_v43 }
  0xe8   : > { %1406 = vmatprep.mubr.f32.mxu0 %v8830_v0  ;;  %1886 = vmatprep.mubr.f32.mxu1 %v8830_v0 }
  0xeb   : > { %5114 = vmatmul.mubr.msk.f32.gmra.mrb[104].mxu0 %vm549_vm0, %v441_v44  ;;  %5194 = vmatmul.mubr.msk.f32.gmra.mrb[104].mxu1 %vm549_vm0, %v521_v45  ;;  %v447_v45 = vld [vmem:[%s6008_s22 + $0x1d0] sm:$0xff] }
  0xec   : > { %1412 = vmatprep.mubr.f32.mxu0 %v8830_v0  ;;  %1892 = vmatprep.mubr.f32.mxu1 %v8830_v0 }
  0xee   : > { %v6333_v48 = vpop.f32.mrb[0].mxu0  ;;  %v6335_v49 = vpop.f32.mrb[0].mxu1 }
  0xef   : > { %v2055_v50 = vmul.f32 0.5, %v6333_v48  ;;  %v2215_v51 = vmul.f32 0.5, %v6335_v49  ;;  %v6339_v52 = vpop.f32.mrb[1].mxu0  ;;  %5115 = vmatmul.mubr.msk.f32.gmra.mrb[106].mxu0 %vm549_vm0, %v442_v46  ;;  %v6342_v53 = vpop.f32.mrb[1].mxu1  ;;  %5195 = vmatmul.mubr.msk.f32.gmra.mrb[106].mxu1 %vm549_vm0, %v522_v47  ;;  %v527_v46 = vld [vmem:[%s6008_s22 + $0x450] sm:$0xff] }
  0xf0   : > { %v2056_v54 = vmul.f32 0.5, %v6339_v52  ;;  %v2216_v55 = vmul.f32 0.5, %v6342_v53  ;;  %1418 = vmatprep.mubr.f32.mxu0 %v8830_v0  ;;  %1898 = vmatprep.mubr.f32.mxu1 %v8830_v0 }
  0xf1   : > { %5270 = vtanh.f32 %v2055_v50 }
  0xf2   : > { %5272 = vtanh.f32 %v2215_v51  ;;  %v6351_v58 = vpop.f32.mrb[2].mxu0  ;;  %v6353_v59 = vpop.f32.mrb[2].mxu1 }
  0xf3   : > { %5274 = vtanh.f32 %v2056_v54  ;;  %v2057_v60 = vmul.f32 0.5, %v6351_v58  ;;  %v2217_v61 = vmul.f32 0.5, %v6353_v59  ;;  %v6357_v62 = vpop.f32.mrb[3].mxu0  ;;  %5116 = vmatmul.mubr.msk.f32.gmra.mrb[108].mxu0 %vm549_vm0, %v443_v56  ;;  %v6360_v63 = vpop.f32.mrb[3].mxu1  ;;  %5196 = vmatmul.mubr.msk.f32.gmra.mrb[108].mxu1 %vm549_vm0, %v523_v57 }
  0xf4   : > { %5276 = vtanh.f32 %v2216_v55  ;;  %v2058_v1 = vmul.f32 0.5, %v6357_v62  ;;  %v2218_v2 = vmul.f32 0.5, %v6360_v63  ;;  %1424 = vmatprep.mubr.f32.mxu0 %v8830_v0  ;;  %1904 = vmatprep.mubr.f32.mxu1 %v8830_v0 }
  0xf5   : > { %5278 = vtanh.f32 %v2057_v60 }
  0xf6   : > { %5280 = vtanh.f32 %v2217_v61  ;;  %v6369_v5 = vpop.f32.mrb[4].mxu0  ;;  %v6371_v6 = vpop.f32.mrb[4].mxu1 }
  0xf7   : > { %5282 = vtanh.f32 %v2058_v1  ;;  %v2059_v7 = vmul.f32 0.5, %v6369_v5  ;;  %v2219_v8 = vmul.f32 0.5, %v6371_v6  ;;  %v6375_v9 = vpop.f32.mrb[5].mxu0  ;;  %5117 = vmatmul.mubr.msk.f32.gmra.mrb[110].mxu0 %vm549_vm0, %v444_v3  ;;  %v6378_v10 = vpop.f32.mrb[5].mxu1  ;;  %5197 = vmatmul.mubr.msk.f32.gmra.mrb[110].mxu1 %vm549_vm0, %v524_v4 }
  0xf8   : > { %5284 = vtanh.f32 %v2218_v2  ;;  %v2060_v11 = vmul.f32 0.5, %v6375_v9  ;;  %v2220_v12 = vmul.f32 0.5, %v6378_v10  ;;  %1430 = vmatprep.mubr.f32.mxu0 %v8830_v0  ;;  %1910 = vmatprep.mubr.f32.mxu1 %v8830_v0 }
  0xf9   : > { %5286 = vtanh.f32 %v2059_v7 }
  0xfa   : > { %5288 = vtanh.f32 %v2219_v8  ;;  %v6387_v15 = vpop.f32.mrb[6].mxu0  ;;  %v6389_v16 = vpop.f32.mrb[6].mxu1 }
  0xfb   : > { %v5271_v17 = vpop.eup %5270  ;;  %5290 = vtanh.f32 %v2060_v11  ;;  %v2061_v18 = vmul.f32 0.5, %v6387_v15  ;;  %v2221_v19 = vmul.f32 0.5, %v6389_v16  ;;  %v6393_v20 = vpop.f32.mrb[7].mxu0  ;;  %5118 = vmatmul.mubr.msk.f32.gmra.mrb[112].mxu0 %vm549_vm0, %v445_v13  ;;  %5198 = vmatmul.mubr.msk.f32.gmra.mrb[112].mxu1 %vm549_vm0, %v525_v14  ;;  %v448_v14 = vld [vmem:[%s6008_s22 + $0x1d8] sm:$0xff] }
  0xfc   : > { %v6396_v21 = vpop.f32.mrb[7].mxu1  ;;  %v5273_v22 = vpop.eup %5272  ;;  %v2695_v23 = vmul.f32 0.5, %v5271_v17  ;;  %5292 = vtanh.f32 %v2220_v12  ;;  %v2062_v24 = vmul.f32 0.5, %v6393_v20  ;;  %1436 = vmatprep.mubr.f32.mxu0 %v8830_v0  ;;  %1916 = vmatprep.mubr.f32.mxu1 %v8830_v0  ;;  %v528_v17 = vld [vmem:[%s6008_s22 + $0x458] sm:$0xff] }
  0xfd   : > { %v2222_v25 = vmul.f32 0.5, %v6396_v21  ;;  %v5275_v28 = vpop.eup %5274  ;;  %v2855_v29 = vmul.f32 0.5, %v5273_v22  ;;  %5294 = vtanh.f32 %v2061_v18 }
  0xfe   : > { %v5277_v30 = vpop.eup %5276  ;;  %v3015_v31 = vadd.f32 0.5, %v2695_v23  ;;  %v2696_v32 = vmul.f32 0.5, %v5275_v28  ;;  %5296 = vtanh.f32 %v2221_v19  ;;  %v6405_v33 = vpop.f32.mrb[8].mxu0 }
  0xff   : > { %v6407_v34 = vpop.f32.mrb[8].mxu1  ;;  %v5279_v35 = vpop.eup %5278  ;;  %v3175_v36 = vadd.f32 0.5, %v2855_v29  ;;  %v2856_v37 = vmul.f32 0.5, %v5277_v30  ;;  %5298 = vtanh.f32 %v2062_v24  ;;  %v2063_v38 = vmul.f32 0.5, %v6405_v33  ;;  %5119 = vmatmul.mubr.msk.f32.gmra.mrb[114].mxu0 %vm549_vm0, %v446_v26  ;;  %5199 = vmatmul.mubr.msk.f32.gmra.mrb[114].mxu1 %vm549_vm0, %v526_v27 }
 0x100   : > { %v6410_v39 = vpop.f32.mrb[9].mxu0  ;;  %v6413_v40 = vpop.f32.mrb[9].mxu1  ;;  %v6417_v42 = vmul.f32 %v3015_v31, %v6333_v48  ;;  %v3016_v43 = vadd.f32 0.5, %v2696_v32  ;;  %v2697_v44 = vmul.f32 0.5, %v5279_v35  ;;  %5300 = vtanh.f32 %v2222_v25  ;;  %1442 = vmatprep.mubr.f32.mxu0 %v8830_v0  ;;  %1922 = vmatprep.mubr.f32.mxu1 %v8830_v0 }
 0x101   : > { %v5281_v41 = vpop.eup %5280  ;;  %v6424_v50 = vmul.f32 %v3175_v36, %v6335_v49  ;;  %v3176_v51 = vadd.f32 0.5, %v2856_v37  ;;  %5302 = vtanh.f32 %v2063_v38  ;;  %v2223_v60 = vmul.f32 0.5, %v6407_v34 }
 0x102   : > { %v5283_v47 = vpop.eup %5282  ;;  %v2857_v54 = vmul.f32 0.5, %v5281_v41  ;;  %v6427_v48 = vmul.f32 %v3016_v43, %v6339_v52  ;;  %v3017_v56 = vadd.f32 0.5, %v2697_v44  ;;  %v6430_v61 = vpop.f32.mrb[10].mxu0  ;;  %v2064_v7 = vmul.f32 0.5, %v6410_v39  ;;  %v449_v43 = vld [vmem:[%s6008_s22 + $0x1e0] sm:$0xff] }
 0x103   : > { %v5285_v55 = vpop.eup %5284  ;;  %v2698_v57 = vmul.f32 0.5, %v5283_v47  ;;  %v6432_v1 = vpop.f32.mrb[10].mxu1  ;;  %v6435_v49 = vmul.f32 %v3176_v51, %v6342_v53  ;;  %5120 = vmatmul.mubr.msk.f32.gmra.mrb[116].mxu0 %vm549_vm0, %v447_v45  ;;  %5200 = vmatmul.mubr.msk.f32.gmra.mrb[116].mxu1 %vm549_vm0, %v527_v46  ;;  %5304 = vtanh.f32 %v2223_v60  ;;  %v2224_v27 = vmul.f32 0.5, %v6413_v40  ;;  %v529_v44 = vld [vmem:[%s6008_s22 + $0x460] sm:$0xff] }
 0x104   : > { %v5287_v2 = vpop.eup %5286  ;;  %v3177_v3 = vadd.f32 0.5, %v2857_v54  ;;  %v2858_v4 = vmul.f32 0.5, %v5285_v55  ;;  %v6438_v52 = vpop.f32.mrb[11].mxu0  ;;  %v6445_v12 = vmul.f32 %v3017_v56, %v6351_v58  ;;  %1448 = vmatprep.mubr.f32.mxu0 %v8830_v0  ;;  %1928 = vmatprep.mubr.f32.mxu1 %v8830_v0  ;;  %5306 = vtanh.f32 %v2064_v7 }
 0x105   : > { %v6441_v8 = vpop.f32.mrb[11].mxu1  ;;  %v5289_v11 = vpop.eup %5288  ;;  %v3018_v13 = vadd.f32 0.5, %v2698_v57  ;;  %v2699_v53 = vmul.f32 0.5, %v5287_v2  ;;  %v2065_v35 = vmul.f32 0.5, %v6430_v61  ;;  %5308 = vtanh.f32 %v2224_v27 }
 0x106   : > { %v5291_v18 = vpop.eup %5290  ;;  %v6452_v19 = vmul.f32 %v3177_v3, %v6353_v59  ;;  %v3178_v22 = vadd.f32 0.5, %v2858_v4  ;;  %v2859_v23 = vmul.f32 0.5, %v5289_v11  ;;  %v6458_v28 = vpop.f32.mrb[12].mxu0  ;;  %v2225_v57 = vmul.f32 0.5, %v6432_v1 }
 0x107   : > { %v5293_v24 = vpop.eup %5292  ;;  %v6455_v58 = vmul.f32 %v3018_v13, %v6357_v62  ;;  %v3019_v25 = vadd.f32 0.5, %v2699_v53  ;;  %v2700_v26 = vmul.f32 0.5, %v5291_v18  ;;  %v6460_v29 = vpop.f32.mrb[12].mxu1  ;;  %5121 = vmatmul.mubr.msk.f32.gmra.mrb[118].mxu0 %vm549_vm0, %v448_v14  ;;  %5201 = vmatmul.mubr.msk.f32.gmra.mrb[118].mxu1 %vm549_vm0, %v528_v17  ;;  %5310 = vtanh.f32 %v2065_v35  ;;  %v530_v18 = vld [vmem:[%s6008_s22 + $0x468] sm:$0xff] }
 0x108   : > { %v5295_v30 = vpop.eup %5294  ;;  %v6463_v59 = vmul.f32 %v3178_v22, %v6360_v63  ;;  %v3179_v31 = vadd.f32 0.5, %v2859_v23  ;;  %v2860_v32 = vmul.f32 0.5, %v5293_v24  ;;  %v6466_v62 = vpop.f32.mrb[13].mxu0  ;;  %1454 = vmatprep.mubr.f32.mxu0 %v8830_v0  ;;  %1934 = vmatprep.mubr.f32.mxu1 %v8830_v0  ;;  %v2066_v11 = vmul.f32 0.5, %v6438_v52 }
 0x109   : > { %v6469_v36 = vpop.f32.mrb[13].mxu1  ;;  %v5297_v37 = vpop.eup %5296  ;;  %v6473_v38 = vmul.f32 %v3019_v25, %v6369_v5  ;;  %v3020_v41 = vadd.f32 0.5, %v2700_v26  ;;  %v2701_v63 = vmul.f32 0.5, %v5295_v30  ;;  %5312 = vtanh.f32 %v2225_v57 }
 0x10a   : > { %v5299_v45 = vpop.eup %5298  ;;  %v6480_v46 = vmul.f32 %v3179_v31, %v6371_v6  ;;  %v3180_v47 = vadd.f32 0.5, %v2860_v32  ;;  %v2861_v51 = vmul.f32 0.5, %v5297_v37  ;;  %v6486_v60 = vpop.f32.mrb[14].mxu0  ;;  %5314 = vtanh.f32 %v2066_v11 }
 0x10b   : > { %v5301_v54 = vpop.eup %5300  ;;  %v6483_v5 = vmul.f32 %v3020_v41, %v6375_v9  ;;  %v3021_v55 = vadd.f32 0.5, %v2701_v63  ;;  %v2702_v56 = vmul.f32 0.5, %v5299_v45  ;;  %v6488_v2 = vpop.f32.mrb[14].mxu1  ;;  %5122 = vmatmul.mubr.msk.f32.gmra.mrb[120].mxu0 %vm549_vm0, %v449_v43  ;;  %5202 = vmatmul.mubr.msk.f32.gmra.mrb[120].mxu1 %vm549_vm0, %v529_v44  ;;  %v2226_v24 = vmul.f32 0.5, %v6441_v8  ;;  %v451_v43 = vld [vmem:[%s6008_s22 + $0x1f0] sm:$0xff] }
 0x10c   : > { %v5303_v3 = vpop.eup %5302  ;;  %v6491_v6 = vmul.f32 %v3180_v47, %v6378_v10  ;;  %v3181_v4 = vadd.f32 0.5, %v2861_v51  ;;  %v2862_v7 = vmul.f32 0.5, %v5301_v54  ;;  %v6494_v9 = vpop.f32.mrb[15].mxu0  ;;  %1460 = vmatprep.mubr.f32.mxu0 %v8830_v0  ;;  %1940 = vmatprep.mubr.f32.mxu1 %v8830_v0  ;;  %v450_v10 = vld [vmem:[%s6008_s22 + $0x1e8] sm:$0xff]  ;;  %v3655_v27 = vadd.f32 %v6427_v48, %v6417_v42  ;;  %v531_v51 = vld [vmem:[%s6008_s22 + $0x470] sm:$0xff] }
 0x10d   : > { %v6497_v13 = vpop.f32.mrb[15].mxu1  ;;  %v6501_v53 = vmul.f32 %v3021_v55, %v6387_v15  ;;  %v3022_v14 = vadd.f32 0.5, %v2702_v56  ;;  %v2703_v17 = vmul.f32 0.5, %v5303_v3  ;;  %v5305_v25 = vpop.eup %5304  ;;  %v2067_v30 = vmul.f32 0.5, %v6458_v28 }
 0x10e   : > { %v6508_v22 = vmul.f32 %v3181_v4, %v6389_v16  ;;  %v3182_v23 = vadd.f32 0.5, %v2862_v7  ;;  %v6517_v31 = vpop.f32.mrb[16].mxu0  ;;  %v6519_v32 = vpop.f32.mrb[16].mxu1  ;;  %v2863_v37 = vmul.f32 0.5, %v5305_v25  ;;  %5316 = vtanh.f32 %v2226_v24  ;;  %4458 = vadd.xlane.f32.xlu0 %v3655_v27 }
 0x10f   : > { %v6512_v15 = vmul.f32 %v3022_v14, %v6393_v20  ;;  %v3023_v26 = vadd.f32 0.5, %v2703_v17  ;;  %v5307_v16 = vpop.eup %5306  ;;  %v2227_v20 = vmul.f32 0.5, %v6460_v29  ;;  %v6525_v41 = vpop.f32.mrb[17].mxu0  ;;  %5123 = vmatmul.mubr.msk.f32.gmra.mrb[122].mxu0 %vm549_vm0, %v450_v10  ;;  %5203 = vmatmul.mubr.msk.f32.gmra.mrb[122].mxu1 %vm549_vm0, %v530_v18  ;;  %5318 = vtanh.f32 %v2067_v30  ;;  %v452_v17 = vld [vmem:[%s6008_s22 + $0x1f8] sm:$0xff] }
 0x110   : > { %v6522_v35 = vmul.f32 %v3182_v23, %v6396_v21  ;;  %v6528_v42 = vpop.f32.mrb[17].mxu1  ;;  %v2704_v63 = vmul.f32 0.5, %v5307_v16  ;;  %v2068_v21 = vmul.f32 0.5, %v6466_v62  ;;  %1466 = vmatprep.mubr.f32.mxu0 %v8830_v0  ;;  %v3183_v44 = vadd.f32 0.5, %v2863_v37  ;;  %1946 = vmatprep.mubr.f32.mxu1 %v8830_v0  ;;  %v532_v16 = vld [vmem:[%s6008_s22 + $0x478] sm:$0xff] }
 0x111   : > { %v6532_v48 = vmul.f32 %v3023_v26, %v6405_v33  ;;  %5320 = vtanh.f32 %v2227_v20  ;;  %v2228_v45 = vmul.f32 0.5, %v6469_v36  ;;  %v3736_v47 = vadd.f32 %v6463_v59, %v6452_v19  ;;  %v5309_v33 = vpop.eup %5308 }
 0x112   : > { %v3024_v54 = vadd.f32 0.5, %v2704_v63  ;;  %5322 = vtanh.f32 %v2068_v21  ;;  %v3735_v55 = vadd.f32 %v6435_v49, %v6424_v50  ;;  %v2069_v56 = vmul.f32 0.5, %v6486_v60  ;;  %v6545_v57 = vpop.f32.mrb[18].mxu0  ;;  %v6547_v3 = vpop.f32.mrb[18].mxu1 }
 0x113   : > { %v5311_v4 = vpop.eup %5310  ;;  %v6550_v7 = vmul.f32 %v3183_v44, %v6407_v34  ;;  %v2864_v19 = vmul.f32 0.5, %v5309_v33  ;;  %5324 = vtanh.f32 %v2228_v45  ;;  %4620 = vadd.xlane.f32.xlu1 %v3736_v47  ;;  %v2229_v59 = vmul.f32 0.5, %v6488_v2  ;;  %v6553_v11 = vpop.f32.mrb[19].mxu0  ;;  %5124 = vmatmul.mubr.msk.f32.gmra.mrb[124].mxu0 %vm549_vm0, %v451_v43  ;;  %v453_v43 = vld [vmem:[%s6008_s22 + $0x200] sm:$0xff] }
 0x114   : > { %v6556_v50 = vpop.f32.mrb[19].mxu1  ;;  %v6559_v49 = vmul.f32 %v3024_v54, %v6410_v39  ;;  %v2705_v14 = vmul.f32 0.5, %v5311_v4  ;;  %4618 = vadd.xlane.f32.xlu0 %v3735_v55  ;;  %5326 = vtanh.f32 %v2069_v56  ;;  %v2070_v34 = vmul.f32 0.5, %v6494_v9  ;;  %5204 = vmatmul.mubr.msk.f32.gmra.mrb[124].mxu1 %vm549_vm0, %v531_v51  ;;  %v5313_v39 = vpop.eup %5312 }
 0x115   : > { %v3184_v10 = vadd.f32 0.5, %v2864_v19  ;;  %5328 = vtanh.f32 %v2229_v59  ;;  %v2230_v18 = vmul.f32 0.5, %v6497_v13  ;;  %v3656_v23 = vadd.f32 %v6455_v58, %v6445_v12  ;;  %1472 = vmatprep.mubr.f32.mxu0 %v8830_v0  ;;  %1952 = vmatprep.mubr.f32.mxu1 %v8830_v0  ;;  %v5315_v37 = vpop.eup %5314  ;;  %v533_v19 = vld [vmem:[%s6008_s22 + $0x480] sm:$0xff] }
 0x116   : > { %v3025_v24 = vadd.f32 0.5, %v2705_v14  ;;  %5330 = vtanh.f32 %v2070_v34  ;;  %v3657_v25 = vadd.f32 %v6483_v5, %v6473_v38  ;;  %v2071_v26 = vmul.f32 0.5, %v6517_v31  ;;  %v6572_v27 = vpop.f32.mrb[20].mxu0  ;;  %v6574_v30 = vpop.f32.mrb[20].mxu1 }
 0x117   : > { %v6578_v12 = vmul.f32 %v3184_v10, %v6413_v40  ;;  %v2865_v58 = vmul.f32 0.5, %v5313_v39  ;;  %5332 = vtanh.f32 %v2230_v18  ;;  %v2231_v20 = vmul.f32 0.5, %v6519_v32  ;;  %v6581_v63 = vpop.f32.mrb[21].mxu0  ;;  %5125 = vmatmul.mubr.msk.f32.gmra.mrb[126].mxu0 %vm549_vm0, %v452_v17  ;;  %v6584_v38 = vpop.f32.mrb[21].mxu1 }
 0x118   : > { %v6587_v5 = vmul.f32 %v3025_v24, %v6430_v61  ;;  %v2706_v21 = vmul.f32 0.5, %v5315_v37  ;;  %4460 = vadd.xlane.f32.xlu0 %v3656_v23  ;;  %4462 = vadd.xlane.f32.xlu1 %v3657_v25  ;;  %5334 = vtanh.f32 %v2071_v26  ;;  %v2072_v40 = vmul.f32 0.5, %v6525_v41  ;;  %v5317_v44 = vpop.eup %5316  ;;  %v454_v23 = vld [vmem:[%s6008_s22 + $0x208] sm:$0xff] }
 0x119   : > { %v3185_v45 = vadd.f32 0.5, %v2865_v58  ;;  %5336 = vtanh.f32 %v2231_v20  ;;  %v2232_v47 = vmul.f32 0.5, %v6528_v42  ;;  %v3737_v51 = vadd.f32 %v6491_v6, %v6480_v46  ;;  %5205 = vmatmul.mubr.msk.f32.gmra.mrb[126].mxu1 %vm549_vm0, %v532_v16  ;;  %1478 = vmatprep.mubr.f32.mxu0 %v8830_v0  ;;  %v5319_v61 = vpop.eup %5318 }
 0x11a   : > { %v3026_v33 = vadd.f32 0.5, %v2706_v21  ;;  %v2866_v54 = vmul.f32 0.5, %v5317_v44  ;;  %5338 = vtanh.f32 %v2072_v40  ;;  %v3658_v55 = vadd.f32 %v6512_v15, %v6501_v53  ;;  %v6598_v56 = vpop.f32.mrb[22].mxu0  ;;  %v6600_v4 = vpop.f32.mrb[22].mxu1  ;;  %1958 = vmatprep.mubr.f32.mxu1 %v8830_v0  ;;  %v534_v40 = vld [vmem:[%s6008_s22 + $0x488] sm:$0xff] }
 0x11b   : > { %v5321_v46 = vpop.eup %5320  ;;  %v6605_v6 = vmul.f32 %v3185_v45, %v6432_v1  ;;  %v2707_v59 = vmul.f32 0.5, %v5319_v61  ;;  %5340 = vtanh.f32 %v2232_v47  ;;  %v2073_v14 = vmul.f32 0.5, %v6545_v57  ;;  %v6608_v34 = vpop.f32.mrb[23].mxu0  ;;  %5126 = vmatmul.mubr.msk.f32.gmra.mrb[128].mxu0 %vm549_vm0, %v453_v43 }
 0x11c   : > { %v6611_v53 = vpop.f32.mrb[23].mxu1  ;;  %v5323_v15 = vpop.eup %5322  ;;  %v6614_v17 = vmul.f32 %v3026_v33, %v6438_v52  ;;  %v3186_v10 = vadd.f32 0.5, %v2866_v54  ;;  %v2867_v18 = vmul.f32 0.5, %v5321_v46  ;;  %4622 = vadd.xlane.f32.xlu0 %v3737_v51  ;;  %4464 = vadd.xlane.f32.xlu1 %v3658_v55  ;;  %v2233_v1 = vmul.f32 0.5, %v6547_v3 }
 0x11d   : > { %v5325_v39 = vpop.eup %5324  ;;  %v3027_v24 = vadd.f32 0.5, %v2707_v59  ;;  %v2708_v25 = vmul.f32 0.5, %v5323_v15  ;;  %5342 = vtanh.f32 %v2073_v14  ;;  %v2074_v26 = vmul.f32 0.5, %v6553_v11  ;;  %5206 = vmatmul.mubr.msk.f32.gmra.mrb[128].mxu1 %vm549_vm0, %v533_v19  ;;  %1484 = vmatprep.mubr.f32.mxu0 %v8830_v0 }
 0x11e   : > { %v5327_v52 = vpop.eup %5326  ;;  %v6622_v16 = vmul.f32 %v3186_v10, %v6441_v8  ;;  %v3187_v37 = vadd.f32 0.5, %v2867_v18  ;;  %v2868_v58 = vmul.f32 0.5, %v5325_v39  ;;  %5344 = vtanh.f32 %v2233_v1  ;;  %v6624_v20 = vpop.f32.mrb[24].mxu0  ;;  %1964 = vmatprep.mubr.f32.mxu1 %v8830_v0 }
 0x11f   : > { %v6626_v21 = vpop.f32.mrb[24].mxu1  ;;  %v5329_v43 = vpop.eup %5328  ;;  %v6631_v44 = vmul.f32 %v3027_v24, %v6458_v28  ;;  %v3028_v45 = vadd.f32 0.5, %v2708_v25  ;;  %v2709_v47 = vmul.f32 0.5, %v5327_v52  ;;  %5346 = vtanh.f32 %v2074_v26  ;;  %5127 = vmatmul.mubr.msk.f32.gmra.mrb[130].mxu0 %vm549_vm0, %v454_v23  ;;  %v455_v28 = vld [vmem:[%s6008_s22 + $0x210] sm:$0xff] }
 0x120   : > { %v6633_v8 = vpop.f32.mrb[25].mxu0  ;;  %v6636_v51 = vpop.f32.mrb[25].mxu1  ;;  %v6639_v33 = vmul.f32 %v3187_v37, %v6460_v29  ;;  %v3188_v54 = vadd.f32 0.5, %v2868_v58  ;;  %v2869_v55 = vmul.f32 0.5, %v5329_v43  ;;  %v2234_v19 = vmul.f32 0.5, %v6556_v50  ;;  %1490 = vmatprep.mubr.f32.mxu0 %v8830_v0 }
 0x121   : > { %v5331_v61 = vpop.eup %5330  ;;  %v6645_v59 = vmul.f32 %v3028_v45, %v6466_v62  ;;  %v3029_v14 = vadd.f32 0.5, %v2709_v47  ;;  %v3738_v10 = vadd.f32 %v6522_v35, %v6508_v22  ;;  %5207 = vmatmul.mubr.msk.f32.gmra.mrb[130].mxu1 %vm549_vm0, %v534_v40  ;;  %v535_v62 = vld [vmem:[%s6008_s22 + $0x490] sm:$0xff]  ;;  %v456_v47 = vld [vmem:[%s6008_s22 + $0x218] sm:$0xff] }
 0x122   : > { %v5333_v46 = vpop.eup %5332  ;;  %v2710_v15 = vmul.f32 0.5, %v5331_v61  ;;  %v6651_v18 = vmul.f32 %v3188_v54, %v6469_v36  ;;  %v3189_v1 = vadd.f32 0.5, %v2869_v55  ;;  %5348 = vtanh.f32 %v2234_v19  ;;  %v6653_v39 = vpop.f32.mrb[26].mxu0  ;;  %1970 = vmatprep.mubr.f32.mxu1 %v8830_v0 }
 0x123   : > { %v5335_v29 = vpop.eup %5334  ;;  %v2870_v23 = vmul.f32 0.5, %v5333_v46  ;;  %v6655_v24 = vpop.f32.mrb[26].mxu1  ;;  %v6660_v22 = vmul.f32 %v3029_v14, %v6486_v60  ;;  %4624 = vadd.xlane.f32.xlu1 %v3738_v10  ;;  %v3659_v36 = vadd.f32 %v6559_v49, %v6532_v48  ;;  %5128 = vmatmul.mubr.msk.f32.gmra.mrb[132].mxu0 %vm549_vm0, %v455_v28  ;;  %v2075_v60 = vmul.f32 0.5, %v6572_v27 }
 0x124   : > { %v5337_v25 = vpop.eup %5336  ;;  %v3030_v35 = vadd.f32 0.5, %v2710_v15  ;;  %v2711_v26 = vmul.f32 0.5, %v5335_v29  ;;  %v6664_v52 = vpop.f32.mrb[27].mxu0  ;;  %v6670_v40 = vmul.f32 %v3189_v1, %v6488_v2  ;;  %1496 = vmatprep.mubr.f32.mxu0 %v8830_v0  ;;  %v2235_v55 = vmul.f32 0.5, %v6574_v30 }
 0x125   : > { %v6667_v37 = vpop.f32.mrb[27].mxu1  ;;  %v5339_v58 = vpop.eup %5338  ;;  %v3190_v43 = vadd.f32 0.5, %v2870_v23  ;;  %v2871_v45 = vmul.f32 0.5, %v5337_v25  ;;  %4466 = vadd.xlane.f32.xlu0 %v3659_v36  ;;  %5208 = vmatmul.mubr.msk.f32.gmra.mrb[132].mxu1 %vm549_vm0, %v535_v62  ;;  %5350 = vtanh.f32 %v2075_v60  ;;  %v2236_v36 = vmul.f32 0.5, %v6584_v38 }
 0x126   : > { %v5341_v61 = vpop.eup %5340  ;;  %v6676_v48 = vmul.f32 %v3030_v35, %v6494_v9  ;;  %v3031_v49 = vadd.f32 0.5, %v2711_v26  ;;  %v2712_v54 = vmul.f32 0.5, %v5339_v58  ;;  %v6683_v46 = vpop.f32.mrb[28].mxu0  ;;  %1976 = vmatprep.mubr.f32.mxu1 %v8830_v0  ;;  %v536_v9 = vld [vmem:[%s6008_s22 + $0x498] sm:$0xff]  ;;  %5352 = vtanh.f32 %v2235_v55 }
 0x127   : > { %v6681_v2 = vmul.f32 %v3190_v43, %v6497_v13  ;;  %v3191_v19 = vadd.f32 0.5, %v2871_v45  ;;  %v2872_v28 = vmul.f32 0.5, %v5341_v61  ;;  %v6685_v14 = vpop.f32.mrb[28].mxu1  ;;  %v5343_v15 = vpop.eup %5342  ;;  %v2076_v13 = vmul.f32 0.5, %v6581_v63  ;;  %5129 = vmatmul.mubr.msk.f32.gmra.mrb[134].mxu0 %vm549_vm0, %v456_v47 }
 0x128   : > { %v6690_v10 = vmul.f32 %v3031_v49, %v6517_v31  ;;  %v3032_v29 = vadd.f32 0.5, %v2712_v54  ;;  %v6693_v1 = vpop.f32.mrb[29].mxu0  ;;  %v6696_v23 = vpop.f32.mrb[29].mxu1  ;;  %v2713_v26 = vmul.f32 0.5, %v5343_v15  ;;  %1502 = vmatprep.mubr.f32.mxu0 %v8830_v0  ;;  %v457_v31 = vld [vmem:[%s6008_s22 + $0x220] sm:$0xff]  ;;  %v3739_v60 = vadd.f32 %v6578_v12, %v6550_v7 }
 0x129   : > { %v5345_v62 = vpop.eup %5344  ;;  %v6699_v25 = vmul.f32 %v3191_v19, %v6519_v32  ;;  %v3192_v35 = vadd.f32 0.5, %v2872_v28  ;;  %5354 = vtanh.f32 %v2076_v13  ;;  %5209 = vmatmul.mubr.msk.f32.gmra.mrb[134].mxu1 %vm549_vm0, %v536_v9  ;;  %v3660_v7 = vadd.f32 %v6614_v17, %v6587_v5  ;;  %v458_v5 = vld [vmem:[%s6008_s22 + $0x228] sm:$0xff] }
 0x12a   : > { %v5347_v58 = vpop.eup %5346  ;;  %v6705_v43 = vmul.f32 %v3032_v29, %v6525_v41  ;;  %v2873_v45 = vmul.f32 0.5, %v5345_v62  ;;  %v3033_v47 = vadd.f32 0.5, %v2713_v26  ;;  %5356 = vtanh.f32 %v2236_v36  ;;  %v6713_v49 = vpop.f32.mrb[30].mxu0  ;;  %1982 = vmatprep.mubr.f32.mxu1 %v8830_v0  ;;  %v537_v41 = vld [vmem:[%s6008_s22 + $0x4a0] sm:$0xff]  ;;  %4626 = vadd.xlane.f32.xlu0 %v3739_v60 }
 0x12b   : > { %v6711_v32 = vmul.f32 %v3192_v35, %v6528_v42  ;;  %v2714_v61 = vmul.f32 0.5, %v5347_v58  ;;  %v6715_v54 = vpop.f32.mrb[30].mxu1  ;;  %v2077_v12 = vmul.f32 0.5, %v6598_v56  ;;  %v2237_v42 = vmul.f32 0.5, %v6600_v4  ;;  %v6723_v19 = vpop.f32.mrb[31].mxu0  ;;  %5130 = vmatmul.mubr.msk.f32.gmra.mrb[136].mxu0 %vm549_vm0, %v457_v31  ;;  %4468 = vadd.xlane.f32.xlu1 %v3660_v7 }
 0x12c   : > { %v3193_v55 = vadd.f32 0.5, %v2873_v45  ;;  %v6726_v28 = vpop.f32.mrb[31].mxu1  ;;  %v5349_v9 = vpop.eup %5348  ;;  %v6729_v15 = vmul.f32 %v3033_v47, %v6545_v57  ;;  %v2078_v13 = vmul.f32 0.5, %v6608_v34  ;;  %v2238_v62 = vmul.f32 0.5, %v6611_v53  ;;  %1508 = vmatprep.mubr.f32.mxu0 %v8830_v0  ;;  %v538_v45 = vld [vmem:[%s6008_s22 + $0x4a8] sm:$0xff] }
 0x12d   : > { %v3034_v29 = vadd.f32 0.5, %v2714_v61  ;;  %v2874_v35 = vmul.f32 0.5, %v5349_v9  ;;  %5358 = vtanh.f32 %v2077_v12  ;;  %v3740_v26 = vadd.f32 %v6622_v16, %v6605_v6  ;;  %5210 = vmatmul.mubr.msk.f32.gmra.mrb[136].mxu1 %vm549_vm0, %v537_v41 }
 0x12e   : > { %v6736_v17 = vmul.f32 %v3193_v55, %v6547_v3  ;;  %5360 = vtanh.f32 %v2237_v42  ;;  %v3661_v36 = vadd.f32 %v6645_v59, %v6631_v44  ;;  %v2079_v31 = vmul.f32 0.5, %v6624_v20  ;;  %v6747_v58 = vpop.f32.mrb[32].mxu0  ;;  %v6749_v3 = vpop.f32.mrb[32].mxu1  ;;  %1988 = vmatprep.mubr.f32.mxu1 %v8830_v0  ;;  %v459_v55 = vld [vmem:[%s6008_s22 + $0x230] sm:$0xff] }
 0x12f   : > { %v6742_v57 = vmul.f32 %v3034_v29, %v6553_v11  ;;  %v3194_v6 = vadd.f32 0.5, %v2874_v35  ;;  %5362 = vtanh.f32 %v2078_v13  ;;  %v2239_v16 = vmul.f32 0.5, %v6626_v21  ;;  %v6755_v60 = vpop.f32.mrb[33].mxu0  ;;  %5131 = vmatmul.mubr.msk.f32.gmra.mrb[138].mxu0 %vm549_vm0, %v458_v5  ;;  %v6758_v44 = vpop.f32.mrb[33].mxu1  ;;  %4628 = vadd.xlane.f32.xlu1 %v3740_v26 }
 0x130   : > { %v2080_v11 = vmul.f32 0.5, %v6633_v8  ;;  %v5351_v59 = vpop.eup %5350  ;;  %5364 = vtanh.f32 %v2238_v62  ;;  %4470 = vadd.xlane.f32.xlu0 %v3661_v36  ;;  %v2240_v47 = vmul.f32 0.5, %v6636_v51  ;;  %v3741_v61 = vadd.f32 %v6651_v18, %v6639_v33  ;;  %1514 = vmatprep.mubr.f32.mxu0 %v8830_v0 }
 0x131   : > { %v3662_v41 = vadd.f32 %v6676_v48, %v6660_v22  ;;  %v5353_v7 = vpop.eup %5352  ;;  %v6768_v12 = vmul.f32 %v3194_v6, %v6556_v50  ;;  %v2715_v42 = vmul.f32 0.5, %v5351_v59  ;;  %5366 = vtanh.f32 %v2079_v31  ;;  %5211 = vmatmul.mubr.msk.f32.gmra.mrb[138].mxu1 %vm549_vm0, %v538_v45  ;;  %v539_v50 = vld [vmem:[%s6008_s22 + $0x4b0] sm:$0xff] }
 0x132   : > { %v2081_v9 = vmul.f32 0.5, %v6653_v39  ;;  %v2875_v29 = vmul.f32 0.5, %v5353_v7  ;;  %5368 = vtanh.f32 %v2239_v16  ;;  %v2241_v33 = vmul.f32 0.5, %v6655_v24  ;;  %v6774_v22 = vpop.f32.mrb[34].mxu0  ;;  %v6776_v48 = vpop.f32.mrb[34].mxu1  ;;  %1994 = vmatprep.mubr.f32.mxu1 %v8830_v0 }
 0x133   : > { %v2082_v18 = vmul.f32 0.5, %v6664_v52  ;;  %v5355_v13 = vpop.eup %5354  ;;  %v3035_v62 = vadd.f32 0.5, %v2715_v42  ;;  %5370 = vtanh.f32 %v2080_v11  ;;  %v2242_v5 = vmul.f32 0.5, %v6667_v37  ;;  %v6783_v26 = vpop.f32.mrb[35].mxu0  ;;  %5132 = vmatmul.mubr.msk.f32.gmra.mrb[140].mxu0 %vm549_vm0, %v459_v55  ;;  %v460_v11 = vld [vmem:[%s6008_s22 + $0x238] sm:$0xff]  ;;  %4472 = vadd.xlane.f32.xlu1 %v3662_v41 }
 0x134   : > { %v3742_v35 = vadd.f32 %v6681_v2, %v6670_v40  ;;  %v6786_v36 = vpop.f32.mrb[35].mxu1  ;;  %v5357_v31 = vpop.eup %5356  ;;  %v3195_v45 = vadd.f32 0.5, %v2875_v29  ;;  %v2716_v6 = vmul.f32 0.5, %v5355_v13  ;;  %5372 = vtanh.f32 %v2240_v47  ;;  %4630 = vadd.xlane.f32.xlu0 %v3741_v61  ;;  %1520 = vmatprep.mubr.f32.mxu0 %v8830_v0 }
 0x135   : > { %v3663_v16 = vadd.f32 %v6705_v43, %v6690_v10  ;;  %v6793_v40 = vmul.f32 %v3035_v62, %v6572_v27  ;;  %v2876_v2 = vmul.f32 0.5, %v5357_v31  ;;  %5374 = vtanh.f32 %v2081_v9  ;;  %5212 = vmatmul.mubr.msk.f32.gmra.mrb[140].mxu1 %vm549_vm0, %v539_v50  ;;  %v540_v27 = vld [vmem:[%s6008_s22 + $0x4b8] sm:$0xff]  ;;  %v461_v62 = vld [vmem:[%s6008_s22 + $0x240] sm:$0xff] }
 0x136   : > { %v2083_v59 = vmul.f32 0.5, %v6683_v46  ;;  %v6798_v47 = vmul.f32 %v3195_v45, %v6574_v30  ;;  %v3036_v61 = vadd.f32 0.5, %v2716_v6  ;;  %5376 = vtanh.f32 %v2241_v33  ;;  %v6801_v43 = vpop.f32.mrb[36].mxu0  ;;  %v6803_v55 = vpop.f32.mrb[36].mxu1  ;;  %2000 = vmatprep.mubr.f32.mxu1 %v8830_v0 }
 0x137   : > { %v2243_v10 = vmul.f32 0.5, %v6685_v14  ;;  %v5359_v41 = vpop.eup %5358  ;;  %v3196_v7 = vadd.f32 0.5, %v2876_v2  ;;  %5378 = vtanh.f32 %v2082_v18  ;;  %v2084_v42 = vmul.f32 0.5, %v6693_v1  ;;  %v6809_v9 = vpop.f32.mrb[37].mxu0  ;;  %5133 = vmatmul.mubr.msk.f32.gmra.mrb[142].mxu0 %vm549_vm0, %v460_v11  ;;  %4632 = vadd.xlane.f32.xlu1 %v3742_v35 }
 0x138   : > { %v2244_v30 = vmul.f32 0.5, %v6696_v23  ;;  %v6812_v29 = vpop.f32.mrb[37].mxu1  ;;  %v5361_v33 = vpop.eup %5360  ;;  %v6815_v50 = vmul.f32 %v3036_v61, %v6581_v63  ;;  %v2717_v13 = vmul.f32 0.5, %v5359_v41  ;;  %5380 = vtanh.f32 %v2242_v5  ;;  %4474 = vadd.xlane.f32.xlu0 %v3663_v16  ;;  %1526 = vmatprep.mubr.f32.mxu0 %v8830_v0 }
 0x139   : > { %v3743_v18 = vadd.f32 %v6711_v32, %v6699_v25  ;;  %v5363_v31 = vpop.eup %5362  ;;  %v6822_v45 = vmul.f32 %v3196_v7, %v6584_v38  ;;  %v2877_v6 = vmul.f32 0.5, %v5361_v33  ;;  %5382 = vtanh.f32 %v2083_v59  ;;  %5213 = vmatmul.mubr.msk.f32.gmra.mrb[142].mxu1 %vm549_vm0, %v540_v27  ;;  %v541_v38 = vld [vmem:[%s6008_s22 + $0x4c0] sm:$0xff] }
 0x13a   : > { %v3664_v63 = vadd.f32 %v6742_v57, %v6729_v15  ;;  %v5365_v5 = vpop.eup %5364  ;;  %v3037_v16 = vadd.f32 0.5, %v2717_v13  ;;  %v2718_v11 = vmul.f32 0.5, %v5363_v31  ;;  %5384 = vtanh.f32 %v2243_v10  ;;  %v6828_v32 = vpop.f32.mrb[38].mxu0  ;;  %2006 = vmatprep.mubr.f32.mxu1 %v8830_v0  ;;  %v462_v13 = vld [vmem:[%s6008_s22 + $0x248] sm:$0xff] }
 0x13b   : > { %v2085_v25 = vmul.f32 0.5, %v6713_v49  ;;  %v6830_v2 = vpop.f32.mrb[38].mxu1  ;;  %v5367_v35 = vpop.eup %5366  ;;  %v3197_v59 = vadd.f32 0.5, %v2877_v6  ;;  %v2878_v61 = vmul.f32 0.5, %v5365_v5  ;;  %5386 = vtanh.f32 %v2084_v42  ;;  %5134 = vmatmul.mubr.msk.f32.gmra.mrb[144].mxu0 %vm549_vm0, %v461_v62 }
 0x13c   : > { %v2245_v15 = vmul.f32 0.5, %v6715_v54  ;;  %v6835_v57 = vpop.f32.mrb[39].mxu0  ;;  %v6838_v10 = vpop.f32.mrb[39].mxu1  ;;  %v6841_v41 = vmul.f32 %v3037_v16, %v6598_v56  ;;  %v3038_v7 = vadd.f32 0.5, %v2718_v11  ;;  %v2719_v33 = vmul.f32 0.5, %v5367_v35  ;;  %4634 = vadd.xlane.f32.xlu0 %v3743_v18  ;;  %1532 = vmatprep.mubr.f32.mxu0 %v8830_v0 }
 0x13d   : > { %v5369_v27 = vpop.eup %5368  ;;  %5388 = vtanh.f32 %v2244_v30  ;;  %v6846_v31 = vmul.f32 %v3197_v59, %v6600_v4  ;;  %v3198_v6 = vadd.f32 0.5, %v2878_v61  ;;  %4476 = vadd.xlane.f32.xlu1 %v3664_v63  ;;  %5214 = vmatmul.mubr.msk.f32.gmra.mrb[144].mxu1 %vm549_vm0, %v541_v38  ;;  %v542_v4 = vld [vmem:[%s6008_s22 + $0x4c8] sm:$0xff] }
 0x13e   : > { %v5371_v42 = vpop.eup %5370  ;;  %v2879_v62 = vmul.f32 0.5, %v5369_v27  ;;  %5390 = vtanh.f32 %v2085_v25  ;;  %v6850_v5 = vmul.f32 %v3038_v7, %v6608_v34  ;;  %v3039_v30 = vadd.f32 0.5, %v2719_v33  ;;  %v6852_v16 = vpop.f32.mrb[40].mxu0  ;;  %2012 = vmatprep.mubr.f32.mxu1 %v8830_v0 }
 0x13f   : > { %v5373_v56 = vpop.eup %5372  ;;  %v2720_v18 = vmul.f32 0.5, %v5371_v42  ;;  %5392 = vtanh.f32 %v2245_v15  ;;  %v6854_v11 = vpop.f32.mrb[40].mxu1  ;;  %v6859_v63 = vmul.f32 %v3198_v6, %v6611_v53  ;;  %v2086_v34 = vmul.f32 0.5, %v6723_v19  ;;  %5135 = vmatmul.mubr.msk.f32.gmra.mrb[146].mxu0 %vm549_vm0, %v462_v13  ;;  %v463_v53 = vld [vmem:[%s6008_s22 + $0x250] sm:$0xff] }
 0x140   : > { %v5375_v35 = vpop.eup %5374  ;;  %v3199_v25 = vadd.f32 0.5, %v2879_v62  ;;  %v2880_v38 = vmul.f32 0.5, %v5373_v56  ;;  %v6862_v59 = vpop.f32.mrb[41].mxu0  ;;  %v6868_v27 = vmul.f32 %v3039_v30, %v6624_v20  ;;  %v2246_v42 = vmul.f32 0.5, %v6726_v28  ;;  %1538 = vmatprep.mubr.f32.mxu0 %v8830_v0 }
 0x141   : > { %8994 = vst [vmem:[#allocation3_spill] sm:$0xff] %v6862_v59  ;;  %v6865_v61 = vpop.f32.mrb[41].mxu1  ;;  %v5377_v15 = vpop.eup %5376  ;;  %v3040_v7 = vadd.f32 0.5, %v2720_v18  ;;  %v2721_v33 = vmul.f32 0.5, %v5375_v35  ;;  %5394 = vtanh.f32 %v2086_v34  ;;  %5215 = vmatmul.mubr.msk.f32.gmra.mrb[146].mxu1 %vm549_vm0, %v542_v4  ;;  %v8997_v59 = vmov 0.0  }
 0x142   : > { %8995 = vst [vmem:[#allocation4_spill] sm:$0xff] %v6865_v61  ;;  %v5379_v6 = vpop.eup %5378  ;;  %v6874_v62 = vmul.f32 %v3199_v25, %v6626_v21  ;;  %v3200_v56 = vadd.f32 0.5, %v2880_v38  ;;  %v2881_v13 = vmul.f32 0.5, %v5377_v15  ;;  %5396 = vtanh.f32 %v2246_v42  ;;  %v6880_v35 = vpop.f32.mrb[42].mxu0  ;;  %2018 = vmatprep.mubr.f32.mxu1 %v8997_v59  ;;  %v543_v21 = vld [vmem:[%s6008_s22 + $0x4d0] sm:$0xff] }
 0x143   : > { %v5381_v61 = vpop.eup %5380  ;;  %v6878_v20 = vmul.f32 %v3040_v7, %v6633_v8  ;;  %v3041_v30 = vadd.f32 0.5, %v2721_v33  ;;  %v2722_v18 = vmul.f32 0.5, %v5379_v6  ;;  %v6882_v0 = vpop.f32.mrb[42].mxu1  ;;  %v3744_v8 = vadd.f32 %v6768_v12, %v6736_v17  ;;  %5136 = vmatmul.mubr.msk.f32.gmra.mrb[148].mxu0 %vm549_vm0, %v463_v53 }
 0x144   : > { %8996 = vst [vmem:[#allocation5_spill] sm:$0xff] %v6882_v0  ;;  %v5383_v25 = vpop.eup %5382  ;;  %v6887_v38 = vmul.f32 %v3200_v56, %v6636_v51  ;;  %v3201_v4 = vadd.f32 0.5, %v2881_v13  ;;  %v2882_v34 = vmul.f32 0.5, %v5381_v61  ;;  %v6891_v15 = vpop.f32.mrb[43].mxu0  ;;  %v3665_v51 = vadd.f32 %v6815_v50, %v6793_v40  ;;  %1544 = vmatprep.mubr.f32.mxu0 %v8997_v59  ;;  %v464_v61 = vld [vmem:[%s6008_s22 + $0x258] sm:$0xff] }
 0x145   : > { %v6894_v7 = vpop.f32.mrb[43].mxu1  ;;  %v5385_v33 = vpop.eup %5384  ;;  %v6897_v42 = vmul.f32 %v3041_v30, %v6653_v39  ;;  %v3042_v6 = vadd.f32 0.5, %v2722_v18  ;;  %v2723_v0 = vmul.f32 0.5, %v5383_v25  ;;  %4636 = vadd.xlane.f32.xlu1 %v3744_v8  ;;  %v2087_v13 = vmul.f32 0.5, %v6747_v58  ;;  %5216 = vmatmul.mubr.msk.f32.gmra.mrb[148].mxu1 %vm549_vm0, %v543_v21 }
 0x146   : > { %v5387_v56 = vpop.eup %5386  ;;  %v6904_v17 = vmul.f32 %v3201_v4, %v6655_v24  ;;  %v3202_v12 = vadd.f32 0.5, %v2882_v34  ;;  %v2883_v53 = vmul.f32 0.5, %v5385_v33  ;;  %4478 = vadd.xlane.f32.xlu0 %v3665_v51  ;;  %v2247_v18 = vmul.f32 0.5, %v6749_v3  ;;  %v6912_v25 = vpop.f32.mrb[44].mxu0  ;;  %2024 = vmatprep.mubr.f32.mxu1 %v8997_v59  ;;  %v544_v4 = vld [vmem:[%s6008_s22 + $0x4d8] sm:$0xff] }
 0x147   : > { %v5389_v39 = vpop.eup %5388  ;;  %v6909_v30 = vmul.f32 %v3042_v6, %v6664_v52  ;;  %v3043_v40 = vadd.f32 0.5, %v2723_v0  ;;  %v2724_v50 = vmul.f32 0.5, %v5387_v56  ;;  %v6914_v24 = vpop.f32.mrb[44].mxu1  ;;  %5398 = vtanh.f32 %v2087_v13  ;;  %5137 = vmatmul.mubr.msk.f32.gmra.mrb[150].mxu0 %vm549_vm0, %v464_v61 }
 0x148   : > { %8998 = vst [vmem:[#allocation6_spill] sm:$0xff] %v6914_v24  ;;  %v5391_v34 = vpop.eup %5390  ;;  %v6919_v21 = vmul.f32 %v3202_v12, %v6667_v37  ;;  %v3203_v8 = vadd.f32 0.5, %v2883_v53  ;;  %v2884_v52 = vmul.f32 0.5, %v5389_v39  ;;  %v6921_v0 = vpop.f32.mrb[45].mxu0  ;;  %5400 = vtanh.f32 %v2247_v18  ;;  %1550 = vmatprep.mubr.f32.mxu0 %v8997_v59  ;;  %v465_v37 = vld [vmem:[%s6008_s22 + $0x260] sm:$0xff] }
 0x149   : > { %v6924_v33 = vpop.f32.mrb[45].mxu1  ;;  %v5393_v6 = vpop.eup %5392  ;;  %v6927_v51 = vmul.f32 %v3043_v40, %v6683_v46  ;;  %v3044_v56 = vadd.f32 0.5, %v2724_v50  ;;  %v2725_v24 = vmul.f32 0.5, %v5391_v34  ;;  %v2088_v61 = vmul.f32 0.5, %v6755_v60  ;;  %5217 = vmatmul.mubr.msk.f32.gmra.mrb[150].mxu1 %vm549_vm0, %v544_v4 }
 0x14a   : > { %v6932_v12 = vmul.f32 %v3203_v8, %v6685_v14  ;;  %v3204_v53 = vadd.f32 0.5, %v2884_v52  ;;  %v2885_v13 = vmul.f32 0.5, %v5393_v6  ;;  %v2248_v40 = vmul.f32 0.5, %v6758_v44  ;;  %v6942_v18 = vpop.f32.mrb[46].mxu0  ;;  %v6944_v34 = vpop.f32.mrb[46].mxu1  ;;  %2030 = vmatprep.mubr.f32.mxu1 %v8997_v59  ;;  %v545_v14 = vld [vmem:[%s6008_s22 + $0x4e0] sm:$0xff] }
 0x14b   : > { %v6937_v39 = vmul.f32 %v3044_v56, %v6693_v1  ;;  %v3045_v46 = vadd.f32 0.5, %v2725_v24  ;;  %v3745_v50 = vadd.f32 %v6822_v45, %v6798_v47  ;;  %v5395_v8 = vpop.eup %5394  ;;  %5402 = vtanh.f32 %v2088_v61  ;;  %v6953_v52 = vpop.f32.mrb[47].mxu0  ;;  %5138 = vmatmul.mubr.msk.f32.gmra.mrb[152].mxu0 %vm549_vm0, %v465_v37 }
 0x14c   : > { %v6949_v4 = vmul.f32 %v3204_v53, %v6696_v23  ;;  %v3205_v1 = vadd.f32 0.5, %v2885_v13  ;;  %v3666_v24 = vadd.f32 %v6850_v5, %v6841_v41  ;;  %v6956_v47 = vpop.f32.mrb[47].mxu1  ;;  %v5397_v45 = vpop.eup %5396  ;;  %v2726_v56 = vmul.f32 0.5, %v5395_v8  ;;  %1556 = vmatprep.mubr.f32.mxu0 %v8997_v59  ;;  %v466_v53 = vld [vmem:[%s6008_s22 + $0x268] sm:$0xff] }
 0x14d   : > { %v6959_v6 = vmul.f32 %v3045_v46, %v6713_v49  ;;  %5404 = vtanh.f32 %v2248_v40  ;;  %4638 = vadd.xlane.f32.xlu0 %v3745_v50  ;;  %v2089_v23 = vmul.f32 0.5, %v6774_v22  ;;  %v2886_v5 = vmul.f32 0.5, %v5397_v45  ;;  %5218 = vmatmul.mubr.msk.f32.gmra.mrb[152].mxu1 %vm549_vm0, %v545_v14 }
 0x14e   : > { %v6965_v41 = vmul.f32 %v3205_v1, %v6715_v54  ;;  %4480 = vadd.xlane.f32.xlu1 %v3666_v24  ;;  %v2249_v37 = vmul.f32 0.5, %v6776_v48  ;;  %v2090_v13 = vmul.f32 0.5, %v6783_v26  ;;  %v3046_v49 = vadd.f32 0.5, %v2726_v56  ;;  %v6973_v40 = vpop.f32.mrb[48].mxu0  ;;  %v6975_v54 = vpop.f32.mrb[48].mxu1  ;;  %2036 = vmatprep.mubr.f32.mxu1 %v8997_v59 }
 0x14f   : > { %5406 = vtanh.f32 %v2089_v23  ;;  %v2250_v61 = vmul.f32 0.5, %v6786_v36  ;;  %v3746_v46 = vadd.f32 %v6859_v63, %v6846_v31  ;;  %v3206_v50 = vadd.f32 0.5, %v2886_v5  ;;  %v6981_v1 = vpop.f32.mrb[49].mxu0  ;;  %5139 = vmatmul.mubr.msk.f32.gmra.mrb[154].mxu0 %vm549_vm0, %v466_v53  ;;  %v6984_v24 = vpop.f32.mrb[49].mxu1  ;;  %v546_v31 = vld [vmem:[%s6008_s22 + $0x4e8] sm:$0xff] }
 0x150   : > { %5408 = vtanh.f32 %v2249_v37  ;;  %v3667_v8 = vadd.f32 %v6878_v20, %v6868_v27  ;;  %v2091_v14 = vmul.f32 0.5, %v6801_v43  ;;  %v6988_v63 = vmul.f32 %v3046_v49, %v6723_v19  ;;  %1562 = vmatprep.mubr.f32.mxu0 %v8997_v59  ;;  %v467_v27 = vld [vmem:[%s6008_s22 + $0x270] sm:$0xff] }
 0x151   : > { %5410 = vtanh.f32 %v2090_v13  ;;  %v2251_v45 = vmul.f32 0.5, %v6803_v55  ;;  %v2092_v56 = vmul.f32 0.5, %v6809_v9  ;;  %v5399_v20 = vpop.eup %5398  ;;  %v6995_v23 = vmul.f32 %v3206_v50, %v6726_v28  ;;  %5219 = vmatmul.mubr.msk.f32.gmra.mrb[154].mxu1 %vm549_vm0, %v546_v31 }
 0x152   : > { %5412 = vtanh.f32 %v2250_v61  ;;  %4640 = vadd.xlane.f32.xlu1 %v3746_v46  ;;  %4482 = vadd.xlane.f32.xlu0 %v3667_v8  ;;  %v2252_v53 = vmul.f32 0.5, %v6812_v29  ;;  %v3747_v19 = vadd.f32 %v6887_v38, %v6874_v62  ;;  %v5401_v5 = vpop.eup %5400  ;;  %v2727_v37 = vmul.f32 0.5, %v5399_v20  ;;  %v7004_v28 = vpop.f32.mrb[50].mxu0 }
 0x153   : > { %5414 = vtanh.f32 %v2091_v14  ;;  %v3668_v13 = vadd.f32 %v6909_v30, %v6897_v42  ;;  %v2093_v49 = vmul.f32 0.5, %v6828_v32  ;;  %v7006_v61 = vpop.f32.mrb[50].mxu1  ;;  %v2887_v46 = vmul.f32 0.5, %v5401_v5  ;;  %2042 = vmatprep.mubr.f32.mxu1 %v8997_v59  ;;  %v7011_v50 = vpop.f32.mrb[51].mxu0  ;;  %5140 = vmatmul.mubr.msk.f32.gmra.mrb[156].mxu0 %vm549_vm0, %v467_v27  ;;  %v547_v30 = vld [vmem:[%s6008_s22 + $0x4f0] sm:$0xff] }
 0x154   : > { %5416 = vtanh.f32 %v2251_v45  ;;  %v2253_v62 = vmul.f32 0.5, %v6830_v2  ;;  %v2094_v38 = vmul.f32 0.5, %v6835_v57  ;;  %8999 = vst [vmem:[#allocation7_spill] sm:$0xff] %v7011_v50  ;;  %v7014_v42 = vpop.f32.mrb[51].mxu1  ;;  %v3047_v8 = vadd.f32 0.5, %v2727_v37  ;;  %1568 = vmatprep.mubr.f32.mxu0 %v8997_v59  ;;  %v468_v45 = vld [vmem:[%s6008_s22 + $0x278] sm:$0xff] }
 0x155   : > { %9000 = vst [vmem:[#allocation8_spill] sm:$0xff] %v7014_v42  ;;  %5418 = vtanh.f32 %v2092_v56  ;;  %v2254_v14 = vmul.f32 0.5, %v6838_v10  ;;  %v3748_v31 = vadd.f32 %v6919_v21, %v6904_v17  ;;  %v5403_v20 = vpop.eup %5402  ;;  %v3207_v5 = vadd.f32 0.5, %v2887_v46  ;;  %5220 = vmatmul.mubr.msk.f32.gmra.mrb[156].mxu1 %vm549_vm0, %v547_v30  ;;  %v548_v46 = vld [vmem:[%s6008_s22 + $0x4f8] sm:$0xff] }
 0x156   : > { %5420 = vtanh.f32 %v2252_v53  ;;  %4642 = vadd.xlane.f32.xlu0 %v3747_v19  ;;  %4484 = vadd.xlane.f32.xlu1 %v3668_v13  ;;  %v3669_v27 = vadd.f32 %v6937_v39, %v6927_v51  ;;  %v2095_v42 = vmul.f32 0.5, %v6852_v16  ;;  %v7026_v56 = vmul.f32 %v3047_v8, %v6747_v58  ;;  %v7030_v21 = vpop.f32.mrb[52].mxu0  ;;  %v7032_v53 = vpop.f32.mrb[52].mxu1  ;;  %v9002_v39 = vld [vmem:[#allocation3_spill] sm:$0xff] }
 0x157   : > { %v5405_v37 = vpop.eup %5404  ;;  %v2728_v50 = vmul.f32 0.5, %v5403_v20  ;;  %5422 = vtanh.f32 %v2093_v49  ;;  %v2255_v17 = vmul.f32 0.5, %v6854_v11  ;;  %9001 = vst [vmem:[#allocation9_spill] sm:$0xff] %v7032_v53  ;;  %v7035_v19 = vmul.f32 %v3207_v5, %v6749_v3  ;;  %2048 = vmatprep.mubr.f32.mxu1 %v8997_v59  ;;  %v7039_v58 = vpop.f32.mrb[53].mxu0  ;;  %5141 = vmatmul.mubr.msk.f32.gmra.mrb[158].mxu0 %vm549_vm0, %v468_v45  ;;  %v9004_v20 = vld [vmem:[#allocation4_spill] sm:$0xff] }
 0x158   : > { %v2888_v51 = vmul.f32 0.5, %v5405_v37  ;;  %5424 = vtanh.f32 %v2253_v62  ;;  %v2096_v13 = vmul.f32 0.5, %v9002_v39  ;;  %v7042_v49 = vpop.f32.mrb[53].mxu1  ;;  %v2256_v53 = vmul.f32 0.5, %v9004_v20 }
 0x159   : > { %9003 = vst [vmem:[#allocation3_spill] sm:$0xff] %v7042_v49  ;;  %v5407_v30 = vpop.eup %5406  ;;  %v3048_v8 = vadd.f32 0.5, %v2728_v50  ;;  %5426 = vtanh.f32 %v2094_v38  ;;  %v3749_v3 = vadd.f32 %v6949_v4, %v6932_v12  ;;  %v3670_v59 = vadd.f32 %v6988_v63, %v6959_v6  ;;  %5221 = vmatmul.mubr.msk.f32.gmra.mrb[158].mxu1 %vm549_vm0, %v548_v46  ;;  %v9007_v46 = vld [vmem:[#allocation5_spill] sm:$0xff] }
 0x15a   : > { %v5409_v62 = vpop.eup %5408  ;;  %v3208_v5 = vadd.f32 0.5, %v2888_v51  ;;  %v2729_v37 = vmul.f32 0.5, %v5407_v30  ;;  %5428 = vtanh.f32 %v2254_v14  ;;  %4644 = vadd.xlane.f32.xlu1 %v3748_v31  ;;  %4486 = vadd.xlane.f32.xlu0 %v3669_v27  ;;  %v2097_v38 = vmul.f32 0.5, %v6880_v35  ;;  %v7055_v12 = vpop.f32.mrb[54].mxu0 }
 0x15b   : > { %v5411_v45 = vpop.eup %5410  ;;  %v7051_v49 = vmul.f32 %v3048_v8, %v6755_v60  ;;  %v2889_v50 = vmul.f32 0.5, %v5409_v62  ;;  %5430 = vtanh.f32 %v2095_v42  ;;  %9005 = vst [vmem:[#allocation4_spill] sm:$0xff] %v7055_v12  ;;  %v7057_v4 = vpop.f32.mrb[54].mxu1  ;;  %v2257_v8 = vmul.f32 0.5, %v9007_v46 }
 0x15c   : > { %9006 = vst [vmem:[#allocation10_spill] sm:$0xff] %v7057_v4  ;;  %v5413_v14 = vpop.eup %5412  ;;  %v7060_v31 = vmul.f32 %v3208_v5, %v6758_v44  ;;  %v3049_v27 = vadd.f32 0.5, %v2729_v37  ;;  %v2730_v6 = vmul.f32 0.5, %v5411_v45  ;;  %5432 = vtanh.f32 %v2255_v17  ;;  %v7062_v63 = vpop.f32.mrb[55].mxu0 }
 0x15d   : > { %v7064_v60 = vpop.f32.mrb[55].mxu1  ;;  %v5415_v42 = vpop.eup %5414  ;;  %v3209_v51 = vadd.f32 0.5, %v2889_v50  ;;  %v2890_v30 = vmul.f32 0.5, %v5413_v14  ;;  %5434 = vtanh.f32 %v2096_v13 }
 0x15e   : > { %v5417_v62 = vpop.eup %5416  ;;  %v7068_v4 = vmul.f32 %v3049_v27, %v6774_v22  ;;  %v3050_v12 = vadd.f32 0.5, %v2730_v6  ;;  %v2731_v44 = vmul.f32 0.5, %v5415_v42  ;;  %5436 = vtanh.f32 %v2256_v53  ;;  %4646 = vadd.xlane.f32.xlu0 %v3749_v3  ;;  %4488 = vadd.xlane.f32.xlu1 %v3670_v59  ;;  %v7073_v50 = vpop.f32.mrb[56].mxu0 }
 0x15f   : > { %v5419_v17 = vpop.eup %5418  ;;  %v7071_v5 = vmul.f32 %v3209_v51, %v6776_v48  ;;  %v3210_v37 = vadd.f32 0.5, %v2890_v30  ;;  %v2891_v45 = vmul.f32 0.5, %v5417_v62  ;;  %5438 = vtanh.f32 %v2097_v38  ;;  %v7075_v13 = vpop.f32.mrb[56].mxu1 }
 0x160   : > { %v5421_v14 = vpop.eup %5420  ;;  %v7078_v22 = vmul.f32 %v3050_v12, %v6783_v26  ;;  %v3051_v27 = vadd.f32 0.5, %v2731_v44  ;;  %v2732_v6 = vmul.f32 0.5, %v5419_v17  ;;  %5440 = vtanh.f32 %v2257_v8  ;;  %v7080_v53 = vpop.f32.mrb[57].mxu0 }
 0x161   : > { %9008 = vst [vmem:[#allocation5_spill] sm:$0xff] %v7080_v53  ;;  %v7082_v3 = vpop.f32.mrb[57].mxu1  ;;  %v5423_v48 = vpop.eup %5422  ;;  %v7085_v59 = vmul.f32 %v3210_v37, %v6786_v36  ;;  %v3211_v38 = vadd.f32 0.5, %v2891_v45  ;;  %v2892_v42 = vmul.f32 0.5, %v5421_v14  ;;  %v2098_v51 = vmul.f32 0.5, %v6891_v15 }
 0x162   : > { %9009 = vst [vmem:[#allocation11_spill] sm:$0xff] %v7082_v3  ;;  %v5425_v30 = vpop.eup %5424  ;;  %v7089_v62 = vmul.f32 %v3051_v27, %v6801_v43  ;;  %v3052_v26 = vadd.f32 0.5, %v2732_v6  ;;  %v2733_v12 = vmul.f32 0.5, %v5423_v48  ;;  %v2258_v8 = vmul.f32 0.5, %v6894_v7  ;;  %v7095_v36 = vpop.f32.mrb[58].mxu0 }
 0x163   : > { %v5427_v44 = vpop.eup %5426  ;;  %v7093_v17 = vmul.f32 %v3211_v38, %v6803_v55  ;;  %v3212_v3 = vadd.f32 0.5, %v2892_v42  ;;  %v2893_v53 = vmul.f32 0.5, %v5425_v30  ;;  %5442 = vtanh.f32 %v2098_v51  ;;  %v7097_v37 = vpop.f32.mrb[58].mxu1 }
 0x164   : > { %9010 = vst [vmem:[#allocation12_spill] sm:$0xff] %v7097_v37  ;;  %v5429_v45 = vpop.eup %5428  ;;  %v7100_v14 = vmul.f32 %v3052_v26, %v6809_v9  ;;  %v3053_v43 = vadd.f32 0.5, %v2733_v12  ;;  %v2734_v27 = vmul.f32 0.5, %v5427_v44  ;;  %5444 = vtanh.f32 %v2258_v8  ;;  %v7102_v6 = vpop.f32.mrb[59].mxu0 }
 0x165   : > { %v7104_v48 = vpop.f32.mrb[59].mxu1  ;;  %v5431_v55 = vpop.eup %5430  ;;  %v7107_v38 = vmul.f32 %v3212_v3, %v6812_v29  ;;  %v3213_v42 = vadd.f32 0.5, %v2893_v53  ;;  %v2894_v51 = vmul.f32 0.5, %v5429_v45  ;;  %v3750_v30 = vadd.f32 %v6995_v23, %v6965_v41 }
 0x166   : > { %9011 = vst [vmem:[#allocation13_spill] sm:$0xff] %v7104_v48  ;;  %v5433_v37 = vpop.eup %5432  ;;  %v7112_v9 = vmul.f32 %v3053_v43, %v6828_v32  ;;  %v3054_v26 = vadd.f32 0.5, %v2734_v27  ;;  %v2735_v12 = vmul.f32 0.5, %v5431_v55  ;;  %v3671_v8 = vadd.f32 %v7051_v49, %v7026_v56  ;;  %v7120_v45 = vpop.f32.mrb[60].mxu0  ;;  %v9014_v56 = vld [vmem:[#allocation6_spill] sm:$0xff] }
 0x167   : > { %v5435_v44 = vpop.eup %5434  ;;  %v7117_v48 = vmul.f32 %v3213_v42, %v6830_v2  ;;  %v3214_v29 = vadd.f32 0.5, %v2894_v51  ;;  %v2895_v3 = vmul.f32 0.5, %v5433_v37  ;;  %4648 = vadd.xlane.f32.xlu1 %v3750_v30  ;;  %v2099_v53 = vmul.f32 0.5, %v6912_v25  ;;  %9012 = vst [vmem:[#allocation14_spill] sm:$0xff] %v7120_v45  ;;  %v7122_v41 = vpop.f32.mrb[60].mxu1 }
 0x168   : > { %9013 = vst [vmem:[#allocation15_spill] sm:$0xff] %v7122_v41  ;;  %v5437_v32 = vpop.eup %5436  ;;  %v7125_v23 = vmul.f32 %v3054_v26, %v6835_v57  ;;  %v3055_v43 = vadd.f32 0.5, %v2735_v12  ;;  %v2736_v27 = vmul.f32 0.5, %v5435_v44  ;;  %4490 = vadd.xlane.f32.xlu0 %v3671_v8  ;;  %v2259_v49 = vmul.f32 0.5, %v9014_v56  ;;  %v7128_v2 = vpop.f32.mrb[61].mxu0 }
 0x169   : > { %9015 = vst [vmem:[#allocation6_spill] sm:$0xff] %v7128_v2  ;;  %v7130_v55 = vpop.f32.mrb[61].mxu1  ;;  %v5439_v37 = vpop.eup %5438  ;;  %v7133_v42 = vmul.f32 %v3214_v29, %v6838_v10  ;;  %v3215_v51 = vadd.f32 0.5, %v2895_v3  ;;  %v2896_v30 = vmul.f32 0.5, %v5437_v32  ;;  %5446 = vtanh.f32 %v2099_v53 }
 0x16a   : > { %9016 = vst [vmem:[#allocation16_spill] sm:$0xff] %v7130_v55  ;;  %v5441_v41 = vpop.eup %5440  ;;  %v7136_v57 = vmul.f32 %v3055_v43, %v6852_v16  ;;  %v3056_v26 = vadd.f32 0.5, %v2736_v27  ;;  %v2737_v12 = vmul.f32 0.5, %v5439_v37  ;;  %5448 = vtanh.f32 %v2259_v49  ;;  %v7142_v45 = vpop.f32.mrb[62].mxu0 }
 0x16b   : > { %v7139_v8 = vmul.f32 %v3215_v51, %v6854_v11  ;;  %v3216_v44 = vadd.f32 0.5, %v2896_v30  ;;  %v2897_v2 = vmul.f32 0.5, %v5441_v41  ;;  %v2100_v55 = vmul.f32 0.5, %v6921_v0  ;;  %v7144_v10 = vpop.f32.mrb[62].mxu1  ;;  %v7152_v32 = vpop.f32.mrb[63].mxu0 }
 0x16c   : > { %v7147_v29 = vmul.f32 %v3056_v26, %v9002_v39  ;;  %v3057_v3 = vadd.f32 0.5, %v2737_v12  ;;  %v2260_v16 = vmul.f32 0.5, %v6924_v33  ;;  %v3751_v53 = vadd.f32 %v7060_v31, %v7035_v19  ;;  %v7154_v11 = vpop.f32.mrb[63].mxu1 }
 0x16d   : > { %v5443_v41 = vpop.eup %5442  ;;  %v7157_v43 = vmul.f32 %v3216_v44, %v9004_v20  ;;  %v3217_v27 = vadd.f32 0.5, %v2897_v2  ;;  %5450 = vtanh.f32 %v2100_v55  ;;  %v3672_v39 = vadd.f32 %v7078_v22, %v7068_v4 }
 0x16e   : > { %v5445_v49 = vpop.eup %5444  ;;  %v7162_v37 = vmul.f32 %v3057_v3, %v6880_v35  ;;  %v2738_v51 = vmul.f32 0.5, %v5443_v41  ;;  %5452 = vtanh.f32 %v2260_v16  ;;  %4650 = vadd.xlane.f32.xlu0 %v3751_v53  ;;  %v2101_v19 = vmul.f32 0.5, %v6942_v18  ;;  %v7170_v55 = vpop.f32.mrb[64].mxu0 }
 0x16f   : > { %v7166_v31 = vmul.f32 %v3217_v27, %v9007_v46  ;;  %v2898_v30 = vmul.f32 0.5, %v5445_v49  ;;  %4492 = vadd.xlane.f32.xlu1 %v3672_v39  ;;  %v2261_v20 = vmul.f32 0.5, %v6944_v34  ;;  %v2102_v2 = vmul.f32 0.5, %v6953_v52  ;;  %v7172_v4 = vpop.f32.mrb[64].mxu1  ;;  %v7177_v12 = vpop.f32.mrb[65].mxu0 }
 0x170   : > { %v3058_v35 = vadd.f32 0.5, %v2738_v51  ;;  %5454 = vtanh.f32 %v2101_v19  ;;  %v2262_v22 = vmul.f32 0.5, %v6956_v47  ;;  %v3752_v26 = vadd.f32 %v7085_v59, %v7071_v5  ;;  %v7179_v46 = vpop.f32.mrb[65].mxu1 }
 0x171   : > { %v3218_v44 = vadd.f32 0.5, %v2898_v30  ;;  %5456 = vtanh.f32 %v2261_v20  ;;  %v3673_v3 = vadd.f32 %v7100_v14, %v7089_v62  ;;  %v2103_v16 = vmul.f32 0.5, %v6973_v40 }
 0x172   : > { %v3378_v53 = vmul.f32 %v3058_v35, %v6891_v15  ;;  %5458 = vtanh.f32 %v2102_v2  ;;  %v2263_v41 = vmul.f32 0.5, %v6975_v54  ;;  %v2104_v27 = vmul.f32 0.5, %v6981_v1  ;;  %v7193_v14 = vpop.f32.mrb[66].mxu0  ;;  %v7195_v15 = vpop.f32.mrb[66].mxu1 }
 0x173   : > { %v5447_v39 = vpop.eup %5446  ;;  %v7188_v5 = vmul.f32 %v3218_v44, %v6894_v7  ;;  %5460 = vtanh.f32 %v2262_v22  ;;  %4652 = vadd.xlane.f32.xlu1 %v3752_v26  ;;  %4494 = vadd.xlane.f32.xlu0 %v3673_v3  ;;  %v2264_v59 = vmul.f32 0.5, %v6984_v24  ;;  %v3753_v62 = vadd.f32 %v7107_v38, %v7093_v17  ;;  %v7200_v30 = vpop.f32.mrb[67].mxu0  ;;  %v9018_v38 = vld [vmem:[#allocation7_spill] sm:$0xff]  ;;  %v9019_v26 = vld [vmem:[#allocation8_spill] sm:$0xff] }
 0x174   : > { %v5449_v49 = vpop.eup %5448  ;;  %v2739_v51 = vmul.f32 0.5, %v5447_v39  ;;  %5462 = vtanh.f32 %v2103_v16  ;;  %v3674_v19 = vadd.f32 %v7125_v23, %v7112_v9  ;;  %v2105_v7 = vmul.f32 0.5, %v7004_v28  ;;  %v7202_v20 = vpop.f32.mrb[67].mxu1 }
 0x175   : > { %9017 = vst [vmem:[#allocation17_spill] sm:$0xff] %v7202_v20  ;;  %v2899_v2 = vmul.f32 0.5, %v5449_v49  ;;  %5464 = vtanh.f32 %v2263_v41  ;;  %v2265_v17 = vmul.f32 0.5, %v7006_v61  ;;  %v2106_v35 = vmul.f32 0.5, %v9018_v38 }
 0x176   : > { %v3059_v22 = vadd.f32 0.5, %v2739_v51  ;;  %5466 = vtanh.f32 %v2104_v27  ;;  %v2266_v44 = vmul.f32 0.5, %v9019_v26  ;;  %v3754_v3 = vadd.f32 %v7133_v42, %v7117_v48  ;;  %v7212_v39 = vpop.f32.mrb[68].mxu0  ;;  %v7214_v49 = vpop.f32.mrb[68].mxu1  ;;  %v9022_v48 = vld [vmem:[#allocation9_spill] sm:$0xff] }
 0x177   : > { %v5451_v9 = vpop.eup %5450  ;;  %v3219_v23 = vadd.f32 0.5, %v2899_v2  ;;  %5468 = vtanh.f32 %v2264_v59  ;;  %4654 = vadd.xlane.f32.xlu0 %v3753_v62  ;;  %4496 = vadd.xlane.f32.xlu1 %v3674_v19  ;;  %v3675_v16 = vadd.f32 %v7147_v29, %v7136_v57  ;;  %v2107_v41 = vmul.f32 0.5, %v7030_v21  ;;  %9020 = vst [vmem:[#allocation7_spill] sm:$0xff] %v7212_v39  ;;  %9021 = vst [vmem:[#allocation8_spill] sm:$0xff] %v7214_v49  ;;  %v7220_v59 = vpop.f32.mrb[69].mxu0 }
 0x178   : > { %v5453_v27 = vpop.eup %5452  ;;  %v7217_v51 = vmul.f32 %v3059_v22, %v6912_v25  ;;  %v2740_v20 = vmul.f32 0.5, %v5451_v9  ;;  %5470 = vtanh.f32 %v2105_v7  ;;  %v2267_v42 = vmul.f32 0.5, %v9022_v48  ;;  %9023 = vst [vmem:[#allocation9_spill] sm:$0xff] %v7220_v59  ;;  %v7222_v62 = vpop.f32.mrb[69].mxu1  ;;  %v9025_v25 = vld [vmem:[#allocation3_spill] sm:$0xff] }
 0x179   : > { %9024 = vst [vmem:[#allocation18_spill] sm:$0xff] %v7222_v62  ;;  %v7225_v57 = vmul.f32 %v3219_v23, %v9014_v56  ;;  %v2900_v29 = vmul.f32 0.5, %v5453_v27  ;;  %5472 = vtanh.f32 %v2265_v17  ;;  %v2108_v19 = vmul.f32 0.5, %v7039_v58  ;;  %v9028_v62 = vld [vmem:[#allocation4_spill] sm:$0xff] }
 0x17a   : > { %v5455_v2 = vpop.eup %5454  ;;  %v3060_v49 = vadd.f32 0.5, %v2740_v20  ;;  %5474 = vtanh.f32 %v2106_v35  ;;  %v2268_v22 = vmul.f32 0.5, %v9025_v25  ;;  %v3755_v7 = vadd.f32 %v7157_v43, %v7139_v8  ;;  %v7232_v23 = vpop.f32.mrb[70].mxu0 }
 0x17b   : > { %v5457_v9 = vpop.eup %5456  ;;  %v3220_v39 = vadd.f32 0.5, %v2900_v29  ;;  %v2741_v59 = vmul.f32 0.5, %v5455_v2  ;;  %5476 = vtanh.f32 %v2266_v44  ;;  %4656 = vadd.xlane.f32.xlu1 %v3754_v3  ;;  %4498 = vadd.xlane.f32.xlu0 %v3675_v16  ;;  %v3676_v56 = vadd.f32 %v3378_v53, %v7162_v37  ;;  %9026 = vst [vmem:[#allocation3_spill] sm:$0xff] %v7232_v23  ;;  %v7234_v17 = vpop.f32.mrb[70].mxu1 }
 0x17c   : > { %9027 = vst [vmem:[#allocation19_spill] sm:$0xff] %v7234_v17  ;;  %v5459_v27 = vpop.eup %5458  ;;  %v7237_v20 = vmul.f32 %v3060_v49, %v6921_v0  ;;  %v2901_v35 = vmul.f32 0.5, %v5457_v9  ;;  %5478 = vtanh.f32 %v2107_v41  ;;  %v2109_v8 = vmul.f32 0.5, %v9028_v62  ;;  %v7240_v43 = vpop.f32.mrb[71].mxu0  ;;  %v9030_v0 = vld [vmem:[#allocation10_spill] sm:$0xff] }
 0x17d   : > { %9029 = vst [vmem:[#allocation4_spill] sm:$0xff] %v7240_v43  ;;  %v7242_v29 = vpop.f32.mrb[71].mxu1  ;;  %v5461_v44 = vpop.eup %5460  ;;  %v7245_v3 = vmul.f32 %v3220_v39, %v6924_v33  ;;  %v3061_v37 = vadd.f32 0.5, %v2741_v59  ;;  %v2742_v53 = vmul.f32 0.5, %v5459_v27  ;;  %5480 = vtanh.f32 %v2267_v42 }
 0x17e   : > { %v5463_v16 = vpop.eup %5462  ;;  %v3221_v2 = vadd.f32 0.5, %v2901_v35  ;;  %v2902_v17 = vmul.f32 0.5, %v5461_v44  ;;  %5482 = vtanh.f32 %v2108_v19  ;;  %v2269_v49 = vmul.f32 0.5, %v9030_v0  ;;  %v7251_v33 = vpop.f32.mrb[72].mxu0 }
 0x17f   : > { %v5465_v41 = vpop.eup %5464  ;;  %v7249_v9 = vmul.f32 %v3061_v37, %v6942_v18  ;;  %v3062_v43 = vadd.f32 0.5, %v2742_v53  ;;  %v2743_v23 = vmul.f32 0.5, %v5463_v16  ;;  %5484 = vtanh.f32 %v2268_v22  ;;  %4658 = vadd.xlane.f32.xlu0 %v3755_v7  ;;  %4500 = vadd.xlane.f32.xlu1 %v3676_v56  ;;  %v7253_v39 = vpop.f32.mrb[72].mxu1 }
 0x180   : > { %v5467_v42 = vpop.eup %5466  ;;  %v7256_v59 = vmul.f32 %v3221_v2, %v6944_v34  ;;  %v3222_v19 = vadd.f32 0.5, %v2902_v17  ;;  %v2903_v27 = vmul.f32 0.5, %v5465_v41  ;;  %5486 = vtanh.f32 %v2109_v8  ;;  %v7258_v35 = vpop.f32.mrb[73].mxu0 }
 0x181   : > { %v7260_v18 = vpop.f32.mrb[73].mxu1  ;;  %v5469_v44 = vpop.eup %5468  ;;  %v7263_v22 = vmul.f32 %v3062_v43, %v6953_v52  ;;  %v3063_v7 = vadd.f32 0.5, %v2743_v23  ;;  %v2744_v56 = vmul.f32 0.5, %v5467_v42  ;;  %5488 = vtanh.f32 %v2269_v49 }
 0x182   : > { %9031 = vst [vmem:[#allocation10_spill] sm:$0xff] %v7260_v18  ;;  %v5471_v37 = vpop.eup %5470  ;;  %v7266_v53 = vmul.f32 %v3222_v19, %v6956_v47  ;;  %v3223_v34 = vadd.f32 0.5, %v2903_v27  ;;  %v2904_v16 = vmul.f32 0.5, %v5469_v44  ;;  %v2110_v17 = vmul.f32 0.5, %v7062_v63  ;;  %v7273_v43 = vpop.f32.mrb[74].mxu0 }
 0x183   : > { %v5473_v8 = vpop.eup %5472  ;;  %v7270_v2 = vmul.f32 %v3063_v7, %v6973_v40  ;;  %v3064_v41 = vadd.f32 0.5, %v2744_v56  ;;  %v2745_v18 = vmul.f32 0.5, %v5471_v37  ;;  %v2270_v52 = vmul.f32 0.5, %v7064_v60  ;;  %9032 = vst [vmem:[#allocation20_spill] sm:$0xff] %v7273_v43  ;;  %v7275_v23 = vpop.f32.mrb[74].mxu1 }
 0x184   : > { %9033 = vst [vmem:[#allocation21_spill] sm:$0xff] %v7275_v23  ;;  %v5475_v49 = vpop.eup %5474  ;;  %v7278_v47 = vmul.f32 %v3223_v34, %v6975_v54  ;;  %v3224_v42 = vadd.f32 0.5, %v2904_v16  ;;  %v2905_v19 = vmul.f32 0.5, %v5473_v8  ;;  %5490 = vtanh.f32 %v2110_v17  ;;  %v7280_v27 = vpop.f32.mrb[75].mxu0 }
 0x185   : > { %9034 = vst [vmem:[#allocation22_spill] sm:$0xff] %v7280_v27  ;;  %v7282_v44 = vpop.f32.mrb[75].mxu1  ;;  %v5477_v40 = vpop.eup %5476  ;;  %v7285_v7 = vmul.f32 %v3064_v41, %v6981_v1  ;;  %v3065_v56 = vadd.f32 0.5, %v2745_v18  ;;  %v2746_v37 = vmul.f32 0.5, %v5475_v49  ;;  %5492 = vtanh.f32 %v2270_v52 }
 0x186   : > { %9035 = vst [vmem:[#allocation23_spill] sm:$0xff] %v7282_v44  ;;  %v5479_v43 = vpop.eup %5478  ;;  %v7288_v23 = vmul.f32 %v3224_v42, %v6984_v24  ;;  %v3225_v54 = vadd.f32 0.5, %v2905_v19  ;;  %v2906_v34 = vmul.f32 0.5, %v5477_v40  ;;  %v3756_v16 = vadd.f32 %v7188_v5, %v7166_v31  ;;  %v7297_v18 = vpop.f32.mrb[76].mxu0 }
 0x187   : > { %v5481_v17 = vpop.eup %5480  ;;  %v7293_v8 = vmul.f32 %v3065_v56, %v7004_v28  ;;  %v3066_v44 = vadd.f32 0.5, %v2746_v37  ;;  %v2747_v27 = vmul.f32 0.5, %v5479_v43  ;;  %v3677_v1 = vadd.f32 %v7237_v20, %v7217_v51  ;;  %v7299_v41 = vpop.f32.mrb[76].mxu1 }
 0x188   : > { %v5483_v24 = vpop.eup %5482  ;;  %v7302_v52 = vmul.f32 %v3225_v54, %v7006_v61  ;;  %v3226_v49 = vadd.f32 0.5, %v2906_v34  ;;  %v2907_v42 = vmul.f32 0.5, %v5481_v17  ;;  %4660 = vadd.xlane.f32.xlu1 %v3756_v16  ;;  %v2111_v31 = vmul.f32 0.5, %v7073_v50  ;;  %v7305_v28 = vpop.f32.mrb[77].mxu0 }
 0x189   : > { %v7307_v5 = vpop.f32.mrb[77].mxu1  ;;  %v5485_v43 = vpop.eup %5484  ;;  %v7310_v51 = vmul.f32 %v3066_v44, %v9018_v38  ;;  %v3067_v20 = vadd.f32 0.5, %v2747_v27  ;;  %v2748_v19 = vmul.f32 0.5, %v5483_v24  ;;  %4502 = vadd.xlane.f32.xlu0 %v3677_v1  ;;  %v2271_v40 = vmul.f32 0.5, %v7075_v13  ;;  %v9037_v24 = vld [vmem:[#allocation5_spill] sm:$0xff] }
 0x18a   : > { %9036 = vst [vmem:[#allocation24_spill] sm:$0xff] %v7307_v5  ;;  %v5487_v61 = vpop.eup %5486  ;;  %v7314_v56 = vmul.f32 %v3226_v49, %v9019_v26  ;;  %v3227_v37 = vadd.f32 0.5, %v2907_v42  ;;  %v2908_v54 = vmul.f32 0.5, %v5485_v43  ;;  %5494 = vtanh.f32 %v2111_v31  ;;  %v7319_v38 = vpop.f32.mrb[78].mxu0 }
 0x18b   : > { %v5489_v34 = vpop.eup %5488  ;;  %v7317_v16 = vmul.f32 %v3067_v20, %v7030_v21  ;;  %v3068_v17 = vadd.f32 0.5, %v2748_v19  ;;  %v2749_v5 = vmul.f32 0.5, %v5487_v61  ;;  %5496 = vtanh.f32 %v2271_v40  ;;  %v7321_v27 = vpop.f32.mrb[78].mxu1  ;;  %v9040_v20 = vld [vmem:[#allocation11_spill] sm:$0xff] }
 0x18c   : > { %v7324_v44 = vmul.f32 %v3227_v37, %v9022_v48  ;;  %v3228_v1 = vadd.f32 0.5, %v2908_v54  ;;  %v2909_v26 = vmul.f32 0.5, %v5489_v34  ;;  %v2112_v49 = vmul.f32 0.5, %v9037_v24  ;;  %v7327_v42 = vpop.f32.mrb[79].mxu0  ;;  %v7329_v31 = vpop.f32.mrb[79].mxu1 }
 0x18d   : > { %9038 = vst [vmem:[#allocation5_spill] sm:$0xff] %v7327_v42  ;;  %9039 = vst [vmem:[#allocation25_spill] sm:$0xff] %v7329_v31  ;;  %v7332_v21 = vmul.f32 %v3068_v17, %v7039_v58  ;;  %v3069_v43 = vadd.f32 0.5, %v2749_v5  ;;  %v2272_v19 = vmul.f32 0.5, %v9040_v20  ;;  %v3757_v40 = vadd.f32 %v7245_v3, %v7225_v57 }
 0x18e   : > { %v5491_v61 = vpop.eup %5490  ;;  %v7338_v48 = vmul.f32 %v3228_v1, %v9025_v25  ;;  %v3229_v37 = vadd.f32 0.5, %v2909_v26  ;;  %5498 = vtanh.f32 %v2112_v49  ;;  %v3678_v54 = vadd.f32 %v7263_v22, %v7249_v9  ;;  %v7346_v17 = vpop.f32.mrb[80].mxu0  ;;  %v9043_v1 = vld [vmem:[#allocation12_spill] sm:$0xff] }
 0x18f   : > { %v5493_v34 = vpop.eup %5492  ;;  %v7343_v31 = vmul.f32 %v3069_v43, %v9028_v62  ;;  %v2750_v58 = vmul.f32 0.5, %v5491_v61  ;;  %5500 = vtanh.f32 %v2272_v19  ;;  %4662 = vadd.xlane.f32.xlu0 %v3757_v40  ;;  %v2113_v5 = vmul.f32 0.5, %v7095_v36  ;;  %9041 = vst [vmem:[#allocation11_spill] sm:$0xff] %v7346_v17  ;;  %v7348_v57 = vpop.f32.mrb[80].mxu1  ;;  %v9046_v43 = vld [vmem:[#allocation13_spill] sm:$0xff] }
 0x190   : > { %9042 = vst [vmem:[#allocation26_spill] sm:$0xff] %v7348_v57  ;;  %v7351_v25 = vmul.f32 %v3229_v37, %v9030_v0  ;;  %v2910_v3 = vmul.f32 0.5, %v5493_v34  ;;  %4504 = vadd.xlane.f32.xlu1 %v3678_v54  ;;  %v2273_v9 = vmul.f32 0.5, %v9043_v1  ;;  %v2114_v22 = vmul.f32 0.5, %v7102_v6  ;;  %v7355_v62 = vpop.f32.mrb[81].mxu0  ;;  %v7357_v26 = vpop.f32.mrb[81].mxu1 }
 0x191   : > { %9044 = vst [vmem:[#allocation12_spill] sm:$0xff] %v7355_v62  ;;  %9045 = vst [vmem:[#allocation27_spill] sm:$0xff] %v7357_v26  ;;  %v3070_v49 = vadd.f32 0.5, %v2750_v58  ;;  %5502 = vtanh.f32 %v2113_v5  ;;  %v2274_v19 = vmul.f32 0.5, %v9046_v43  ;;  %v3758_v40 = vadd.f32 %v7266_v53, %v7256_v59  ;;  %v9047_v37 = vld [vmem:[#allocation14_spill] sm:$0xff]  ;;  %v9048_v62 = vld [vmem:[#allocation15_spill] sm:$0xff] }
 0x192   : > { %v3230_v61 = vadd.f32 0.5, %v2910_v3  ;;  %5504 = vtanh.f32 %v2273_v9  ;;  %v3679_v0 = vadd.f32 %v7285_v7, %v7270_v2  ;;  %v2115_v54 = vmul.f32 0.5, %v9047_v37  ;;  %v9049_v26 = vld [vmem:[#allocation6_spill] sm:$0xff]  ;;  %v7368_v5 = vpop.f32.mrb[82].mxu1  ;;  %v7370_v17 = vpop.f32.mrb[82].mxu0  ;;  %v9050_v53 = vld [vmem:[#allocation16_spill] sm:$0xff] }
 0x193   : > { %v3390_v34 = vmul.f32 %v3070_v49, %v7062_v63  ;;  %5506 = vtanh.f32 %v2114_v22  ;;  %v2275_v57 = vmul.f32 0.5, %v9048_v62  ;;  %v2116_v58 = vmul.f32 0.5, %v9049_v26  ;;  %v7378_v7 = vpop.f32.mrb[83].mxu0  ;;  %v7380_v3 = vpop.f32.mrb[83].mxu1 }
 0x194   : > { %v5495_v42 = vpop.eup %5494  ;;  %v7373_v59 = vmul.f32 %v3230_v61, %v7064_v60  ;;  %5508 = vtanh.f32 %v2274_v19  ;;  %4664 = vadd.xlane.f32.xlu1 %v3758_v40  ;;  %4506 = vadd.xlane.f32.xlu0 %v3679_v0  ;;  %v2276_v2 = vmul.f32 0.5, %v9050_v53  ;;  %v3759_v63 = vadd.f32 %v7288_v23, %v7278_v47  ;;  %9051 = vst [vmem:[#allocation13_spill] sm:$0xff] %v7380_v3 }
 0x195   : > { %v5497_v9 = vpop.eup %5496  ;;  %v2751_v22 = vmul.f32 0.5, %v5495_v42  ;;  %5510 = vtanh.f32 %v2115_v54  ;;  %v3680_v49 = vadd.f32 %v7310_v51, %v7293_v8  ;;  %v2117_v60 = vmul.f32 0.5, %v7142_v45 }
 0x196   : > { %v2911_v19 = vmul.f32 0.5, %v5497_v9  ;;  %5512 = vtanh.f32 %v2275_v57  ;;  %v2277_v40 = vmul.f32 0.5, %v7144_v10  ;;  %v2118_v61 = vmul.f32 0.5, %v7152_v32  ;;  %v7390_v42 = vpop.f32.mrb[84].mxu1  ;;  %v7392_v54 = vpop.f32.mrb[84].mxu0 }
 0x197   : > { %v3071_v0 = vadd.f32 0.5, %v2751_v22  ;;  %5514 = vtanh.f32 %v2116_v58  ;;  %v2278_v23 = vmul.f32 0.5, %v7154_v11  ;;  %v3760_v47 = vadd.f32 %v7314_v56, %v7302_v52  ;;  %v7397_v58 = vpop.f32.mrb[85].mxu0  ;;  %v7399_v22 = vpop.f32.mrb[85].mxu1 }
 0x198   : > { %v5499_v8 = vpop.eup %5498  ;;  %v3231_v51 = vadd.f32 0.5, %v2911_v19  ;;  %5516 = vtanh.f32 %v2276_v2  ;;  %4666 = vadd.xlane.f32.xlu0 %v3759_v63  ;;  %4508 = vadd.xlane.f32.xlu1 %v3680_v49  ;;  %v3681_v57 = vadd.f32 %v7332_v21, %v7317_v16  ;;  %v2119_v9 = vmul.f32 0.5, %v7170_v55  ;;  %9052 = vst [vmem:[#allocation14_spill] sm:$0xff] %v7397_v58  ;;  %9053 = vst [vmem:[#allocation15_spill] sm:$0xff] %v7399_v22 }
 0x199   : > { %v5501_v3 = vpop.eup %5500  ;;  %v7402_v52 = vmul.f32 %v3071_v0, %v7073_v50  ;;  %v2752_v56 = vmul.f32 0.5, %v5499_v8  ;;  %5518 = vtanh.f32 %v2117_v60  ;;  %v2279_v19 = vmul.f32 0.5, %v7172_v4 }
 0x19a   : > { %v7406_v2 = vmul.f32 %v3231_v51, %v7075_v13  ;;  %v2912_v63 = vmul.f32 0.5, %v5501_v3  ;;  %5520 = vtanh.f32 %v2277_v40  ;;  %v2120_v16 = vmul.f32 0.5, %v7177_v12  ;;  %v7412_v0 = vpop.f32.mrb[86].mxu1  ;;  %v7414_v60 = vpop.f32.mrb[86].mxu0 }
 0x19b   : > { %v5503_v21 = vpop.eup %5502  ;;  %v3072_v49 = vadd.f32 0.5, %v2752_v56  ;;  %5522 = vtanh.f32 %v2118_v61  ;;  %v2280_v22 = vmul.f32 0.5, %v7179_v46  ;;  %v3761_v50 = vadd.f32 %v7338_v48, %v7324_v44  ;;  %9054 = vst [vmem:[#allocation6_spill] sm:$0xff] %v7412_v0  ;;  %9055 = vst [vmem:[#allocation16_spill] sm:$0xff] %v7414_v60  ;;  %v7417_v40 = vpop.f32.mrb[87].mxu0 }
 0x19c   : > { %v5505_v8 = vpop.eup %5504  ;;  %v3232_v58 = vadd.f32 0.5, %v2912_v63  ;;  %v2753_v13 = vmul.f32 0.5, %v5503_v21  ;;  %5524 = vtanh.f32 %v2278_v23  ;;  %4668 = vadd.xlane.f32.xlu1 %v3760_v47  ;;  %4510 = vadd.xlane.f32.xlu0 %v3681_v57  ;;  %v3682_v3 = vadd.f32 %v3390_v34, %v7343_v31  ;;  %9056 = vst [vmem:[#allocation28_spill] sm:$0xff] %v7417_v40  ;;  %v7419_v61 = vpop.f32.mrb[87].mxu1 }
 0x19d   : > { %9057 = vst [vmem:[#allocation29_spill] sm:$0xff] %v7419_v61  ;;  %v5507_v51 = vpop.eup %5506  ;;  %v7422_v56 = vmul.f32 %v3072_v49, %v9037_v24  ;;  %v2913_v44 = vmul.f32 0.5, %v5505_v8  ;;  %5526 = vtanh.f32 %v2119_v9  ;;  %v2121_v48 = vmul.f32 0.5, %v7193_v14  ;;  %v7428_v31 = vpop.xlane.xlu0 %4458 }
 0x19e   : > { %v5509_v60 = vpop.eup %5508  ;;  %v7426_v63 = vmul.f32 %v3232_v58, %v9040_v20  ;;  %v3073_v23 = vadd.f32 0.5, %v2753_v13  ;;  %v2754_v47 = vmul.f32 0.5, %v5507_v51  ;;  %5528 = vtanh.f32 %v2279_v19  ;;  %v7431_v49 = vpop.f32.mrb[88].mxu1  ;;  %4779 = vst.msk [vmem:[%s7755_s5] sm:$0xff] %vm4778_vm1, %v7428_v31 }
 0x19f   : > { %v5511_v34 = vpop.eup %5510  ;;  %v3233_v57 = vadd.f32 0.5, %v2913_v44  ;;  %v2914_v21 = vmul.f32 0.5, %v5509_v60  ;;  %5530 = vtanh.f32 %v2120_v16  ;;  %v2281_v24 = vmul.f32 0.5, %v7195_v15  ;;  %9058 = vst [vmem:[#allocation30_spill] sm:$0xff] %v7431_v49  ;;  %v7433_v9 = vpop.f32.mrb[88].mxu0 }
 0x1a0   : > { %9059 = vst [vmem:[#allocation31_spill] sm:$0xff] %v7433_v9  ;;  %v5513_v8 = vpop.eup %5512  ;;  %v7436_v61 = vmul.f32 %v3073_v23, %v7095_v36  ;;  %v3074_v20 = vadd.f32 0.5, %v2754_v47  ;;  %v2755_v58 = vmul.f32 0.5, %v5511_v34  ;;  %5532 = vtanh.f32 %v2280_v22  ;;  %4670 = vadd.xlane.f32.xlu0 %v3761_v50  ;;  %4512 = vadd.xlane.f32.xlu1 %v3682_v3  ;;  %v7438_v19 = vpop.f32.mrb[89].mxu0 }
 0x1a1   : > { %9060 = vst [vmem:[#allocation32_spill] sm:$0xff] %v7438_v19  ;;  %v7440_v13 = vpop.f32.mrb[89].mxu1  ;;  %v5515_v16 = vpop.eup %5514  ;;  %v7443_v60 = vmul.f32 %v3233_v57, %v9043_v1  ;;  %v3234_v51 = vadd.f32 0.5, %v2914_v21  ;;  %v2915_v44 = vmul.f32 0.5, %v5513_v8  ;;  %5534 = vtanh.f32 %v2121_v48 }
 0x1a2   : > { %9061 = vst [vmem:[#allocation33_spill] sm:$0xff] %v7440_v13  ;;  %v7445_v9 = vpop.xlane.xlu1 %4620  ;;  %v5517_v36 = vpop.eup %5516  ;;  %v7448_v23 = vmul.f32 %v3074_v20, %v7102_v6  ;;  %v3075_v22 = vadd.f32 0.5, %v2755_v58  ;;  %v2756_v50 = vmul.f32 0.5, %v5515_v16  ;;  %5536 = vtanh.f32 %v2281_v24  ;;  %v9064_v58 = vld [vmem:[#allocation17_spill] sm:$0xff] }
 0x1a3   : > { %v7450_v3 = vpop.xlane.xlu0 %4618  ;;  %v5519_v47 = vpop.eup %5518  ;;  %v7453_v34 = vmul.f32 %v3234_v51, %v9046_v43  ;;  %v3235_v1 = vadd.f32 0.5, %v2915_v44  ;;  %v2916_v57 = vmul.f32 0.5, %v5517_v36  ;;  %v2122_v21 = vmul.f32 0.5, %v7200_v30  ;;  %4860 = vst.msk [vmem:[%s7755_s5 + $0x288] sm:$0xff] %vm4778_vm1, %v7445_v9 }
 0x1a4   : > { %v7456_v48 = vpop.f32.mrb[90].mxu1  ;;  %v7458_v8 = vpop.f32.mrb[90].mxu0  ;;  %v7461_v6 = vmul.f32 %v3075_v22, %v9047_v37  ;;  %v3076_v20 = vadd.f32 0.5, %v2756_v50  ;;  %v2757_v24 = vmul.f32 0.5, %v5519_v47  ;;  %v2282_v16 = vmul.f32 0.5, %v9064_v58  ;;  %4859 = vst.msk [vmem:[%s7755_s5 + $0x280] sm:$0xff] %vm4778_vm1, %v7450_v3 }
 0x1a5   : > { %9062 = vst [vmem:[#allocation34_spill] sm:$0xff] %v7456_v48  ;;  %9063 = vst [vmem:[#allocation35_spill] sm:$0xff] %v7458_v8  ;;  %v5521_v13 = vpop.eup %5520  ;;  %v7464_v19 = vpop.f32.mrb[91].mxu0  ;;  %v7469_v44 = vmul.f32 %v3235_v1, %v9048_v62  ;;  %v3236_v36 = vadd.f32 0.5, %v2916_v57  ;;  %5538 = vtanh.f32 %v2122_v21 }
 0x1a6   : > { %9065 = vst [vmem:[#allocation17_spill] sm:$0xff] %v7464_v19  ;;  %v7466_v43 = vpop.f32.mrb[91].mxu1  ;;  %v5523_v51 = vpop.eup %5522  ;;  %v2917_v48 = vmul.f32 0.5, %v5521_v13  ;;  %v7472_v49 = vmul.f32 %v3076_v20, %v9049_v26  ;;  %v3077_v37 = vadd.f32 0.5, %v2757_v24  ;;  %5540 = vtanh.f32 %v2282_v16 }
 0x1a7   : > { %9066 = vst [vmem:[#allocation36_spill] sm:$0xff] %v7466_v43  ;;  %v5525_v8 = vpop.eup %5524  ;;  %v2758_v22 = vmul.f32 0.5, %v5523_v51  ;;  %v7474_v50 = vpop.xlane.xlu0 %4460  ;;  %v7479_v43 = vmul.f32 %v3236_v36, %v9050_v53  ;;  %v3762_v13 = vadd.f32 %v7373_v59, %v7351_v25  ;;  %v3683_v51 = vadd.f32 %v7422_v56, %v7402_v52  ;;  %v9072_v52 = vld [vmem:[#allocation8_spill] sm:$0xff] }
 0x1a8   : > { %v7476_v47 = vpop.xlane.xlu1 %4462  ;;  %v5527_v19 = vpop.eup %5526  ;;  %v3237_v62 = vadd.f32 0.5, %v2917_v48  ;;  %v2918_v1 = vmul.f32 0.5, %v5525_v8  ;;  %v7488_v20 = vmul.f32 %v3077_v37, %v7142_v45  ;;  %v2283_v56 = vmul.f32 0.5, %v9072_v52  ;;  %4780 = vst.msk [vmem:[%s7755_s5 + $0x8] sm:$0xff] %vm4778_vm1, %v7474_v50 }
 0x1a9   : > { %v7483_v57 = vpop.f32.mrb[92].mxu1  ;;  %v7485_v26 = vpop.f32.mrb[92].mxu0  ;;  %v3078_v24 = vadd.f32 0.5, %v2758_v22  ;;  %v2759_v16 = vmul.f32 0.5, %v5527_v19  ;;  %4672 = vadd.xlane.f32.xlu1 %v3762_v13  ;;  %4514 = vadd.xlane.f32.xlu0 %v3683_v51  ;;  %4781 = vst.msk [vmem:[%s7755_s5 + $0x10] sm:$0xff] %vm4778_vm1, %v7476_v47 }
 0x1aa   : > { %9067 = vst [vmem:[#allocation37_spill] sm:$0xff] %v7483_v57  ;;  %9068 = vst [vmem:[#allocation38_spill] sm:$0xff] %v7485_v26  ;;  %v5529_v21 = vpop.eup %5528  ;;  %v7492_v53 = vpop.f32.mrb[93].mxu0  ;;  %v7497_v25 = vmul.f32 %v3237_v62, %v7144_v10  ;;  %v3238_v59 = vadd.f32 0.5, %v2918_v1  ;;  %v9071_v26 = vld [vmem:[#allocation7_spill] sm:$0xff] }
 0x1ab   : > { %9069 = vst [vmem:[#allocation39_spill] sm:$0xff] %v7492_v53  ;;  %v7494_v48 = vpop.f32.mrb[93].mxu1  ;;  %v5531_v8 = vpop.eup %5530  ;;  %v2919_v36 = vmul.f32 0.5, %v5529_v21  ;;  %v2123_v57 = vmul.f32 0.5, %v9071_v26  ;;  %v7501_v37 = vmul.f32 %v3078_v24, %v7152_v32  ;;  %v3079_v19 = vadd.f32 0.5, %v2759_v16 }
 0x1ac   : > { %9070 = vst [vmem:[#allocation40_spill] sm:$0xff] %v7494_v48  ;;  %v5533_v45 = vpop.eup %5532  ;;  %v2760_v22 = vmul.f32 0.5, %v5531_v8  ;;  %v7505_v48 = vmul.f32 %v3238_v59, %v7154_v11  ;;  %v7507_v1 = vpop.f32.mrb[94].mxu1 }
 0x1ad   : > { %v5535_v53 = vpop.eup %5534  ;;  %v3239_v10 = vadd.f32 0.5, %v2919_v36  ;;  %v2920_v62 = vmul.f32 0.5, %v5533_v45  ;;  %5542 = vtanh.f32 %v2123_v57  ;;  %9073 = vst [vmem:[#allocation7_spill] sm:$0xff] %v7507_v1  ;;  %v7509_v13 = vpop.f32.mrb[94].mxu0  ;;  %v7512_v32 = vmul.f32 %v3079_v19, %v7170_v55  ;;  %v9077_v36 = vld [vmem:[#allocation9_spill] sm:$0xff]  ;;  %v9078_v19 = vld [vmem:[#allocation18_spill] sm:$0xff] }
 0x1ae   : > { %9074 = vst [vmem:[#allocation8_spill] sm:$0xff] %v7509_v13  ;;  %v5537_v21 = vpop.eup %5536  ;;  %v3080_v24 = vadd.f32 0.5, %v2760_v22  ;;  %v2761_v16 = vmul.f32 0.5, %v5535_v53  ;;  %5544 = vtanh.f32 %v2283_v56  ;;  %v7514_v51 = vpop.f32.mrb[95].mxu0  ;;  %v2124_v45 = vmul.f32 0.5, %v9077_v36 }
 0x1af   : > { %9075 = vst [vmem:[#allocation41_spill] sm:$0xff] %v7514_v51  ;;  %v7516_v8 = vpop.f32.mrb[95].mxu1  ;;  %v7519_v11 = vmul.f32 %v3239_v10, %v7172_v4  ;;  %v3240_v59 = vadd.f32 0.5, %v2920_v62  ;;  %v2921_v57 = vmul.f32 0.5, %v5537_v21  ;;  %v7522_v1 = vpop.xlane.xlu0 %4622  ;;  %v2284_v53 = vmul.f32 0.5, %v9078_v19 }
 0x1b0   : > { %9076 = vst [vmem:[#allocation42_spill] sm:$0xff] %v7516_v8  ;;  %v7525_v13 = vmul.f32 %v3080_v24, %v7177_v12  ;;  %v3081_v55 = vadd.f32 0.5, %v2761_v16  ;;  %v3763_v22 = vadd.f32 %v7426_v63, %v7406_v2  ;;  %v7530_v56 = vpop.xlane.xlu1 %4464  ;;  %v5539_v8 = vpop.eup %5538  ;;  %5546 = vtanh.f32 %v2124_v45  ;;  %v9081_v63 = vld [vmem:[#allocation3_spill] sm:$0xff]  ;;  %4861 = vst.msk [vmem:[%s7755_s5 + $0x290] sm:$0xff] %vm4778_vm1, %v7522_v1 }
 0x1b1   : > { %v7533_v4 = vmul.f32 %v3240_v59, %v7179_v46  ;;  %v3241_v10 = vadd.f32 0.5, %v2921_v57  ;;  %v3684_v62 = vadd.f32 %v7448_v23, %v7436_v61  ;;  %v7537_v21 = vpop.f32.mrb[96].mxu1  ;;  %v7539_v12 = vpop.f32.mrb[96].mxu0  ;;  %v2762_v2 = vmul.f32 0.5, %v5539_v8  ;;  %v9084_v23 = vld [vmem:[#allocation19_spill] sm:$0xff]  ;;  %4782 = vst.msk [vmem:[%s7755_s5 + $0x18] sm:$0xff] %vm4778_vm1, %v7530_v56 }
 0x1b2   : > { %9079 = vst [vmem:[#allocation9_spill] sm:$0xff] %v7537_v21  ;;  %9080 = vst [vmem:[#allocation18_spill] sm:$0xff] %v7539_v12  ;;  %v5541_v24 = vpop.eup %5540  ;;  %v7542_v16 = vmul.f32 %v3081_v55, %v7193_v14  ;;  %5548 = vtanh.f32 %v2284_v53  ;;  %4674 = vadd.xlane.f32.xlu0 %v3763_v22  ;;  %v2125_v51 = vmul.f32 0.5, %v9081_v63  ;;  %v7545_v46 = vpop.f32.mrb[97].mxu0  ;;  %v2285_v45 = vmul.f32 0.5, %v9084_v23  ;;  %v9085_v12 = vld [vmem:[#allocation4_spill] sm:$0xff] }
 0x1b3   : > { %9082 = vst [vmem:[#allocation3_spill] sm:$0xff] %v7545_v46  ;;  %v7547_v59 = vpop.f32.mrb[97].mxu1  ;;  %v7550_v57 = vmul.f32 %v3241_v10, %v7195_v15  ;;  %v2922_v61 = vmul.f32 0.5, %v5541_v24  ;;  %4516 = vadd.xlane.f32.xlu1 %v3684_v62  ;;  %v2126_v21 = vmul.f32 0.5, %v9085_v12  ;;  %v3082_v14 = vadd.f32 0.5, %v2762_v2  ;;  %v7560_v10 = vpop.xlane.xlu0 %4466 }
 0x1b4   : > { %9083 = vst [vmem:[#allocation43_spill] sm:$0xff] %v7547_v59  ;;  %5550 = vtanh.f32 %v2125_v51  ;;  %v2286_v8 = vmul.f32 0.5, %v7242_v29  ;;  %v3764_v55 = vadd.f32 %v7453_v34, %v7443_v60  ;;  %v3685_v22 = vadd.f32 %v7472_v49, %v7461_v6  ;;  %v7562_v62 = vpop.f32.mrb[98].mxu1  ;;  %v7569_v60 = vpop.f32.mrb[98].mxu0  ;;  %v9089_v6 = vld [vmem:[#allocation10_spill] sm:$0xff]  ;;  %4783 = vst.msk [vmem:[%s7755_s5 + $0x20] sm:$0xff] %vm4778_vm1, %v7560_v10 }
 0x1b5   : > { %v3242_v53 = vadd.f32 0.5, %v2922_v61  ;;  %5552 = vtanh.f32 %v2285_v45  ;;  %v2127_v15 = vmul.f32 0.5, %v7251_v33  ;;  %9086 = vst [vmem:[#allocation19_spill] sm:$0xff] %v7562_v62  ;;  %v7565_v24 = vmul.f32 %v3082_v14, %v7200_v30  ;;  %9087 = vst [vmem:[#allocation4_spill] sm:$0xff] %v7569_v60  ;;  %v7571_v34 = vpop.f32.mrb[99].mxu1  ;;  %v7581_v14 = vpop.f32.mrb[99].mxu0 }
 0x1b6   : > { %5554 = vtanh.f32 %v2126_v21  ;;  %v2287_v51 = vmul.f32 0.5, %v7253_v39  ;;  %v2128_v2 = vmul.f32 0.5, %v7258_v35  ;;  %9088 = vst [vmem:[#allocation44_spill] sm:$0xff] %v7571_v34  ;;  %4518 = vadd.xlane.f32.xlu0 %v3685_v22  ;;  %v2288_v45 = vmul.f32 0.5, %v9089_v6  ;;  %v7579_v21 = vpop.xlane.xlu1 %4624  ;;  %9090 = vst [vmem:[#allocation10_spill] sm:$0xff] %v7581_v14  ;;  %v9093_v59 = vld [vmem:[#allocation22_spill] sm:$0xff] }
 0x1b7   : > { %v5543_v61 = vpop.eup %5542  ;;  %v7574_v49 = vmul.f32 %v3242_v53, %v9064_v58  ;;  %5556 = vtanh.f32 %v2286_v8  ;;  %4676 = vadd.xlane.f32.xlu1 %v3764_v55  ;;  %v3765_v30 = vadd.f32 %v7479_v43, %v7469_v44  ;;  %v3686_v34 = vadd.f32 %v7501_v37, %v7488_v20  ;;  %v9091_v58 = vld [vmem:[#allocation20_spill] sm:$0xff]  ;;  %v9092_v55 = vld [vmem:[#allocation21_spill] sm:$0xff]  ;;  %v7588_v40 = vpop.f32.mrb[100].mxu1  ;;  %v9096_v14 = vld [vmem:[#allocation23_spill] sm:$0xff]  ;;  %4862 = vst.msk [vmem:[%s7755_s5 + $0x298] sm:$0xff] %vm4778_vm1, %v7579_v21 }
 0x1b8   : > { %v5545_v62 = vpop.eup %5544  ;;  %v2763_v60 = vmul.f32 0.5, %v5543_v61  ;;  %5558 = vtanh.f32 %v2127_v15  ;;  %v2129_v53 = vmul.f32 0.5, %v9091_v58  ;;  %v2289_v22 = vmul.f32 0.5, %v9092_v55  ;;  %9094 = vst [vmem:[#allocation20_spill] sm:$0xff] %v7588_v40  ;;  %v7590_v43 = vpop.f32.mrb[100].mxu0 }
 0x1b9   : > { %v2923_v8 = vmul.f32 0.5, %v5545_v62  ;;  %5560 = vtanh.f32 %v2287_v51  ;;  %v2130_v46 = vmul.f32 0.5, %v9093_v59  ;;  %9095 = vst [vmem:[#allocation21_spill] sm:$0xff] %v7590_v43  ;;  %v2290_v61 = vmul.f32 0.5, %v9096_v14  ;;  %v7595_v20 = vpop.f32.mrb[101].mxu0  ;;  %v7597_v37 = vpop.f32.mrb[101].mxu1 }
 0x1ba   : > { %v3083_v44 = vadd.f32 0.5, %v2763_v60  ;;  %5562 = vtanh.f32 %v2128_v2  ;;  %v3766_v15 = vadd.f32 %v7505_v48, %v7497_v25  ;;  %9097 = vst [vmem:[#allocation22_spill] sm:$0xff] %v7595_v20  ;;  %9098 = vst [vmem:[#allocation23_spill] sm:$0xff] %v7597_v37  ;;  %v5547_v62 = vpop.eup %5546  ;;  %4678 = vadd.xlane.f32.xlu0 %v3765_v30  ;;  %v3687_v40 = vadd.f32 %v7525_v13, %v7512_v32  ;;  %v7602_v2 = vpop.xlane.xlu0 %4626 }
 0x1bb   : > { %v3243_v51 = vadd.f32 0.5, %v2923_v8  ;;  %5564 = vtanh.f32 %v2288_v45  ;;  %4520 = vadd.xlane.f32.xlu1 %v3686_v34  ;;  %v2131_v60 = vmul.f32 0.5, %v7297_v18  ;;  %v2764_v48 = vmul.f32 0.5, %v5547_v62  ;;  %v7612_v13 = vpop.xlane.xlu1 %4468  ;;  %v7614_v32 = vpop.f32.mrb[102].mxu1  ;;  %4863 = vst.msk [vmem:[%s7755_s5 + $0x2a0] sm:$0xff] %vm4778_vm1, %v7602_v2 }
 0x1bc   : > { %v5549_v43 = vpop.eup %5548  ;;  %v7605_v0 = vmul.f32 %v3083_v44, %v9071_v26  ;;  %5566 = vtanh.f32 %v2129_v53  ;;  %v2291_v25 = vmul.f32 0.5, %v7299_v41  ;;  %v2132_v34 = vmul.f32 0.5, %v7305_v28  ;;  %9099 = vst [vmem:[#allocation45_spill] sm:$0xff] %v7614_v32  ;;  %v9100_v26 = vld [vmem:[#allocation24_spill] sm:$0xff]  ;;  %v7619_v62 = vpop.f32.mrb[102].mxu0  ;;  %4784 = vst.msk [vmem:[%s7755_s5 + $0x28] sm:$0xff] %vm4778_vm1, %v7612_v13 }
 0x1bd   : > { %v7609_v8 = vmul.f32 %v3243_v51, %v9072_v52  ;;  %v2924_v45 = vmul.f32 0.5, %v5549_v43  ;;  %5568 = vtanh.f32 %v2289_v22  ;;  %v3084_v37 = vadd.f32 0.5, %v2764_v48  ;;  %9101 = vst [vmem:[#allocation24_spill] sm:$0xff] %v7619_v62  ;;  %v7621_v52 = vpop.f32.mrb[103].mxu1  ;;  %v7625_v48 = vpop.f32.mrb[103].mxu0 }
 0x1be   : > { %v5551_v30 = vpop.eup %5550  ;;  %5570 = vtanh.f32 %v2130_v46  ;;  %v2292_v44 = vmul.f32 0.5, %v9100_v26  ;;  %v3767_v53 = vadd.f32 %v7533_v4, %v7519_v11  ;;  %9102 = vst [vmem:[#allocation46_spill] sm:$0xff] %v7621_v52  ;;  %4522 = vadd.xlane.f32.xlu0 %v3687_v40  ;;  %v3688_v32 = vadd.f32 %v7565_v24, %v7542_v16  ;;  %9103 = vst [vmem:[#allocation47_spill] sm:$0xff] %v7625_v48  ;;  %v7631_v52 = vpop.xlane.xlu0 %4470 }
 0x1bf   : > { %v5553_v43 = vpop.eup %5552  ;;  %v3244_v22 = vadd.f32 0.5, %v2924_v45  ;;  %v2765_v51 = vmul.f32 0.5, %v5551_v30  ;;  %5572 = vtanh.f32 %v2290_v61  ;;  %4680 = vadd.xlane.f32.xlu1 %v3766_v15  ;;  %v7628_v20 = vmul.f32 %v3084_v37, %v9077_v36  ;;  %v7636_v16 = vpop.xlane.xlu1 %4628  ;;  %4785 = vst.msk [vmem:[%s7755_s5 + $0x30] sm:$0xff] %vm4778_vm1, %v7631_v52 }
 0x1c0   : > { %v5555_v46 = vpop.eup %5554  ;;  %v2925_v11 = vmul.f32 0.5, %v5553_v43  ;;  %5574 = vtanh.f32 %v2131_v60  ;;  %v2133_v4 = vmul.f32 0.5, %v7319_v38  ;;  %v7638_v24 = vpop.f32.mrb[104].mxu1  ;;  %v2293_v60 = vmul.f32 0.5, %v7321_v27  ;;  %4864 = vst.msk [vmem:[%s7755_s5 + $0x2a8] sm:$0xff] %vm4778_vm1, %v7636_v16 }
 0x1c1   : > { %v5557_v45 = vpop.eup %5556  ;;  %v7634_v61 = vmul.f32 %v3244_v22, %v9078_v19  ;;  %v3085_v40 = vadd.f32 0.5, %v2765_v51  ;;  %v2766_v15 = vmul.f32 0.5, %v5555_v46  ;;  %5576 = vtanh.f32 %v2291_v25  ;;  %9104 = vst [vmem:[#allocation48_spill] sm:$0xff] %v7638_v24  ;;  %v7641_v43 = vpop.f32.mrb[104].mxu0 }
 0x1c2   : > { %v5559_v30 = vpop.eup %5558  ;;  %v3245_v36 = vadd.f32 0.5, %v2925_v11  ;;  %v2926_v37 = vmul.f32 0.5, %v5557_v45  ;;  %5578 = vtanh.f32 %v2132_v34  ;;  %9105 = vst [vmem:[#allocation49_spill] sm:$0xff] %v7641_v43  ;;  %v7643_v48 = vpop.f32.mrb[105].mxu1  ;;  %4682 = vadd.xlane.f32.xlu0 %v3767_v53  ;;  %v2299_v21 = vmul.f32 0.5, %v7390_v42 }
 0x1c3   : > { %9106 = vst [vmem:[#allocation50_spill] sm:$0xff] %v7643_v48  ;;  %v5561_v62 = vpop.eup %5560  ;;  %v7646_v19 = vmul.f32 %v3085_v40, %v9081_v63  ;;  %v3086_v22 = vadd.f32 0.5, %v2766_v15  ;;  %v2767_v25 = vmul.f32 0.5, %v5559_v30  ;;  %5580 = vtanh.f32 %v2292_v44  ;;  %4524 = vadd.xlane.f32.xlu1 %v3688_v32  ;;  %v7648_v51 = vpop.f32.mrb[105].mxu0  ;;  %v9109_v30 = vld [vmem:[#allocation5_spill] sm:$0xff] }
 0x1c4   : > { %9107 = vst [vmem:[#allocation51_spill] sm:$0xff] %v7648_v51  ;;  %v5563_v46 = vpop.eup %5562  ;;  %v7651_v34 = vmul.f32 %v3245_v36, %v9084_v23  ;;  %v3246_v11 = vadd.f32 0.5, %v2926_v37  ;;  %v2927_v45 = vmul.f32 0.5, %v5561_v62  ;;  %5582 = vtanh.f32 %v2133_v4  ;;  %v7653_v43 = vpop.xlane.xlu0 %4630 }
 0x1c5   : > { %v5565_v48 = vpop.eup %5564  ;;  %v7656_v63 = vmul.f32 %v3086_v22, %v9085_v12  ;;  %v3087_v40 = vadd.f32 0.5, %v2767_v25  ;;  %v2768_v15 = vmul.f32 0.5, %v5563_v46  ;;  %5584 = vtanh.f32 %v2293_v60  ;;  %v7658_v32 = vpop.xlane.xlu1 %4472  ;;  %4865 = vst.msk [vmem:[%s7755_s5 + $0x2b0] sm:$0xff] %vm4778_vm1, %v7653_v43  ;;  %v9127_v43 = vld [vmem:[#allocation25_spill] sm:$0xff] }
 0x1c6   : > { %v7660_v44 = vpop.f32.mrb[106].mxu1  ;;  %v5567_v53 = vpop.eup %5566  ;;  %v7663_v23 = vmul.f32 %v3246_v11, %v7242_v29  ;;  %v3247_v62 = vadd.f32 0.5, %v2927_v45  ;;  %v2928_v4 = vmul.f32 0.5, %v5565_v48  ;;  %v2134_v36 = vmul.f32 0.5, %v9109_v30  ;;  %4786 = vst.msk [vmem:[%s7755_s5 + $0x38] sm:$0xff] %vm4778_vm1, %v7658_v32  ;;  %v9128_v32 = vld [vmem:[#allocation14_spill] sm:$0xff] }
 0x1c7   : > { %9108 = vst [vmem:[#allocation52_spill] sm:$0xff] %v7660_v44  ;;  %v7666_v37 = vpop.f32.mrb[106].mxu0  ;;  %v7668_v12 = vpop.f32.mrb[107].mxu1  ;;  %v7671_v60 = vmul.f32 %v3087_v40, %v7251_v33  ;;  %v3088_v25 = vadd.f32 0.5, %v2768_v15  ;;  %v2769_v46 = vmul.f32 0.5, %v5567_v53  ;;  %v9112_v44 = vld [vmem:[#allocation25_spill] sm:$0xff] }
 0x1c8   : > { %9110 = vst [vmem:[#allocation5_spill] sm:$0xff] %v7666_v37  ;;  %9111 = vst [vmem:[#allocation53_spill] sm:$0xff] %v7668_v12  ;;  %v5569_v22 = vpop.eup %5568  ;;  %v2294_v51 = vmul.f32 0.5, %v9112_v44  ;;  %v7675_v29 = vpop.f32.mrb[107].mxu0  ;;  %v7678_v48 = vmul.f32 %v3247_v62, %v7253_v39  ;;  %v3248_v45 = vadd.f32 0.5, %v2928_v4  ;;  %5586 = vtanh.f32 %v2134_v36 }
 0x1c9   : > { %9113 = vst [vmem:[#allocation54_spill] sm:$0xff] %v7675_v29  ;;  %v5571_v11 = vpop.eup %5570  ;;  %v2929_v24 = vmul.f32 0.5, %v5569_v22  ;;  %v7681_v12 = vpop.xlane.xlu0 %4474  ;;  %v7684_v33 = vmul.f32 %v3088_v25, %v7258_v35  ;;  %v3089_v40 = vadd.f32 0.5, %v2769_v46  ;;  %v3768_v36 = vadd.f32 %v7574_v49, %v7550_v57 }
 0x1ca   : > { %v5573_v37 = vpop.eup %5572  ;;  %v2770_v15 = vmul.f32 0.5, %v5571_v11  ;;  %5588 = vtanh.f32 %v2294_v51  ;;  %v7686_v53 = vpop.xlane.xlu1 %4632  ;;  %v7691_v39 = vmul.f32 %v3248_v45, %v9089_v6  ;;  %v3689_v6 = vadd.f32 %v7628_v20, %v7605_v0  ;;  %v9119_v20 = vld [vmem:[#allocation26_spill] sm:$0xff]  ;;  %4787 = vst.msk [vmem:[%s7755_s5 + $0x40] sm:$0xff] %vm4778_vm1, %v7681_v12 }
 0x1cb   : > { %v7688_v29 = vpop.f32.mrb[108].mxu1  ;;  %v5575_v44 = vpop.eup %5574  ;;  %v3249_v62 = vadd.f32 0.5, %v2929_v24  ;;  %v2930_v4 = vmul.f32 0.5, %v5573_v37  ;;  %v7700_v51 = vmul.f32 %v3089_v40, %v9091_v58  ;;  %4684 = vadd.xlane.f32.xlu1 %v3768_v36  ;;  %4866 = vst.msk [vmem:[%s7755_s5 + $0x2b8] sm:$0xff] %vm4778_vm1, %v7686_v53  ;;  %v3770_v50 = vadd.f32 %v7663_v23, %v7651_v34 }
 0x1cc   : > { %9114 = vst [vmem:[#allocation55_spill] sm:$0xff] %v7688_v29  ;;  %v7695_v22 = vpop.f32.mrb[108].mxu0  ;;  %v7697_v35 = vpop.f32.mrb[109].mxu1  ;;  %v3090_v46 = vadd.f32 0.5, %v2770_v15  ;;  %v2771_v11 = vmul.f32 0.5, %v5575_v44  ;;  %4526 = vadd.xlane.f32.xlu0 %v3689_v6  ;;  %v2295_v15 = vmul.f32 0.5, %v9119_v20  ;;  %v3691_v47 = vadd.f32 %v7684_v33, %v7671_v60 }
 0x1cd   : > { %9115 = vst [vmem:[#allocation56_spill] sm:$0xff] %v7695_v22  ;;  %9116 = vst [vmem:[#allocation57_spill] sm:$0xff] %v7697_v35  ;;  %v5577_v25 = vpop.eup %5576  ;;  %v7704_v45 = vpop.f32.mrb[109].mxu0  ;;  %v7707_v37 = vmul.f32 %v3249_v62, %v9092_v55  ;;  %v3250_v57 = vadd.f32 0.5, %v2930_v4  ;;  %v9118_v22 = vld [vmem:[#allocation11_spill] sm:$0xff]  ;;  %v2139_v2 = vmul.f32 0.5, %v7392_v54  ;;  %v3771_v53 = vadd.f32 %v7691_v39, %v7678_v48 }
 0x1ce   : > { %9117 = vst [vmem:[#allocation58_spill] sm:$0xff] %v7704_v45  ;;  %v5579_v24 = vpop.eup %5578  ;;  %v2931_v49 = vmul.f32 0.5, %v5577_v25  ;;  %v2135_v35 = vmul.f32 0.5, %v9118_v22  ;;  %v7715_v44 = vmul.f32 %v3090_v46, %v9093_v59  ;;  %v3091_v40 = vadd.f32 0.5, %v2771_v11  ;;  %v7718_v55 = vpop.f32.mrb[110].mxu1  ;;  %v9132_v48 = vld [vmem:[#allocation28_spill] sm:$0xff] }
 0x1cf   : > { %v5581_v58 = vpop.eup %5580  ;;  %v2772_v0 = vmul.f32 0.5, %v5579_v24  ;;  %9120 = vst [vmem:[#allocation11_spill] sm:$0xff] %v7718_v55  ;;  %v7721_v4 = vmul.f32 %v3250_v57, %v9096_v14  ;;  %v7723_v45 = vpop.f32.mrb[110].mxu0  ;;  %v2140_v23 = vmul.f32 0.5, %v9128_v32  ;;  %v2142_v39 = vmul.f32 0.5, %v9132_v48 }
 0x1d0   : > { %v5583_v62 = vpop.eup %5582  ;;  %v3251_v36 = vadd.f32 0.5, %v2931_v49  ;;  %v2932_v25 = vmul.f32 0.5, %v5581_v58  ;;  %5590 = vtanh.f32 %v2135_v35  ;;  %9121 = vst [vmem:[#allocation26_spill] sm:$0xff] %v7723_v45  ;;  %v7725_v29 = vpop.f32.mrb[111].mxu1  ;;  %v7728_v46 = vmul.f32 %v3091_v40, %v7297_v18  ;;  %v9124_v49 = vld [vmem:[#allocation12_spill] sm:$0xff]  ;;  %v9125_v40 = vld [vmem:[#allocation27_spill] sm:$0xff] }
 0x1d1   : > { %9122 = vst [vmem:[#allocation59_spill] sm:$0xff] %v7725_v29  ;;  %v5585_v59 = vpop.eup %5584  ;;  %v3092_v11 = vadd.f32 0.5, %v2772_v0  ;;  %v2773_v6 = vmul.f32 0.5, %v5583_v62  ;;  %5592 = vtanh.f32 %v2295_v15  ;;  %v4477_v24 = vpop.xlane.xlu1 %4476  ;;  %v2136_v58 = vmul.f32 0.5, %v9124_v49 }
 0x1d2   : > { %v7731_v55 = vpop.f32.mrb[111].mxu0  ;;  %v7734_v14 = vmul.f32 %v3251_v36, %v7299_v41  ;;  %v3252_v57 = vadd.f32 0.5, %v2932_v25  ;;  %v2933_v35 = vmul.f32 0.5, %v5585_v59  ;;  %v4635_v45 = vpop.xlane.xlu0 %4634  ;;  %v2296_v0 = vmul.f32 0.5, %v9125_v40  ;;  %4788 = vst.msk [vmem:[%s7755_s5 + $0x48] sm:$0xff] %vm4778_vm1, %v4477_v24 }
 0x1d3   : > { %9123 = vst [vmem:[#allocation60_spill] sm:$0xff] %v7731_v55  ;;  %v7738_v29 = vmul.f32 %v3092_v11, %v7305_v28  ;;  %v3093_v18 = vadd.f32 0.5, %v2773_v6  ;;  %v3769_v15 = vadd.f32 %v7634_v61, %v7609_v8  ;;  %v7743_v62 = vpop.f32.mrb[112].mxu1  ;;  %v7745_v55 = vpop.f32.mrb[112].mxu0  ;;  %5594 = vtanh.f32 %v2136_v58  ;;  %4867 = vst.msk [vmem:[%s7755_s5 + $0x2c0] sm:$0xff] %vm4778_vm1, %v4635_v45 }
 0x1d4   : > { %v5587_v41 = vpop.eup %5586  ;;  %v7748_v36 = vmul.f32 %v3252_v57, %v9100_v26  ;;  %v3253_v25 = vadd.f32 0.5, %v2933_v35  ;;  %v3690_v28 = vadd.f32 %v7656_v63, %v7646_v19  ;;  %v7757_v8 = vpop.f32.mrb[113].mxu0  ;;  %5596 = vtanh.f32 %v2296_v0  ;;  %v9126_v35 = vld [vmem:[#allocation13_spill] sm:$0xff] }
 0x1d5   : > { %v7759_v61 = vpop.f32.mrb[113].mxu1  ;;  %v5589_v59 = vpop.eup %5588  ;;  %v7762_v26 = vmul.f32 %v3093_v18, %v7319_v38  ;;  %v2774_v11 = vmul.f32 0.5, %v5587_v41  ;;  %4686 = vadd.xlane.f32.xlu0 %v3769_v15  ;;  %v2297_v19 = vmul.f32 0.5, %v7368_v5  ;;  %v2137_v38 = vmul.f32 0.5, %v7370_v17  ;;  %v9130_v15 = vld [vmem:[#allocation6_spill] sm:$0xff] }
 0x1d6   : > { %v7766_v63 = vmul.f32 %v3253_v25, %v7321_v27  ;;  %v2934_v6 = vmul.f32 0.5, %v5589_v59  ;;  %4528 = vadd.xlane.f32.xlu1 %v3690_v28  ;;  %v2138_v27 = vmul.f32 0.5, %v7378_v7  ;;  %v2298_v58 = vmul.f32 0.5, %v9126_v35  ;;  %v4637_v31 = vpop.xlane.xlu1 %4636  ;;  %v7826_v9 = vpop.f32.mrb[114].mxu1  ;;  %v9131_v25 = vld [vmem:[#allocation16_spill] sm:$0xff] }
 0x1d7   : > { %v3094_v57 = vadd.f32 0.5, %v2774_v11  ;;  %5598 = vtanh.f32 %v2297_v19  ;;  %4868 = vst.msk [vmem:[%s7755_s5 + $0x2c8] sm:$0xff] %vm4778_vm1, %v4637_v31  ;;  %v4479_v1 = vpop.xlane.xlu0 %4478  ;;  %v7834_v56 = vpop.f32.mrb[114].mxu0  ;;  %v3692_v45 = vadd.f32 %v7715_v44, %v7700_v51  ;;  %v2301_v41 = vmul.f32 0.5, %v9130_v15  ;;  %v9133_v51 = vld [vmem:[#allocation29_spill] sm:$0xff] }
 0x1d8   : > { %v3254_v3 = vadd.f32 0.5, %v2934_v6  ;;  %5600 = vtanh.f32 %v2137_v38  ;;  %4789 = vst.msk [vmem:[%s7755_s5 + $0x50] sm:$0xff] %vm4778_vm1, %v4479_v1  ;;  %v7843_v13 = vpop.f32.mrb[115].mxu0  ;;  %v7845_v52 = vpop.f32.mrb[115].mxu1  ;;  %v2141_v28 = vmul.f32 0.5, %v9131_v25  ;;  %v2302_v44 = vmul.f32 0.5, %v9133_v51 }
 0x1d9   : > { %v7837_v10 = vmul.f32 %v3094_v57, %v9109_v30  ;;  %5602 = vtanh.f32 %v2138_v27  ;;  %4530 = vadd.xlane.f32.xlu0 %v3691_v47  ;;  %v9129_v30 = vld [vmem:[#allocation15_spill] sm:$0xff]  ;;  %v7856_v24 = vpop.f32.mrb[116].mxu1  ;;  %v7858_v18 = vpop.f32.mrb[116].mxu0  ;;  %v3772_v57 = vadd.f32 %v7721_v4, %v7707_v37  ;;  %v3693_v27 = vadd.f32 %v7738_v29, %v7728_v46  ;;  %v9134_v47 = vld [vmem:[#allocation30_spill] sm:$0xff] }
 0x1da   : > { %v5591_v16 = vpop.eup %5590  ;;  %v7848_v34 = vmul.f32 %v3254_v3, %v9127_v43  ;;  %5604 = vtanh.f32 %v2298_v58  ;;  %4688 = vadd.xlane.f32.xlu1 %v3770_v50  ;;  %v2300_v12 = vmul.f32 0.5, %v9129_v30  ;;  %v7862_v59 = vpop.f32.mrb[117].mxu0  ;;  %v2303_v1 = vmul.f32 0.5, %v9134_v47  ;;  %v9135_v29 = vld [vmem:[#allocation31_spill] sm:$0xff] }
 0x1db   : > { %v5593_v60 = vpop.eup %5592  ;;  %v2775_v33 = vmul.f32 0.5, %v5591_v16  ;;  %5606 = vtanh.f32 %v2299_v21  ;;  %v7864_v11 = vpop.f32.mrb[117].mxu1  ;;  %v2143_v4 = vmul.f32 0.5, %v9135_v29 }
 0x1dc   : > { %v2935_v0 = vmul.f32 0.5, %v5593_v60  ;;  %5608 = vtanh.f32 %v2139_v2  ;;  %v4639_v58 = vpop.xlane.xlu0 %4638  ;;  %v4481_v21 = vpop.xlane.xlu1 %4480 }
 0x1dd   : > { %v3095_v19 = vadd.f32 0.5, %v2775_v33  ;;  %5610 = vtanh.f32 %v2140_v23  ;;  %v5595_v6 = vpop.eup %5594  ;;  %4690 = vadd.xlane.f32.xlu0 %v3771_v53  ;;  %4869 = vst.msk [vmem:[%s7755_s5 + $0x2d0] sm:$0xff] %vm4778_vm1, %v4639_v58  ;;  %v7878_v2 = vpop.f32.mrb[118].mxu1  ;;  %4790 = vst.msk [vmem:[%s7755_s5 + $0x58] sm:$0xff] %vm4778_vm1, %v4481_v21  ;;  %v9137_v33 = vld [vmem:[#allocation33_spill] sm:$0xff] }
 0x1de   : > { %v3255_v38 = vadd.f32 0.5, %v2935_v0  ;;  %5612 = vtanh.f32 %v2300_v12  ;;  %4532 = vadd.xlane.f32.xlu1 %v3692_v45  ;;  %v5597_v31 = vpop.eup %5596  ;;  %v2776_v50 = vmul.f32 0.5, %v5595_v6  ;;  %v7888_v46 = vpop.f32.mrb[119].mxu1  ;;  %v9136_v12 = vld [vmem:[#allocation32_spill] sm:$0xff]  ;;  %v2304_v53 = vmul.f32 0.5, %v9137_v33 }
 0x1df   : > { %v7873_v3 = vmul.f32 %v3095_v19, %v9118_v22  ;;  %5614 = vtanh.f32 %v2301_v41  ;;  %v2936_v37 = vmul.f32 0.5, %v5597_v31  ;;  %v7886_v22 = vpop.f32.mrb[118].mxu0  ;;  %v2144_v60 = vmul.f32 0.5, %v9136_v12 }
 0x1e0   : > { %v7881_v16 = vmul.f32 %v3255_v38, %v9119_v20  ;;  %5616 = vtanh.f32 %v2141_v28  ;;  %v3096_v23 = vadd.f32 0.5, %v2776_v50  ;;  %v7892_v45 = vpop.f32.mrb[119].mxu0  ;;  %v3773_v28 = vadd.f32 %v7748_v36, %v7734_v14  ;;  %v4641_v58 = vpop.xlane.xlu1 %4640 }
 0x1e1   : > { %v5599_v43 = vpop.eup %5598  ;;  %5618 = vtanh.f32 %v2142_v39  ;;  %v3256_v0 = vadd.f32 0.5, %v2936_v37  ;;  %4534 = vadd.xlane.f32.xlu0 %v3693_v27  ;;  %v3694_v38 = vadd.f32 %v7837_v10, %v7762_v26  ;;  %v4483_v31 = vpop.xlane.xlu0 %4482  ;;  %4870 = vst.msk [vmem:[%s7755_s5 + $0x2d8] sm:$0xff] %vm4778_vm1, %v4641_v58  ;;  %v9139_v10 = vld [vmem:[#allocation34_spill] sm:$0xff] }
 0x1e2   : > { %v5601_v20 = vpop.eup %5600  ;;  %v2937_v41 = vmul.f32 0.5, %v5599_v43  ;;  %5620 = vtanh.f32 %v2302_v44  ;;  %4692 = vadd.xlane.f32.xlu1 %v3772_v57  ;;  %v7897_v39 = vmul.f32 %v3096_v23, %v9124_v49  ;;  %4791 = vst.msk [vmem:[%s7755_s5 + $0x60] sm:$0xff] %vm4778_vm1, %v4483_v31  ;;  %v7908_v14 = vpop.f32.mrb[120].mxu1  ;;  %v2305_v21 = vmul.f32 0.5, %v9139_v10 }
 0x1e3   : > { %v5603_v19 = vpop.eup %5602  ;;  %v2777_v6 = vmul.f32 0.5, %v5601_v20  ;;  %5622 = vtanh.f32 %v2303_v1  ;;  %v7902_v44 = vmul.f32 %v3256_v0, %v9125_v40  ;;  %v7910_v49 = vpop.f32.mrb[120].mxu0 }
 0x1e4   : > { %v5605_v50 = vpop.eup %5604  ;;  %v3257_v57 = vadd.f32 0.5, %v2937_v41  ;;  %v2778_v27 = vmul.f32 0.5, %v5603_v19  ;;  %5624 = vtanh.f32 %v2143_v4  ;;  %9138 = vst [vmem:[#allocation12_spill] sm:$0xff] %v7910_v49  ;;  %v7913_v37 = vpop.f32.mrb[121].mxu0 }
 0x1e5   : > { %v5607_v36 = vpop.eup %5606  ;;  %v3097_v1 = vadd.f32 0.5, %v2777_v6  ;;  %v2938_v26 = vmul.f32 0.5, %v5605_v50  ;;  %5626 = vtanh.f32 %v2144_v60  ;;  %9140 = vst [vmem:[#allocation27_spill] sm:$0xff] %v7913_v37  ;;  %v7915_v40 = vpop.f32.mrb[121].mxu1  ;;  %4694 = vadd.xlane.f32.xlu0 %v3773_v28 }
 0x1e6   : > { %9141 = vst [vmem:[#allocation13_spill] sm:$0xff] %v7915_v40  ;;  %v5609_v43 = vpop.eup %5608  ;;  %v7918_v4 = vmul.f32 %v3257_v57, %v7368_v5  ;;  %v3098_v23 = vadd.f32 0.5, %v2778_v27  ;;  %v2939_v20 = vmul.f32 0.5, %v5607_v36  ;;  %5628 = vtanh.f32 %v2304_v53  ;;  %4536 = vadd.xlane.f32.xlu1 %v3694_v38  ;;  %v4643_v6 = vpop.xlane.xlu0 %4642  ;;  %v9142_v27 = vld [vmem:[#allocation35_spill] sm:$0xff]  ;;  %v9148_v40 = vld [vmem:[#allocation36_spill] sm:$0xff] }
 0x1e7   : > { %v5611_v0 = vpop.eup %5610  ;;  %v7921_v60 = vmul.f32 %v3097_v1, %v7370_v17  ;;  %v3258_v41 = vadd.f32 0.5, %v2938_v26  ;;  %v2779_v19 = vmul.f32 0.5, %v5609_v43  ;;  %5630 = vtanh.f32 %v2305_v21  ;;  %v4485_v58 = vpop.xlane.xlu1 %4484  ;;  %4871 = vst.msk [vmem:[%s7755_s5 + $0x2e0] sm:$0xff] %vm4778_vm1, %v4643_v6 }
 0x1e8   : > { %v5613_v31 = vpop.eup %5612  ;;  %v7924_v5 = vmul.f32 %v3098_v23, %v7378_v7  ;;  %v3259_v50 = vadd.f32 0.5, %v2939_v20  ;;  %v2780_v57 = vmul.f32 0.5, %v5611_v0  ;;  %v2145_v53 = vmul.f32 0.5, %v9142_v27  ;;  %4792 = vst.msk [vmem:[%s7755_s5 + $0x68] sm:$0xff] %vm4778_vm1, %v4485_v58  ;;  %v7931_v28 = vpop.f32.mrb[122].mxu1  ;;  %v9145_v7 = vld [vmem:[#allocation17_spill] sm:$0xff] }
 0x1e9   : > { %9143 = vst [vmem:[#allocation25_spill] sm:$0xff] %v7931_v28  ;;  %v7933_v17 = vpop.f32.mrb[122].mxu0  ;;  %v5615_v38 = vpop.eup %5614  ;;  %v7936_v36 = vmul.f32 %v3258_v41, %v9126_v35  ;;  %v3099_v1 = vadd.f32 0.5, %v2779_v19  ;;  %v2940_v26 = vmul.f32 0.5, %v5613_v31  ;;  %v2146_v21 = vmul.f32 0.5, %v9145_v7 }
 0x1ea   : > { %9144 = vst [vmem:[#allocation14_spill] sm:$0xff] %v7933_v17  ;;  %v7939_v43 = vpop.f32.mrb[123].mxu0  ;;  %v7941_v23 = vpop.f32.mrb[123].mxu1  ;;  %v7944_v0 = vmul.f32 %v3259_v50, %v7390_v42  ;;  %v3100_v6 = vadd.f32 0.5, %v2780_v57  ;;  %v2941_v58 = vmul.f32 0.5, %v5615_v38  ;;  %5632 = vtanh.f32 %v2145_v53 }
 0x1eb   : > { %9146 = vst [vmem:[#allocation15_spill] sm:$0xff] %v7939_v43  ;;  %9147 = vst [vmem:[#allocation6_spill] sm:$0xff] %v7941_v23  ;;  %v5617_v20 = vpop.eup %5616  ;;  %v7947_v35 = vmul.f32 %v3099_v1, %v7392_v54  ;;  %v3260_v41 = vadd.f32 0.5, %v2940_v26  ;;  %5634 = vtanh.f32 %v2146_v21  ;;  %v4645_v31 = vpop.xlane.xlu1 %4644  ;;  %v2306_v57 = vmul.f32 0.5, %v9148_v40 }
 0x1ec   : > { %v5619_v17 = vpop.eup %5618  ;;  %v2781_v19 = vmul.f32 0.5, %v5617_v20  ;;  %v4487_v43 = vpop.xlane.xlu0 %4486  ;;  %v7950_v23 = vmul.f32 %v3100_v6, %v9128_v32  ;;  %v3261_v42 = vadd.f32 0.5, %v2941_v58  ;;  %4872 = vst.msk [vmem:[%s7755_s5 + $0x2e8] sm:$0xff] %vm4778_vm1, %v4645_v31  ;;  %v3774_v32 = vadd.f32 %v7848_v34, %v7766_v63 }
 0x1ed   : > { %v5621_v28 = vpop.eup %5620  ;;  %v2782_v50 = vmul.f32 0.5, %v5619_v17  ;;  %4793 = vst.msk [vmem:[%s7755_s5 + $0x70] sm:$0xff] %vm4778_vm1, %v4487_v43  ;;  %v7957_v53 = vpop.f32.mrb[124].mxu1  ;;  %v7962_v1 = vmul.f32 %v3260_v41, %v9129_v30  ;;  %5636 = vtanh.f32 %v2306_v57  ;;  %v3695_v63 = vadd.f32 %v7897_v39, %v7873_v3 }
 0x1ee   : > { %9149 = vst [vmem:[#allocation16_spill] sm:$0xff] %v7957_v53  ;;  %v7959_v54 = vpop.f32.mrb[124].mxu0  ;;  %v5623_v38 = vpop.eup %5622  ;;  %v3101_v26 = vadd.f32 0.5, %v2781_v19  ;;  %v2942_v21 = vmul.f32 0.5, %v5621_v28  ;;  %v7971_v43 = vmul.f32 %v3261_v42, %v9130_v15  ;;  %4696 = vadd.xlane.f32.xlu1 %v3774_v32  ;;  %v9155_v32 = vld [vmem:[#allocation38_spill] sm:$0xff] }
 0x1ef   : > { %9150 = vst [vmem:[#allocation28_spill] sm:$0xff] %v7959_v54  ;;  %v7966_v17 = vpop.f32.mrb[125].mxu0  ;;  %v7968_v20 = vpop.f32.mrb[125].mxu1  ;;  %v3102_v58 = vadd.f32 0.5, %v2782_v50  ;;  %v2943_v31 = vmul.f32 0.5, %v5623_v38  ;;  %v9153_v38 = vld [vmem:[#allocation37_spill] sm:$0xff]  ;;  %4538 = vadd.xlane.f32.xlu0 %v3695_v63 }
 0x1f0   : > { %9151 = vst [vmem:[#allocation29_spill] sm:$0xff] %v7966_v17  ;;  %9152 = vst [vmem:[#allocation30_spill] sm:$0xff] %v7968_v20  ;;  %v5625_v6 = vpop.eup %5624  ;;  %v7974_v41 = vmul.f32 %v3101_v26, %v9131_v25  ;;  %v3262_v28 = vadd.f32 0.5, %v2942_v21  ;;  %v4647_v34 = vpop.xlane.xlu0 %4646  ;;  %v2307_v57 = vmul.f32 0.5, %v9153_v38 }
 0x1f1   : > { %v5627_v30 = vpop.eup %5626  ;;  %v2783_v19 = vmul.f32 0.5, %v5625_v6  ;;  %v4489_v20 = vpop.xlane.xlu1 %4488  ;;  %v7979_v15 = vmul.f32 %v3102_v58, %v9132_v48  ;;  %v3263_v42 = vadd.f32 0.5, %v2943_v31  ;;  %4873 = vst.msk [vmem:[%s7755_s5 + $0x2f0] sm:$0xff] %vm4778_vm1, %v4647_v34  ;;  %v2147_v48 = vmul.f32 0.5, %v9155_v32 }
 0x1f2   : > { %v5629_v17 = vpop.eup %5628  ;;  %v2784_v50 = vmul.f32 0.5, %v5627_v30  ;;  %4794 = vst.msk [vmem:[%s7755_s5 + $0x78] sm:$0xff] %vm4778_vm1, %v4489_v20  ;;  %v7986_v25 = vpop.f32.mrb[126].mxu0  ;;  %v7989_v21 = vmul.f32 %v3262_v28, %v9133_v51  ;;  %5638 = vtanh.f32 %v2307_v57  ;;  %v3775_v57 = vadd.f32 %v7902_v44, %v7881_v16  ;;  %v9164_v16 = vld [vmem:[#allocation7_spill] sm:$0xff] }
 0x1f3   : > { %9154 = vst [vmem:[#allocation31_spill] sm:$0xff] %v7986_v25  ;;  %v5631_v26 = vpop.eup %5630  ;;  %v3103_v3 = vadd.f32 0.5, %v2783_v19  ;;  %v2944_v39 = vmul.f32 0.5, %v5629_v17  ;;  %v7992_v6 = vpop.f32.mrb[126].mxu1  ;;  %v7997_v31 = vmul.f32 %v3263_v42, %v9134_v47  ;;  %5640 = vtanh.f32 %v2147_v48  ;;  %v9159_v17 = vld [vmem:[#allocation39_spill] sm:$0xff]  ;;  %v9161_v42 = vld [vmem:[#allocation40_spill] sm:$0xff] }
 0x1f4   : > { %9156 = vst [vmem:[#allocation32_spill] sm:$0xff] %v7992_v6  ;;  %v7994_v58 = vpop.f32.mrb[127].mxu0  ;;  %v3104_v30 = vadd.f32 0.5, %v2784_v50  ;;  %v2945_v20 = vmul.f32 0.5, %v5631_v26  ;;  %v7999_v34 = vpop.f32.mrb[127].mxu1  ;;  %v2148_v19 = vmul.f32 0.5, %v9159_v17  ;;  %v3696_v48 = vadd.f32 %v7924_v5, %v7921_v60  ;;  %4698 = vadd.xlane.f32.xlu0 %v3775_v57 }
 0x1f5   : > { %9157 = vst [vmem:[#allocation33_spill] sm:$0xff] %v7994_v58  ;;  %9158 = vst [vmem:[#allocation34_spill] sm:$0xff] %v7999_v34  ;;  %v8002_v51 = vmul.f32 %v3103_v3, %v9135_v29  ;;  %v3264_v28 = vadd.f32 0.5, %v2944_v39  ;;  %v8005_v63 = vpop.f32.mrb[128].mxu0  ;;  %v5633_v25 = vpop.eup %5632  ;;  %v2308_v50 = vmul.f32 0.5, %v9161_v42  ;;  %v2309_v44 = vmul.f32 0.5, %v9164_v16 }
 0x1f6   : > { %9160 = vst [vmem:[#allocation35_spill] sm:$0xff] %v8005_v63  ;;  %v8008_v58 = vmul.f32 %v3104_v30, %v9136_v12  ;;  %v3265_v47 = vadd.f32 0.5, %v2945_v20  ;;  %v8013_v26 = vpop.f32.mrb[129].mxu0  ;;  %v5635_v29 = vpop.eup %5634  ;;  %v2785_v39 = vmul.f32 0.5, %v5633_v25  ;;  %5642 = vtanh.f32 %v2148_v19  ;;  %4540 = vadd.xlane.f32.xlu1 %v3696_v48  ;;  %v9168_v60 = vld [vmem:[#allocation42_spill] sm:$0xff]  ;;  %v9171_v34 = vld [vmem:[#allocation9_spill] sm:$0xff] }
 0x1f7   : > { %9162 = vst [vmem:[#allocation17_spill] sm:$0xff] %v8013_v26  ;;  %v8016_v3 = vmul.f32 %v3264_v28, %v9137_v33  ;;  %v8020_v63 = vpop.f32.mrb[128].mxu1  ;;  %v2786_v30 = vmul.f32 0.5, %v5635_v29  ;;  %5644 = vtanh.f32 %v2308_v50  ;;  %v9166_v33 = vld [vmem:[#allocation8_spill] sm:$0xff]  ;;  %v9167_v28 = vld [vmem:[#allocation41_spill] sm:$0xff]  ;;  %v2310_v5 = vmul.f32 0.5, %v9168_v60  ;;  %v4649_v29 = vpop.xlane.xlu1 %4648 }
 0x1f8   : > { %9163 = vst [vmem:[#allocation36_spill] sm:$0xff] %v8020_v63  ;;  %v8023_v12 = vmul.f32 %v3265_v47, %v9139_v10  ;;  %v8026_v20 = vpop.f32.mrb[129].mxu1  ;;  %v3105_v26 = vadd.f32 0.5, %v2785_v39  ;;  %v2149_v25 = vmul.f32 0.5, %v9166_v33  ;;  %v2150_v19 = vmul.f32 0.5, %v9167_v28  ;;  %v8031_v63 = vpop.f32.mrb[130].mxu0 }
 0x1f9   : > { %9165 = vst [vmem:[#allocation37_spill] sm:$0xff] %v8026_v20  ;;  %9169 = vst [vmem:[#allocation38_spill] sm:$0xff] %v8031_v63  ;;  %v5637_v10 = vpop.eup %5636  ;;  %v3106_v47 = vadd.f32 0.5, %v2786_v30  ;;  %5646 = vtanh.f32 %v2309_v44  ;;  %v3776_v50 = vadd.f32 %v7936_v36, %v7918_v4  ;;  %v3697_v57 = vadd.f32 %v7950_v23, %v7947_v35  ;;  %v8037_v39 = vpop.f32.mrb[131].mxu0  ;;  %v9173_v36 = vld [vmem:[#allocation18_spill] sm:$0xff]  ;;  %v9174_v35 = vld [vmem:[#allocation3_spill] sm:$0xff] }
 0x1fa   : > { %9170 = vst [vmem:[#allocation39_spill] sm:$0xff] %v8037_v39  ;;  %v8040_v48 = vmul.f32 %v3105_v26, %v9142_v27  ;;  %v2946_v20 = vmul.f32 0.5, %v5637_v10  ;;  %5648 = vtanh.f32 %v2149_v25  ;;  %v2311_v63 = vmul.f32 0.5, %v9171_v34  ;;  %4874 = vst.msk [vmem:[%s7755_s5 + $0x2f8] sm:$0xff] %vm4778_vm1, %v4649_v29  ;;  %v4491_v30 = vpop.xlane.xlu0 %4490  ;;  %v8045_v44 = vpop.f32.mrb[130].mxu1  ;;  %v9176_v25 = vld [vmem:[#allocation43_spill] sm:$0xff] }
 0x1fb   : > { %9172 = vst [vmem:[#allocation40_spill] sm:$0xff] %v8045_v44  ;;  %v8048_v4 = vmul.f32 %v3106_v47, %v9145_v7  ;;  %5650 = vtanh.f32 %v2150_v19  ;;  %4542 = vadd.xlane.f32.xlu0 %v3697_v57  ;;  %v2151_v23 = vmul.f32 0.5, %v9173_v36  ;;  %v2152_v39 = vmul.f32 0.5, %v9174_v35  ;;  %4795 = vst.msk [vmem:[%s7755_s5 + $0x80] sm:$0xff] %vm4778_vm1, %v4491_v30  ;;  %v8054_v27 = vpop.f32.mrb[131].mxu1  ;;  %4700 = vadd.xlane.f32.xlu1 %v3776_v50  ;;  %v8059_v7 = vpop.f32.mrb[132].mxu0 }
 0x1fc   : > { %9175 = vst [vmem:[#allocation7_spill] sm:$0xff] %v8054_v27  ;;  %v3266_v26 = vadd.f32 0.5, %v2946_v20  ;;  %5652 = vtanh.f32 %v2310_v5  ;;  %v2312_v10 = vmul.f32 0.5, %v9176_v25  ;;  %v3777_v29 = vadd.f32 %v7962_v1, %v7944_v0  ;;  %9177 = vst [vmem:[#allocation8_spill] sm:$0xff] %v8059_v7  ;;  %v5639_v19 = vpop.eup %5638  ;;  %v9178_v57 = vld [vmem:[#allocation19_spill] sm:$0xff]  ;;  %v9179_v30 = vld [vmem:[#allocation4_spill] sm:$0xff] }
 0x1fd   : > { %5654 = vtanh.f32 %v2311_v63  ;;  %v3698_v47 = vadd.f32 %v7979_v15, %v7974_v41  ;;  %v2313_v44 = vmul.f32 0.5, %v9178_v57  ;;  %v2153_v6 = vmul.f32 0.5, %v9179_v30  ;;  %v8065_v27 = vpop.f32.mrb[133].mxu0  ;;  %v5641_v20 = vpop.eup %5640  ;;  %v9181_v0 = vld [vmem:[#allocation10_spill] sm:$0xff]  ;;  %v9183_v41 = vld [vmem:[#allocation44_spill] sm:$0xff] }
 0x1fe   : > { %9180 = vst [vmem:[#allocation41_spill] sm:$0xff] %v8065_v27  ;;  %v8068_v5 = vmul.f32 %v3266_v26, %v9148_v40  ;;  %v2947_v50 = vmul.f32 0.5, %v5639_v19  ;;  %5656 = vtanh.f32 %v2151_v23  ;;  %v2154_v1 = vmul.f32 0.5, %v9181_v0  ;;  %v8071_v7 = vpop.f32.mrb[132].mxu1  ;;  %v9185_v26 = vld [vmem:[#allocation20_spill] sm:$0xff] }
 0x1ff   : > { %9182 = vst [vmem:[#allocation42_spill] sm:$0xff] %v8071_v7  ;;  %v2787_v63 = vmul.f32 0.5, %v5641_v20  ;;  %5658 = vtanh.f32 %v2152_v39  ;;  %4702 = vadd.xlane.f32.xlu0 %v3777_v29  ;;  %v2314_v15 = vmul.f32 0.5, %v9183_v41  ;;  %v3778_v54 = vadd.f32 %v7989_v21, %v7971_v43  ;;  %v8076_v27 = vpop.f32.mrb[133].mxu1  ;;  %4544 = vadd.xlane.f32.xlu1 %v3698_v47  ;;  %v4651_v39 = vpop.xlane.xlu0 %4650  ;;  %v9187_v43 = vld [vmem:[#allocation21_spill] sm:$0xff] }
 0x200   : > { %9184 = vst [vmem:[#allocation9_spill] sm:$0xff] %v8076_v27  ;;  %v5643_v53 = vpop.eup %5642  ;;  %v3267_v40 = vadd.f32 0.5, %v2947_v50  ;;  %5660 = vtanh.f32 %v2312_v10  ;;  %v3699_v23 = vadd.f32 %v8008_v58, %v8002_v51  ;;  %v2315_v19 = vmul.f32 0.5, %v9185_v26  ;;  %v8081_v29 = vpop.f32.mrb[134].mxu0  ;;  %4875 = vst.msk [vmem:[%s7755_s5 + $0x300] sm:$0xff] %vm4778_vm1, %v4651_v39  ;;  %v9189_v51 = vld [vmem:[#allocation22_spill] sm:$0xff] }
 0x201   : > { %9186 = vst [vmem:[#allocation18_spill] sm:$0xff] %v8081_v29  ;;  %v5645_v20 = vpop.eup %5644  ;;  %v3107_v7 = vadd.f32 0.5, %v2787_v63  ;;  %v2788_v37 = vmul.f32 0.5, %v5643_v53  ;;  %5662 = vtanh.f32 %v2313_v44  ;;  %v2155_v21 = vmul.f32 0.5, %v9187_v43  ;;  %v4493_v50 = vpop.xlane.xlu1 %4492  ;;  %v9190_v39 = vld [vmem:[#allocation23_spill] sm:$0xff] }
 0x202   : > { %v8086_v10 = vpop.f32.mrb[135].mxu0  ;;  %v8089_v47 = vmul.f32 %v3267_v40, %v9153_v38  ;;  %v2948_v58 = vmul.f32 0.5, %v5645_v20  ;;  %5664 = vtanh.f32 %v2153_v6  ;;  %v2156_v27 = vmul.f32 0.5, %v9189_v51  ;;  %4796 = vst.msk [vmem:[%s7755_s5 + $0x88] sm:$0xff] %vm4778_vm1, %v4493_v50  ;;  %v8094_v29 = vpop.f32.mrb[134].mxu1 }
 0x203   : > { %9188 = vst [vmem:[#allocation3_spill] sm:$0xff] %v8086_v10  ;;  %v5647_v53 = vpop.eup %5646  ;;  %v8097_v44 = vmul.f32 %v3107_v7, %v9155_v32  ;;  %v3108_v63 = vadd.f32 0.5, %v2788_v37  ;;  %5666 = vtanh.f32 %v2154_v1  ;;  %4546 = vadd.xlane.f32.xlu0 %v3699_v23  ;;  %v2316_v10 = vmul.f32 0.5, %v9190_v39  ;;  %v8100_v49 = vpop.f32.mrb[135].mxu1  ;;  %4704 = vadd.xlane.f32.xlu1 %v3778_v54 }
 0x204   : > { %9191 = vst [vmem:[#allocation43_spill] sm:$0xff] %v8100_v49  ;;  %v5649_v38 = vpop.eup %5648  ;;  %v3268_v40 = vadd.f32 0.5, %v2948_v58  ;;  %v2949_v6 = vmul.f32 0.5, %v5647_v53  ;;  %5668 = vtanh.f32 %v2314_v15  ;;  %v3779_v20 = vadd.f32 %v8016_v3, %v7997_v31  ;;  %v8104_v50 = vpop.f32.mrb[136].mxu0 }
 0x205   : > { %9192 = vst [vmem:[#allocation19_spill] sm:$0xff] %v8104_v50  ;;  %v5651_v32 = vpop.eup %5650  ;;  %v8107_v37 = vmul.f32 %v3108_v63, %v9159_v17  ;;  %v2789_v7 = vmul.f32 0.5, %v5649_v38  ;;  %5670 = vtanh.f32 %v2315_v19  ;;  %v3700_v1 = vadd.f32 %v8048_v4, %v8040_v48  ;;  %v4653_v23 = vpop.xlane.xlu1 %4652  ;;  %v9194_v4 = vld [vmem:[#allocation45_spill] sm:$0xff] }
 0x206   : > { %v4495_v58 = vpop.xlane.xlu0 %4494  ;;  %v5653_v15 = vpop.eup %5652  ;;  %v8112_v54 = vmul.f32 %v3268_v40, %v9161_v42  ;;  %v3269_v53 = vadd.f32 0.5, %v2949_v6  ;;  %v2790_v49 = vmul.f32 0.5, %v5651_v32  ;;  %5672 = vtanh.f32 %v2155_v21  ;;  %4876 = vst.msk [vmem:[%s7755_s5 + $0x308] sm:$0xff] %vm4778_vm1, %v4653_v23 }
 0x207   : > { %4797 = vst.msk [vmem:[%s7755_s5 + $0x90] sm:$0xff] %vm4778_vm1, %v4495_v58  ;;  %v8118_v31 = vpop.f32.mrb[136].mxu1  ;;  %v8120_v17 = vpop.f32.mrb[137].mxu0  ;;  %v3109_v19 = vadd.f32 0.5, %v2789_v7  ;;  %v2950_v48 = vmul.f32 0.5, %v5653_v15  ;;  %5674 = vtanh.f32 %v2156_v27  ;;  %4706 = vadd.xlane.f32.xlu0 %v3779_v20  ;;  %v2317_v63 = vmul.f32 0.5, %v9194_v4  ;;  %4548 = vadd.xlane.f32.xlu1 %v3700_v1 }
 0x208   : > { %9193 = vst [vmem:[#allocation4_spill] sm:$0xff] %v8120_v17  ;;  %v5655_v3 = vpop.eup %5654  ;;  %v8123_v42 = vpop.f32.mrb[137].mxu1  ;;  %v8126_v21 = vmul.f32 %v3269_v53, %v9164_v16  ;;  %v3110_v40 = vadd.f32 0.5, %v2790_v49  ;;  %5676 = vtanh.f32 %v2316_v10  ;;  %v9197_v10 = vld [vmem:[#allocation24_spill] sm:$0xff] }
 0x209   : > { %9195 = vst [vmem:[#allocation10_spill] sm:$0xff] %v8123_v42  ;;  %v5657_v38 = vpop.eup %5656  ;;  %v2951_v6 = vmul.f32 0.5, %v5655_v3  ;;  %v8128_v32 = vpop.f32.mrb[138].mxu0  ;;  %v8131_v27 = vmul.f32 %v3109_v19, %v9166_v33  ;;  %v3270_v20 = vadd.f32 0.5, %v2950_v48  ;;  %5678 = vtanh.f32 %v2317_v63 }
 0x20a   : > { %9196 = vst [vmem:[#allocation44_spill] sm:$0xff] %v8128_v32  ;;  %v5659_v7 = vpop.eup %5658  ;;  %v2791_v23 = vmul.f32 0.5, %v5657_v38  ;;  %v4655_v58 = vpop.xlane.xlu0 %4654  ;;  %v8134_v16 = vmul.f32 %v3110_v40, %v9167_v28  ;;  %v2157_v3 = vmul.f32 0.5, %v9197_v10  ;;  %v9200_v28 = vld [vmem:[#allocation47_spill] sm:$0xff] }
 0x20b   : > { %v4497_v15 = vpop.xlane.xlu1 %4496  ;;  %v5661_v42 = vpop.eup %5660  ;;  %v3271_v49 = vadd.f32 0.5, %v2951_v6  ;;  %v2792_v53 = vmul.f32 0.5, %v5659_v7  ;;  %4877 = vst.msk [vmem:[%s7755_s5 + $0x310] sm:$0xff] %vm4778_vm1, %v4655_v58  ;;  %v8146_v48 = vmul.f32 %v3270_v20, %v9168_v60  ;;  %v2158_v40 = vmul.f32 0.5, %v9200_v28 }
 0x20c   : > { %4798 = vst.msk [vmem:[%s7755_s5 + $0x98] sm:$0xff] %vm4778_vm1, %v4497_v15  ;;  %v8141_v1 = vpop.f32.mrb[138].mxu1  ;;  %v8143_v33 = vpop.f32.mrb[139].mxu0  ;;  %v3111_v63 = vadd.f32 0.5, %v2791_v23  ;;  %v2952_v38 = vmul.f32 0.5, %v5661_v42  ;;  %5680 = vtanh.f32 %v2157_v3 }
 0x20d   : > { %9198 = vst [vmem:[#allocation20_spill] sm:$0xff] %v8141_v1  ;;  %9199 = vst [vmem:[#allocation21_spill] sm:$0xff] %v8143_v33  ;;  %v5663_v19 = vpop.eup %5662  ;;  %v8149_v6 = vpop.f32.mrb[139].mxu1  ;;  %v3591_v32 = vmul.f32 %v3271_v49, %v9171_v34  ;;  %v3112_v58 = vadd.f32 0.5, %v2792_v53  ;;  %5682 = vtanh.f32 %v2158_v40  ;;  %v9203_v53 = vld [vmem:[#allocation46_spill] sm:$0xff] }
 0x20e   : > { %9201 = vst [vmem:[#allocation22_spill] sm:$0xff] %v8149_v6  ;;  %v5665_v7 = vpop.eup %5664  ;;  %v2953_v15 = vmul.f32 0.5, %v5663_v19  ;;  %v8152_v1 = vpop.f32.mrb[140].mxu0  ;;  %v8155_v60 = vmul.f32 %v3111_v63, %v9173_v36  ;;  %v3272_v20 = vadd.f32 0.5, %v2952_v38  ;;  %v2318_v19 = vmul.f32 0.5, %v9203_v53 }
 0x20f   : > { %9202 = vst [vmem:[#allocation23_spill] sm:$0xff] %v8152_v1  ;;  %v5667_v33 = vpop.eup %5666  ;;  %v2793_v42 = vmul.f32 0.5, %v5665_v7  ;;  %v4657_v23 = vpop.xlane.xlu1 %4656  ;;  %v8158_v50 = vmul.f32 %v3112_v58, %v9174_v35  ;;  %v3780_v35 = vadd.f32 %v8068_v5, %v8023_v12 }
 0x210   : > { %v4499_v17 = vpop.xlane.xlu0 %4498  ;;  %v5669_v6 = vpop.eup %5668  ;;  %v3273_v34 = vadd.f32 0.5, %v2953_v15  ;;  %v2794_v49 = vmul.f32 0.5, %v5667_v33  ;;  %4878 = vst.msk [vmem:[%s7755_s5 + $0x318] sm:$0xff] %vm4778_vm1, %v4657_v23  ;;  %v3592_v38 = vmul.f32 %v3272_v20, %v9176_v25  ;;  %5684 = vtanh.f32 %v2318_v19 }
 0x211   : > { %4799 = vst.msk [vmem:[%s7755_s5 + $0xa0] sm:$0xff] %vm4778_vm1, %v4499_v17  ;;  %v8165_v3 = vpop.f32.mrb[140].mxu1  ;;  %v8167_v36 = vpop.f32.mrb[141].mxu0  ;;  %v3113_v40 = vadd.f32 0.5, %v2793_v42  ;;  %v2954_v7 = vmul.f32 0.5, %v5669_v6  ;;  %4708 = vadd.xlane.f32.xlu1 %v3780_v35  ;;  %v3701_v19 = vadd.f32 %v8107_v37, %v8097_v44 }
 0x212   : > { %9204 = vst [vmem:[#allocation45_spill] sm:$0xff] %v8165_v3  ;;  %9205 = vst [vmem:[#allocation24_spill] sm:$0xff] %v8167_v36  ;;  %v5671_v63 = vpop.eup %5670  ;;  %v8172_v58 = vpop.f32.mrb[141].mxu1  ;;  %v3593_v15 = vmul.f32 %v3273_v34, %v9178_v57  ;;  %v3114_v23 = vadd.f32 0.5, %v2794_v49  ;;  %v8177_v3 = vadd.f32 %v3592_v38, %v3591_v32 }
 0x213   : > { %v5673_v33 = vpop.eup %5672  ;;  %v2955_v1 = vmul.f32 0.5, %v5671_v63  ;;  %v8175_v17 = vpop.f32.mrb[142].mxu0  ;;  %v8180_v25 = vmul.f32 %v3113_v40, %v9179_v30  ;;  %v3274_v6 = vadd.f32 0.5, %v2954_v7  ;;  %4550 = vadd.xlane.f32.xlu0 %v3701_v19 }
 0x214   : > { %9206 = vst [vmem:[#allocation47_spill] sm:$0xff] %v8175_v17  ;;  %v5675_v36 = vpop.eup %5674  ;;  %v2795_v12 = vmul.f32 0.5, %v5673_v33  ;;  %v4659_v5 = vpop.xlane.xlu0 %4658  ;;  %v8183_v57 = vmul.f32 %v3114_v23, %v9181_v0  ;;  %v9209_v0 = vld [vmem:[#allocation48_spill] sm:$0xff]  ;;  %v9211_v33 = vld [vmem:[#allocation49_spill] sm:$0xff]  ;;  %v2168_v17 = vmul.f32 0.5, %v7757_v8 }
 0x215   : > { %v4501_v20 = vpop.xlane.xlu1 %4500  ;;  %v5677_v42 = vpop.eup %5676  ;;  %v3275_v34 = vadd.f32 0.5, %v2955_v1  ;;  %v2796_v49 = vmul.f32 0.5, %v5675_v36  ;;  %4879 = vst.msk [vmem:[%s7755_s5 + $0x320] sm:$0xff] %vm4778_vm1, %v4659_v5  ;;  %v3594_v38 = vmul.f32 %v3274_v6, %v9183_v41  ;;  %v2319_v35 = vmul.f32 0.5, %v9209_v0 }
 0x216   : > { %4800 = vst.msk [vmem:[%s7755_s5 + $0xa8] sm:$0xff] %vm4778_vm1, %v4501_v20  ;;  %v8191_v30 = vpop.f32.mrb[142].mxu1  ;;  %v8193_v32 = vpop.f32.mrb[143].mxu0  ;;  %v3115_v40 = vadd.f32 0.5, %v2795_v12  ;;  %v2956_v7 = vmul.f32 0.5, %v5677_v42  ;;  %v2159_v23 = vmul.f32 0.5, %v9211_v33 }
 0x217   : > { %9207 = vst [vmem:[#allocation46_spill] sm:$0xff] %v8191_v30  ;;  %9208 = vst [vmem:[#allocation61_spill] sm:$0xff] %v8193_v32  ;;  %v5679_v63 = vpop.eup %5678  ;;  %v8197_v1 = vpop.f32.mrb[143].mxu1  ;;  %v3595_v36 = vmul.f32 %v3275_v34, %v9185_v26  ;;  %v3116_v44 = vadd.f32 0.5, %v2796_v49  ;;  %v8203_v20 = vadd.f32 %v3594_v38, %v3593_v15  ;;  %5686 = vtanh.f32 %v2319_v35  ;;  %v9214_v26 = vld [vmem:[#allocation51_spill] sm:$0xff]  ;;  %v9216_v38 = vld [vmem:[#allocation50_spill] sm:$0xff] }
 0x218   : > { %9210 = vst [vmem:[#allocation48_spill] sm:$0xff] %v8197_v1  ;;  %v2957_v37 = vmul.f32 0.5, %v5679_v63  ;;  %v8201_v5 = vpop.f32.mrb[144].mxu0  ;;  %v3435_v32 = vmul.f32 %v3115_v40, %v9187_v43  ;;  %v3276_v41 = vadd.f32 0.5, %v2956_v7  ;;  %v5681_v12 = vpop.eup %5680  ;;  %5688 = vtanh.f32 %v2159_v23 }
 0x219   : > { %9212 = vst [vmem:[#allocation49_spill] sm:$0xff] %v8201_v5  ;;  %v8206_v6 = vpop.f32.mrb[145].mxu0  ;;  %v3436_v42 = vmul.f32 %v3116_v44, %v9189_v51  ;;  %v2160_v34 = vmul.f32 0.5, %v9214_v26  ;;  %v8210_v49 = vpop.f32.mrb[144].mxu1  ;;  %v2797_v15 = vmul.f32 0.5, %v5681_v12  ;;  %v2320_v5 = vmul.f32 0.5, %v9216_v38 }
 0x21a   : > { %9213 = vst [vmem:[#allocation62_spill] sm:$0xff] %v8206_v6  ;;  %v3277_v1 = vadd.f32 0.5, %v2957_v37  ;;  %9215 = vst [vmem:[#allocation51_spill] sm:$0xff] %v8210_v49  ;;  %v5683_v19 = vpop.eup %5682  ;;  %v3596_v63 = vmul.f32 %v3276_v41, %v9190_v39  ;;  %v3781_v43 = vadd.f32 %v8112_v54, %v8089_v47  ;;  %v8216_v40 = vpop.f32.mrb[145].mxu1  ;;  %v3702_v39 = vadd.f32 %v8134_v16, %v8131_v27  ;;  %v9220_v41 = vld [vmem:[#allocation52_spill] sm:$0xff] }
 0x21b   : > { %9217 = vst [vmem:[#allocation50_spill] sm:$0xff] %v8216_v40  ;;  %v8218_v7 = vadd.f32 %v3436_v42, %v3435_v32  ;;  %v2798_v35 = vmul.f32 0.5, %v5683_v19  ;;  %5690 = vtanh.f32 %v2160_v34  ;;  %v8221_v44 = vpop.f32.mrb[146].mxu0  ;;  %v3117_v23 = vadd.f32 0.5, %v2797_v15  ;;  %v5685_v54 = vpop.eup %5684  ;;  %v9222_v42 = vld [vmem:[#allocation54_spill] sm:$0xff]  ;;  %v9224_v15 = vld [vmem:[#allocation53_spill] sm:$0xff] }
 0x21c   : > { %v3597_v51 = vmul.f32 %v3277_v1, %v9194_v4  ;;  %9218 = vst [vmem:[#allocation63_spill] sm:$0xff] %v8221_v44  ;;  %v8223_v37 = vadd.f32 %v3596_v63, %v3595_v36  ;;  %5692 = vtanh.f32 %v2320_v5  ;;  %4710 = vadd.xlane.f32.xlu0 %v3781_v43  ;;  %v8227_v47 = vpop.f32.mrb[147].mxu0  ;;  %v2321_v12 = vmul.f32 0.5, %v9220_v41  ;;  %v9221_v4 = vld [vmem:[#allocation5_spill] sm:$0xff]  ;;  %v4661_v36 = vpop.xlane.xlu1 %4660  ;;  %4552 = vadd.xlane.f32.xlu1 %v3702_v39 }
 0x21d   : > { %9219 = vst [vmem:[#allocation64_spill] sm:$0xff] %v8227_v47  ;;  %v3118_v32 = vadd.f32 0.5, %v2798_v35  ;;  %v2161_v1 = vmul.f32 0.5, %v9221_v4  ;;  %v2162_v34 = vmul.f32 0.5, %v9222_v42  ;;  %v8232_v19 = vpop.f32.mrb[146].mxu1  ;;  %v3437_v5 = vmul.f32 %v3117_v23, %v9197_v10  ;;  %4880 = vst.msk [vmem:[%s7755_s5 + $0x328] sm:$0xff] %vm4778_vm1, %v4661_v36  ;;  %v4503_v43 = vpop.xlane.xlu0 %4502 }
 0x21e   : > { %9223 = vst [vmem:[#allocation52_spill] sm:$0xff] %v8232_v19  ;;  %v2958_v63 = vmul.f32 0.5, %v5685_v54  ;;  %v2322_v27 = vmul.f32 0.5, %v9224_v15  ;;  %v3782_v16 = vadd.f32 %v8146_v48, %v8126_v21  ;;  %v8240_v35 = vpop.f32.mrb[147].mxu1  ;;  %5694 = vtanh.f32 %v2321_v12  ;;  %v9226_v19 = vld [vmem:[#allocation55_spill] sm:$0xff]  ;;  %4801 = vst.msk [vmem:[%s7755_s5 + $0xb0] sm:$0xff] %vm4778_vm1, %v4503_v43 }
 0x21f   : > { %9225 = vst [vmem:[#allocation5_spill] sm:$0xff] %v8240_v35  ;;  %v3438_v47 = vmul.f32 %v3118_v32, %v9200_v28  ;;  %v3703_v44 = vadd.f32 %v8158_v50, %v8155_v60  ;;  %v2323_v10 = vmul.f32 0.5, %v9226_v19  ;;  %v8248_v23 = vpop.f32.mrb[148].mxu0  ;;  %5696 = vtanh.f32 %v2161_v1  ;;  %v9228_v21 = vld [vmem:[#allocation56_spill] sm:$0xff]  ;;  %v9229_v54 = vld [vmem:[#allocation58_spill] sm:$0xff]  ;;  %v9231_v28 = vld [vmem:[#allocation57_spill] sm:$0xff] }
 0x220   : > { %9227 = vst [vmem:[#allocation54_spill] sm:$0xff] %v8248_v23  ;;  %v3278_v39 = vadd.f32 0.5, %v2958_v63  ;;  %v2163_v48 = vmul.f32 0.5, %v9228_v21  ;;  %v2164_v36 = vmul.f32 0.5, %v9229_v54  ;;  %v8252_v40 = vpop.f32.mrb[149].mxu0  ;;  %5698 = vtanh.f32 %v2162_v34  ;;  %v8259_v32 = vpop.f32.mrb[148].mxu1  ;;  %4712 = vadd.xlane.f32.xlu1 %v3782_v16 }
 0x221   : > { %9230 = vst [vmem:[#allocation53_spill] sm:$0xff] %v8252_v40  ;;  %v8254_v35 = vadd.f32 %v3438_v47, %v3437_v5  ;;  %4554 = vadd.xlane.f32.xlu0 %v3703_v44  ;;  %v2324_v50 = vmul.f32 0.5, %v9231_v28  ;;  %v3704_v60 = vadd.f32 %v8183_v57, %v8180_v25  ;;  %9232 = vst [vmem:[#allocation55_spill] sm:$0xff] %v8259_v32  ;;  %v5687_v12 = vpop.eup %5686  ;;  %5700 = vtanh.f32 %v2322_v27  ;;  %v9233_v63 = vld [vmem:[#allocation11_spill] sm:$0xff]  ;;  %v9234_v23 = vld [vmem:[#allocation26_spill] sm:$0xff]  ;;  %v8264_v47 = vpop.f32.mrb[149].mxu1 }
 0x222   : > { %v3598_v1 = vmul.f32 %v3278_v39, %v9203_v53  ;;  %v2325_v43 = vmul.f32 0.5, %v9233_v63  ;;  %v2165_v40 = vmul.f32 0.5, %v9234_v23  ;;  %9235 = vst [vmem:[#allocation56_spill] sm:$0xff] %v8264_v47  ;;  %v5689_v34 = vpop.eup %5688  ;;  %v2959_v44 = vmul.f32 0.5, %v5687_v12  ;;  %v9236_v5 = vld [vmem:[#allocation60_spill] sm:$0xff]  ;;  %v9237_v25 = vld [vmem:[#allocation59_spill] sm:$0xff]  ;;  %v4663_v16 = vpop.xlane.xlu0 %4662 }
 0x223   : > { %5702 = vtanh.f32 %v2323_v10  ;;  %v2166_v6 = vmul.f32 0.5, %v9236_v5  ;;  %v2326_v57 = vmul.f32 0.5, %v9237_v25  ;;  %v8268_v32 = vpop.f32.mrb[150].mxu0  ;;  %v2799_v53 = vmul.f32 0.5, %v5689_v34  ;;  %4881 = vst.msk [vmem:[%s7755_s5 + $0x330] sm:$0xff] %vm4778_vm1, %v4663_v16 }
 0x224   : > { %9238 = vst [vmem:[#allocation58_spill] sm:$0xff] %v8268_v32  ;;  %v8270_v49 = vadd.f32 %v3598_v1, %v3597_v51  ;;  %5704 = vtanh.f32 %v2163_v48  ;;  %v2327_v27 = vmul.f32 0.5, %v7743_v62  ;;  %v8273_v39 = vpop.f32.mrb[151].mxu0  ;;  %v3279_v12 = vadd.f32 0.5, %v2959_v44  ;;  %v4505_v51 = vpop.xlane.xlu1 %4504  ;;  %4556 = vadd.xlane.f32.xlu1 %v3704_v60 }
 0x225   : > { %9239 = vst [vmem:[#allocation57_spill] sm:$0xff] %v8273_v39  ;;  %v5691_v47 = vpop.eup %5690  ;;  %5706 = vtanh.f32 %v2164_v36  ;;  %4714 = vadd.xlane.f32.xlu0 %v8177_v3  ;;  %v2167_v10 = vmul.f32 0.5, %v7745_v55  ;;  %v8280_v1 = vpop.f32.mrb[150].mxu1  ;;  %v3119_v34 = vadd.f32 0.5, %v2799_v53  ;;  %v2328_v39 = vmul.f32 0.5, %v7759_v61  ;;  %4802 = vst.msk [vmem:[%s7755_s5 + $0xb8] sm:$0xff] %vm4778_vm1, %v4505_v51 }
 0x226   : > { %9240 = vst [vmem:[#allocation11_spill] sm:$0xff] %v8280_v1  ;;  %v5693_v48 = vpop.eup %5692  ;;  %v2800_v32 = vmul.f32 0.5, %v5691_v47  ;;  %5708 = vtanh.f32 %v2324_v50  ;;  %v8285_v36 = vpop.f32.mrb[151].mxu1  ;;  %v3599_v3 = vmul.f32 %v3279_v12, %v9209_v0  ;;  %v2329_v16 = vmul.f32 0.5, %v7826_v9 }
 0x227   : > { %v2960_v44 = vmul.f32 0.5, %v5693_v48  ;;  %5710 = vtanh.f32 %v2325_v43  ;;  %v8289_v30 = vpop.f32.mrb[152].mxu0  ;;  %v3439_v1 = vmul.f32 %v3119_v34, %v9211_v33  ;;  %v2169_v50 = vmul.f32 0.5, %v7834_v56  ;;  %v4507_v33 = vpop.xlane.xlu0 %4506 }
 0x228   : > { %9241 = vst [vmem:[#allocation26_spill] sm:$0xff] %v8289_v30  ;;  %v3120_v53 = vadd.f32 0.5, %v2800_v32  ;;  %5712 = vtanh.f32 %v2165_v40  ;;  %v8293_v60 = vpop.f32.mrb[153].mxu0  ;;  %v5695_v47 = vpop.eup %5694  ;;  %v2170_v0 = vmul.f32 0.5, %v7843_v13  ;;  %v8298_v43 = vmul.f32 0.5, %v7845_v52  ;;  %4716 = vadd.xlane.f32.xlu1 %v8203_v20  ;;  %4803 = vst.msk [vmem:[%s7755_s5 + $0xc0] sm:$0xff] %vm4778_vm1, %v4507_v33 }
 0x229   : > { %9242 = vst [vmem:[#allocation60_spill] sm:$0xff] %v8293_v60  ;;  %v3280_v51 = vadd.f32 0.5, %v2960_v44  ;;  %5714 = vtanh.f32 %v2166_v6  ;;  %4558 = vadd.xlane.f32.xlu0 %v8218_v7  ;;  %v4665_v12 = vpop.xlane.xlu1 %4664  ;;  %v5697_v32 = vpop.eup %5696  ;;  %v2961_v48 = vmul.f32 0.5, %v5695_v47  ;;  %v8303_v34 = vmul.f32 0.5, %v7856_v24 }
 0x22a   : > { %v3440_v40 = vmul.f32 %v3120_v53, %v9214_v26  ;;  %5716 = vtanh.f32 %v2326_v57  ;;  %4882 = vst.msk [vmem:[%s7755_s5 + $0x338] sm:$0xff] %vm4778_vm1, %v4665_v12  ;;  %v8309_v6 = vpop.f32.mrb[152].mxu1  ;;  %v5699_v7 = vpop.eup %5698  ;;  %v2801_v60 = vmul.f32 0.5, %v5697_v32  ;;  %v8313_v26 = vmul.f32 0.5, %v7858_v18 }
 0x22b   : > { %9243 = vst [vmem:[#allocation59_spill] sm:$0xff] %v8309_v6  ;;  %v3600_v44 = vmul.f32 %v3280_v51, %v9216_v38  ;;  %5718 = vtanh.f32 %v2327_v27  ;;  %v8315_v57 = vpop.f32.mrb[153].mxu1  ;;  %v8317_v20 = vpop.f32.mrb[154].mxu0  ;;  %v3281_v30 = vadd.f32 0.5, %v2961_v48  ;;  %v2802_v12 = vmul.f32 0.5, %v5699_v7 }
 0x22c   : > { %9244 = vst [vmem:[#allocation65_spill] sm:$0xff] %v8315_v57  ;;  %9245 = vst [vmem:[#allocation66_spill] sm:$0xff] %v8317_v20  ;;  %v5701_v53 = vpop.eup %5700  ;;  %v3707_v47 = vadd.f32 %v3440_v40, %v3439_v1  ;;  %5720 = vtanh.f32 %v2167_v10  ;;  %v8319_v33 = vpop.f32.mrb[155].mxu0  ;;  %v3121_v27 = vadd.f32 0.5, %v2801_v60  ;;  %4560 = vadd.xlane.f32.xlu1 %v8254_v35 }
 0x22d   : > { %v5703_v6 = vpop.eup %5702  ;;  %v8321_v38 = vadd.f32 %v3600_v44, %v3599_v3  ;;  %v2962_v51 = vmul.f32 0.5, %v5701_v53  ;;  %5722 = vtanh.f32 %v2168_v17  ;;  %4718 = vadd.xlane.f32.xlu0 %v8223_v37  ;;  %v4667_v32 = vpop.xlane.xlu0 %4666  ;;  %v3601_v1 = vmul.f32 %v3281_v30, %v9220_v41 }
 0x22e   : > { %v4509_v57 = vpop.xlane.xlu1 %4508  ;;  %v5705_v20 = vpop.eup %5704  ;;  %v3122_v40 = vadd.f32 0.5, %v2802_v12  ;;  %v2963_v48 = vmul.f32 0.5, %v5703_v6  ;;  %5724 = vtanh.f32 %v2328_v39  ;;  %4883 = vst.msk [vmem:[%s7755_s5 + $0x340] sm:$0xff] %vm4778_vm1, %v4667_v32  ;;  %v3441_v17 = vmul.f32 %v3121_v27, %v9221_v4 }
 0x22f   : > { %4804 = vst.msk [vmem:[%s7755_s5 + $0xc8] sm:$0xff] %vm4778_vm1, %v4509_v57  ;;  %v8330_v10 = vpop.f32.mrb[154].mxu1  ;;  %v5707_v3 = vpop.eup %5706  ;;  %v3282_v37 = vadd.f32 0.5, %v2962_v51  ;;  %v2803_v60 = vmul.f32 0.5, %v5705_v20  ;;  %5726 = vtanh.f32 %v2329_v16 }
 0x230   : > { %v8333_v7 = vpop.f32.mrb[155].mxu1  ;;  %v8335_v30 = vpop.f32.mrb[156].mxu0  ;;  %v3442_v39 = vmul.f32 %v3122_v40, %v9222_v42  ;;  %v3283_v35 = vadd.f32 0.5, %v2963_v48  ;;  %v2804_v6 = vmul.f32 0.5, %v5707_v3  ;;  %5728 = vtanh.f32 %v2169_v50  ;;  %4720 = vadd.xlane.f32.xlu1 %v8270_v49 }
 0x231   : > { %v5709_v41 = vpop.eup %5708  ;;  %v8338_v44 = vpop.f32.mrb[157].mxu0  ;;  %v3602_v4 = vmul.f32 %v3282_v37, %v9224_v15  ;;  %v3123_v53 = vadd.f32 0.5, %v2803_v60  ;;  %5730 = vtanh.f32 %v2170_v0  ;;  %4562 = vadd.xlane.f32.xlu0 %v3707_v47 }
 0x232   : > { %9246 = vst [vmem:[#allocation67_spill] sm:$0xff] %v8338_v44  ;;  %v5711_v57 = vpop.eup %5710  ;;  %v2964_v20 = vmul.f32 0.5, %v5709_v41  ;;  %v4669_v16 = vpop.xlane.xlu1 %4668  ;;  %v3708_v51 = vadd.f32 %v3442_v39, %v3441_v17  ;;  %v3603_v42 = vmul.f32 %v3283_v35, %v9226_v19  ;;  %v3124_v32 = vadd.f32 0.5, %v2804_v6 }
 0x233   : > { %v4511_v12 = vpop.xlane.xlu0 %4510  ;;  %v5713_v27 = vpop.eup %5712  ;;  %v2965_v40 = vmul.f32 0.5, %v5711_v57  ;;  %4884 = vst.msk [vmem:[%s7755_s5 + $0x348] sm:$0xff] %vm4778_vm1, %v4669_v16  ;;  %v3788_v48 = vadd.f32 %v3602_v4, %v3601_v1  ;;  %v3443_v0 = vmul.f32 %v3123_v53, %v9228_v21  ;;  %5732 = vtanh.f32 %v8298_v43 }
 0x234   : > { %4805 = vst.msk [vmem:[%s7755_s5 + $0xd0] sm:$0xff] %vm4778_vm1, %v4511_v12  ;;  %v8347_v50 = vpop.f32.mrb[156].mxu1  ;;  %v5715_v15 = vpop.eup %5714  ;;  %v3284_v47 = vadd.f32 0.5, %v2964_v20  ;;  %v2805_v3 = vmul.f32 0.5, %v5713_v27  ;;  %v3444_v60 = vmul.f32 %v3124_v32, %v9229_v54  ;;  %5734 = vtanh.f32 %v8303_v34  ;;  %4564 = vadd.xlane.f32.xlu1 %v3708_v51 }
 0x235   : > { %v8350_v37 = vpop.f32.mrb[157].mxu1  ;;  %v8352_v17 = vpop.f32.mrb[158].mxu0  ;;  %v3285_v49 = vadd.f32 0.5, %v2965_v40  ;;  %v2806_v41 = vmul.f32 0.5, %v5715_v15  ;;  %4722 = vadd.xlane.f32.xlu0 %v8321_v38  ;;  %5736 = vtanh.f32 %v8313_v26 }
 0x236   : > { %9247 = vst [vmem:[#allocation68_spill] sm:$0xff] %v8350_v37  ;;  %9248 = vst [vmem:[#allocation69_spill] sm:$0xff] %v8352_v17  ;;  %v5717_v19 = vpop.eup %5716  ;;  %v8356_v39 = vpop.f32.mrb[159].mxu0  ;;  %v3604_v21 = vmul.f32 %v3284_v47, %v9231_v28  ;;  %v3125_v35 = vadd.f32 0.5, %v2805_v3  ;;  %v3709_v53 = vadd.f32 %v3444_v60, %v3443_v0 }
 0x237   : > { %9249 = vst [vmem:[#allocation70_spill] sm:$0xff] %v8356_v39  ;;  %v5719_v1 = vpop.eup %5718  ;;  %v2966_v6 = vmul.f32 0.5, %v5717_v19  ;;  %v4671_v57 = vpop.xlane.xlu0 %4670  ;;  %v3605_v20 = vmul.f32 %v3285_v49, %v9233_v63  ;;  %v3126_v43 = vadd.f32 0.5, %v2806_v41 }
 0x238   : > { %v4513_v4 = vpop.xlane.xlu1 %4512  ;;  %v5721_v54 = vpop.eup %5720  ;;  %v2967_v16 = vmul.f32 0.5, %v5719_v1  ;;  %4885 = vst.msk [vmem:[%s7755_s5 + $0x350] sm:$0xff] %vm4778_vm1, %v4671_v57  ;;  %v3789_v27 = vadd.f32 %v3604_v21, %v3603_v42  ;;  %v3445_v34 = vmul.f32 %v3125_v35, %v9234_v23  ;;  %v2172_v42 = vmul.f32 0.5, %v7862_v59  ;;  %4724 = vadd.xlane.f32.xlu1 %v3788_v48 }
 0x239   : > { %4806 = vst.msk [vmem:[%s7755_s5 + $0xd8] sm:$0xff] %vm4778_vm1, %v4513_v4  ;;  %v8366_v28 = vpop.f32.mrb[158].mxu1  ;;  %v5723_v12 = vpop.eup %5722  ;;  %v3286_v38 = vadd.f32 0.5, %v2966_v6  ;;  %v2807_v32 = vmul.f32 0.5, %v5721_v54  ;;  %v3446_v63 = vmul.f32 %v3126_v43, %v9236_v5  ;;  %4566 = vadd.xlane.f32.xlu0 %v3709_v53 }
 0x23a   : > { %9250 = vst [vmem:[#allocation71_spill] sm:$0xff] %v8366_v28  ;;  %v8369_v40 = vpop.f32.mrb[159].mxu1  ;;  %v5725_v15 = vpop.eup %5724  ;;  %v3287_v0 = vadd.f32 0.5, %v2967_v16  ;;  %v2808_v47 = vmul.f32 0.5, %v5723_v12  ;;  %5738 = vtanh.f32 %v2172_v42  ;;  %v2333_v16 = vmul.f32 0.5, %v7878_v2  ;;  %v9252_v42 = vld [vmem:[#allocation12_spill] sm:$0xff] }
 0x23b   : > { %9251 = vst [vmem:[#allocation72_spill] sm:$0xff] %v8369_v40  ;;  %v5727_v51 = vpop.eup %5726  ;;  %v3606_v3 = vmul.f32 %v3286_v38, %v9237_v25  ;;  %v3127_v19 = vadd.f32 0.5, %v2807_v32  ;;  %v2968_v60 = vmul.f32 0.5, %v5725_v15  ;;  %v3710_v49 = vadd.f32 %v3446_v63, %v3445_v34  ;;  %v4515_v63 = vpop.xlane.xlu0 %4514 }
 0x23c   : > { %v5729_v23 = vpop.eup %5728  ;;  %v3607_v41 = vmul.f32 %v3287_v0, %v7743_v62  ;;  %v3128_v1 = vadd.f32 0.5, %v2808_v47  ;;  %v2969_v21 = vmul.f32 0.5, %v5727_v51  ;;  %v2332_v62 = vmul.f32 0.5, %v7864_v11  ;;  %v4673_v34 = vpop.xlane.xlu1 %4672  ;;  %4807 = vst.msk [vmem:[%s7755_s5 + $0xe0] sm:$0xff] %vm4778_vm1, %v4515_v63 }
 0x23d   : > { %v5731_v5 = vpop.eup %5730  ;;  %v3790_v35 = vadd.f32 %v3606_v3, %v3605_v20  ;;  %v3447_v6 = vmul.f32 %v3127_v19, %v7745_v55  ;;  %v3288_v26 = vadd.f32 0.5, %v2968_v60  ;;  %v2809_v57 = vmul.f32 0.5, %v5729_v23  ;;  %4726 = vadd.xlane.f32.xlu0 %v3789_v27  ;;  %4568 = vadd.xlane.f32.xlu1 %v3710_v49  ;;  %4886 = vst.msk [vmem:[%s7755_s5 + $0x358] sm:$0xff] %vm4778_vm1, %v4673_v34  ;;  %v9260_v34 = vld [vmem:[#allocation28_spill] sm:$0xff] }
 0x23e   : > { %v3448_v25 = vmul.f32 %v3128_v1, %v7757_v8  ;;  %v3289_v4 = vadd.f32 0.5, %v2969_v21  ;;  %v2810_v54 = vmul.f32 0.5, %v5731_v5  ;;  %v5733_v48 = vpop.eup %5732  ;;  %v2173_v8 = vmul.f32 0.5, %v7886_v22  ;;  %v9254_v5 = vld [vmem:[#allocation13_spill] sm:$0xff] }
 0x23f   : > { %v3608_v53 = vmul.f32 %v3288_v26, %v7759_v61  ;;  %v3129_v43 = vadd.f32 0.5, %v2809_v57  ;;  %v5735_v38 = vpop.eup %5734  ;;  %v2970_v15 = vmul.f32 0.5, %v5733_v48  ;;  %5740 = vtanh.f32 %v2332_v62  ;;  %v9255_v26 = vld [vmem:[#allocation25_spill] sm:$0xff]  ;;  %v9259_v48 = vld [vmem:[#allocation16_spill] sm:$0xff] }
 0x240   : > { %v3711_v20 = vadd.f32 %v3448_v25, %v3447_v6  ;;  %v3609_v55 = vmul.f32 %v3289_v4, %v7826_v9  ;;  %v3130_v12 = vadd.f32 0.5, %v2810_v54  ;;  %v2971_v0 = vmul.f32 0.5, %v5735_v38  ;;  %v9256_v54 = vld [vmem:[#allocation14_spill] sm:$0xff] }
 0x241   : > { %v3791_v32 = vadd.f32 %v3608_v53, %v3607_v41  ;;  %v3449_v61 = vmul.f32 %v3129_v43, %v7834_v56  ;;  %5742 = vtanh.f32 %v2333_v16  ;;  %v2174_v9 = vmul.f32 0.5, %v7892_v45  ;;  %v5737_v56 = vpop.eup %5736  ;;  %4728 = vadd.xlane.f32.xlu1 %v3790_v35  ;;  %v9253_v41 = vld [vmem:[#allocation27_spill] sm:$0xff] }
 0x242   : > { %v3450_v27 = vmul.f32 %v3130_v12, %v7843_v13  ;;  %v3290_v47 = vadd.f32 0.5, %v2970_v15  ;;  %5744 = vtanh.f32 %v2173_v8  ;;  %v2334_v51 = vmul.f32 0.5, %v7888_v46  ;;  %4570 = vadd.xlane.f32.xlu0 %v3711_v20  ;;  %v9257_v43 = vld [vmem:[#allocation15_spill] sm:$0xff]  ;;  %v4517_v12 = vpop.xlane.xlu1 %4516  ;;  %v9262_v15 = vld [vmem:[#allocation30_spill] sm:$0xff] }
 0x243   : > { %v2335_v3 = vmul.f32 0.5, %v7908_v14  ;;  %v3291_v60 = vadd.f32 0.5, %v2971_v0  ;;  %5746 = vtanh.f32 %v2174_v9  ;;  %v2175_v23 = vmul.f32 0.5, %v9252_v42  ;;  %4808 = vst.msk [vmem:[%s7755_s5 + $0xe8] sm:$0xff] %vm4778_vm1, %v4517_v12 }
 0x244   : > { %v3712_v19 = vadd.f32 %v3450_v27, %v3449_v61  ;;  %v3610_v13 = vmul.f32 %v3290_v47, %v7845_v52  ;;  %v2811_v49 = vmul.f32 0.5, %v5737_v56  ;;  %5748 = vtanh.f32 %v2334_v51  ;;  %v4675_v52 = vpop.xlane.xlu0 %4674  ;;  %v5739_v53 = vpop.eup %5738  ;;  %v9263_v27 = vld [vmem:[#allocation32_spill] sm:$0xff]  ;;  %v9264_v51 = vld [vmem:[#allocation31_spill] sm:$0xff] }
 0x245   : > { %v2176_v1 = vmul.f32 0.5, %v9253_v41  ;;  %v8396_v21 = vmul.f32 %v3291_v60, %v7856_v24  ;;  %5750 = vtanh.f32 %v2335_v3  ;;  %v2336_v6 = vmul.f32 0.5, %v9254_v5  ;;  %v9258_v24 = vld [vmem:[#allocation6_spill] sm:$0xff]  ;;  %4887 = vst.msk [vmem:[%s7755_s5 + $0x360] sm:$0xff] %vm4778_vm1, %v4675_v52 }
 0x246   : > { %v2337_v57 = vmul.f32 0.5, %v9255_v26  ;;  %v3792_v25 = vadd.f32 %v3610_v13, %v3609_v55  ;;  %v3131_v4 = vadd.f32 0.5, %v2811_v49  ;;  %5752 = vtanh.f32 %v2175_v23  ;;  %4730 = vadd.xlane.f32.xlu0 %v3791_v32  ;;  %4572 = vadd.xlane.f32.xlu1 %v3712_v19  ;;  %v9261_v32 = vld [vmem:[#allocation29_spill] sm:$0xff]  ;;  %v9266_v23 = vld [vmem:[#allocation34_spill] sm:$0xff]  ;;  %v9267_v49 = vld [vmem:[#allocation36_spill] sm:$0xff] }
 0x247   : > { %v2177_v35 = vmul.f32 0.5, %v9256_v54  ;;  %5754 = vtanh.f32 %v2176_v1  ;;  %v2178_v62 = vmul.f32 0.5, %v9257_v43  ;;  %v2338_v16 = vmul.f32 0.5, %v9258_v24 }
 0x248   : > { %v2339_v20 = vmul.f32 0.5, %v9259_v48  ;;  %v3451_v55 = vmul.f32 %v3131_v4, %v7858_v18  ;;  %v2812_v8 = vmul.f32 0.5, %v5739_v53  ;;  %5756 = vtanh.f32 %v2336_v6  ;;  %v9265_v18 = vld [vmem:[#allocation33_spill] sm:$0xff]  ;;  %v4677_v6 = vpop.xlane.xlu1 %4676  ;;  %v9268_v53 = vld [vmem:[#allocation35_spill] sm:$0xff] }
 0x249   : > { %v2179_v38 = vmul.f32 0.5, %v9260_v34  ;;  %5758 = vtanh.f32 %v2337_v57  ;;  %v2180_v61 = vmul.f32 0.5, %v9261_v32  ;;  %v2340_v63 = vmul.f32 0.5, %v9262_v15  ;;  %v5741_v9 = vpop.eup %5740  ;;  %v4519_v57 = vpop.xlane.xlu0 %4518  ;;  %4888 = vst.msk [vmem:[%s7755_s5 + $0x368] sm:$0xff] %vm4778_vm1, %v4677_v6 }
 0x24a   : > { %v2341_v0 = vmul.f32 0.5, %v9263_v27  ;;  %v3132_v47 = vadd.f32 0.5, %v2812_v8  ;;  %5760 = vtanh.f32 %v2177_v35  ;;  %v2181_v3 = vmul.f32 0.5, %v9264_v51  ;;  %4732 = vadd.xlane.f32.xlu1 %v3792_v25  ;;  %4809 = vst.msk [vmem:[%s7755_s5 + $0xf0] sm:$0xff] %vm4778_vm1, %v4519_v57 }
 0x24b   : > { %v8415_v56 = vmul.f32 0.5, %v9265_v18  ;;  %v5743_v19 = vpop.eup %5742  ;;  %v2972_v60 = vmul.f32 0.5, %v5741_v9  ;;  %5762 = vtanh.f32 %v2178_v62  ;;  %v8418_v13 = vmul.f32 0.5, %v9266_v23  ;;  %v9269_v9 = vld [vmem:[#allocation17_spill] sm:$0xff] }
 0x24c   : > { %v8421_v1 = vmul.f32 0.5, %v9267_v49  ;;  %v5745_v4 = vpop.eup %5744  ;;  %v3452_v35 = vmul.f32 %v3132_v47, %v7862_v59  ;;  %v2973_v52 = vmul.f32 0.5, %v5743_v19  ;;  %5764 = vtanh.f32 %v2338_v16 }
 0x24d   : > { %v8425_v12 = vmul.f32 0.5, %v9268_v53  ;;  %v5747_v62 = vpop.eup %5746  ;;  %v3292_v8 = vadd.f32 0.5, %v2972_v60  ;;  %v2813_v25 = vmul.f32 0.5, %v5745_v4  ;;  %5766 = vtanh.f32 %v2339_v20  ;;  %v4679_v57 = vpop.xlane.xlu0 %4678 }
 0x24e   : > { %v8432_v40 = vmul.f32 0.5, %v9269_v9  ;;  %v5749_v39 = vpop.eup %5748  ;;  %v3713_v17 = vadd.f32 %v3452_v35, %v3451_v55  ;;  %v3293_v28 = vadd.f32 0.5, %v2973_v52  ;;  %v2814_v59 = vmul.f32 0.5, %v5747_v62  ;;  %v4521_v60 = vpop.xlane.xlu1 %4520  ;;  %4889 = vst.msk [vmem:[%s7755_s5 + $0x370] sm:$0xff] %vm4778_vm1, %v4679_v57 }
 0x24f   : > { %5768 = vtanh.f32 %v2179_v38  ;;  %v5751_v16 = vpop.eup %5750  ;;  %v3612_v47 = vmul.f32 %v3292_v8, %v7864_v11  ;;  %v3133_v19 = vadd.f32 0.5, %v2813_v25  ;;  %v2974_v6 = vmul.f32 0.5, %v5749_v39  ;;  %4810 = vst.msk [vmem:[%s7755_s5 + $0xf8] sm:$0xff] %vm4778_vm1, %v4521_v60 }
 0x250   : > { %5770 = vtanh.f32 %v2180_v61  ;;  %v5753_v4 = vpop.eup %5752  ;;  %v3613_v20 = vmul.f32 %v3293_v28, %v7878_v2  ;;  %v3134_v37 = vadd.f32 0.5, %v2814_v59  ;;  %v2975_v44 = vmul.f32 0.5, %v5751_v16  ;;  %4574 = vadd.xlane.f32.xlu0 %v3713_v17 }
 0x251   : > { %5772 = vtanh.f32 %v2340_v63  ;;  %v5755_v55 = vpop.eup %5754  ;;  %v3793_v38 = vadd.f32 %v3612_v47, %v8396_v21  ;;  %v3453_v11 = vmul.f32 %v3133_v19, %v7886_v22  ;;  %v3294_v39 = vadd.f32 0.5, %v2974_v6  ;;  %v4523_v21 = vpop.xlane.xlu0 %4522 }
 0x252   : > { %v2815_v61 = vmul.f32 0.5, %v5753_v4  ;;  %v5757_v35 = vpop.eup %5756  ;;  %v3454_v52 = vmul.f32 %v3134_v37, %v7892_v45  ;;  %v3295_v62 = vadd.f32 0.5, %v2975_v44  ;;  %v2816_v2 = vmul.f32 0.5, %v5755_v55  ;;  %v4681_v25 = vpop.xlane.xlu1 %4680  ;;  %4811 = vst.msk [vmem:[%s7755_s5 + $0x100] sm:$0xff] %vm4778_vm1, %v4523_v21 }
 0x253   : > { %5774 = vtanh.f32 %v2341_v0  ;;  %v5759_v17 = vpop.eup %5758  ;;  %v3614_v28 = vmul.f32 %v3294_v39, %v7888_v46  ;;  %v2976_v8 = vmul.f32 0.5, %v5757_v35  ;;  %4890 = vst.msk [vmem:[%s7755_s5 + $0x378] sm:$0xff] %vm4778_vm1, %v4681_v25 }
 0x254   : > { %v3135_v63 = vadd.f32 0.5, %v2815_v61  ;;  %5776 = vtanh.f32 %v2181_v3  ;;  %v5761_v59 = vpop.eup %5760  ;;  %v3714_v22 = vadd.f32 %v3454_v52, %v3453_v11  ;;  %v3615_v16 = vmul.f32 %v3295_v62, %v7908_v14  ;;  %4734 = vadd.xlane.f32.xlu0 %v3793_v38 }
 0x255   : > { %v3136_v47 = vadd.f32 0.5, %v2816_v2  ;;  %v2977_v19 = vmul.f32 0.5, %v5759_v17  ;;  %v5763_v45 = vpop.eup %5762  ;;  %v3794_v44 = vadd.f32 %v3614_v28, %v3613_v20  ;;  %v3296_v37 = vadd.f32 0.5, %v2976_v8 }
 0x256   : > { %v3455_v46 = vmul.f32 %v3135_v63, %v9252_v42  ;;  %v2817_v0 = vmul.f32 0.5, %v5761_v59  ;;  %v5765_v3 = vpop.eup %5764  ;;  %v2818_v60 = vmul.f32 0.5, %v5763_v45  ;;  %5778 = vtanh.f32 %v8415_v56  ;;  %4576 = vadd.xlane.f32.xlu1 %v3714_v22  ;;  %v4683_v42 = vpop.xlane.xlu0 %4682 }
 0x257   : > { %v3456_v6 = vmul.f32 %v3136_v47, %v9253_v41  ;;  %v3297_v57 = vadd.f32 0.5, %v2977_v19  ;;  %v5767_v14 = vpop.eup %5766  ;;  %v3616_v4 = vmul.f32 %v3296_v37, %v9254_v5  ;;  %v2978_v38 = vmul.f32 0.5, %v5765_v3  ;;  %v4525_v20 = vpop.xlane.xlu1 %4524  ;;  %4891 = vst.msk [vmem:[%s7755_s5 + $0x380] sm:$0xff] %vm4778_vm1, %v4683_v42  ;;  %v9271_v37 = vld [vmem:[#allocation40_spill] sm:$0xff] }
 0x258   : > { %v3137_v55 = vadd.f32 0.5, %v2817_v0  ;;  %5780 = vtanh.f32 %v8418_v13  ;;  %v3138_v61 = vadd.f32 0.5, %v2818_v60  ;;  %v2979_v35 = vmul.f32 0.5, %v5767_v14  ;;  %4812 = vst.msk [vmem:[%s7755_s5 + $0x108] sm:$0xff] %vm4778_vm1, %v4525_v20 }
 0x259   : > { %v5769_v11 = vpop.eup %5768  ;;  %v3715_v39 = vadd.f32 %v3456_v6, %v3455_v46  ;;  %v3617_v41 = vmul.f32 %v3297_v57, %v9255_v26  ;;  %v3795_v52 = vadd.f32 %v3616_v4, %v3615_v16  ;;  %v3298_v62 = vadd.f32 0.5, %v2978_v38  ;;  %v9273_v6 = vld [vmem:[#allocation39_spill] sm:$0xff] }
 0x25a   : > { %v5771_v56 = vpop.eup %5770  ;;  %v3457_v5 = vmul.f32 %v3137_v55, %v9256_v54  ;;  %v2819_v2 = vmul.f32 0.5, %v5769_v11  ;;  %v3458_v13 = vmul.f32 %v3138_v61, %v9257_v43  ;;  %v3299_v28 = vadd.f32 0.5, %v2979_v35  ;;  %4736 = vadd.xlane.f32.xlu1 %v3794_v44  ;;  %v9270_v44 = vld [vmem:[#allocation37_spill] sm:$0xff]  ;;  %v9275_v61 = vld [vmem:[#allocation42_spill] sm:$0xff] }
 0x25b   : > { %v5773_v17 = vpop.eup %5772  ;;  %v2820_v63 = vmul.f32 0.5, %v5771_v56  ;;  %5782 = vtanh.f32 %v8421_v1  ;;  %4578 = vadd.xlane.f32.xlu0 %v3715_v39  ;;  %v3618_v26 = vmul.f32 %v3298_v62, %v9258_v24  ;;  %v2344_v46 = vmul.f32 0.5, %v9270_v44  ;;  %v4685_v55 = vpop.xlane.xlu1 %4684 }
 0x25c   : > { %v3139_v8 = vadd.f32 0.5, %v2819_v2  ;;  %v2980_v25 = vmul.f32 0.5, %v5773_v17  ;;  %5784 = vtanh.f32 %v8425_v12  ;;  %v3716_v59 = vadd.f32 %v3458_v13, %v3457_v5  ;;  %4892 = vst.msk [vmem:[%s7755_s5 + $0x388] sm:$0xff] %vm4778_vm1, %v4685_v55  ;;  %v9278_v13 = vld [vmem:[#allocation9_spill] sm:$0xff] }
 0x25d   : > { %v5775_v21 = vpop.eup %5774  ;;  %v3619_v54 = vmul.f32 %v3299_v28, %v9259_v48  ;;  %v3140_v22 = vadd.f32 0.5, %v2820_v63  ;;  %5786 = vtanh.f32 %v8432_v40  ;;  %v3796_v16 = vadd.f32 %v3618_v26, %v3617_v41  ;;  %v9272_v40 = vld [vmem:[#allocation38_spill] sm:$0xff] }
 0x25e   : > { %v5777_v43 = vpop.eup %5776  ;;  %v3459_v47 = vmul.f32 %v3139_v8, %v9260_v34  ;;  %v3300_v1 = vadd.f32 0.5, %v2980_v25  ;;  %v2981_v19 = vmul.f32 0.5, %v5775_v21  ;;  %v2345_v12 = vmul.f32 0.5, %v9271_v37  ;;  %4580 = vadd.xlane.f32.xlu1 %v3716_v59  ;;  %v9279_v25 = vld [vmem:[#allocation18_spill] sm:$0xff] }
 0x25f   : > { %v3460_v45 = vmul.f32 %v3140_v22, %v9261_v32  ;;  %v2821_v24 = vmul.f32 0.5, %v5777_v43  ;;  %4738 = vadd.xlane.f32.xlu0 %v3795_v52  ;;  %v2185_v3 = vmul.f32 0.5, %v9272_v40  ;;  %v2186_v57 = vmul.f32 0.5, %v9273_v6  ;;  %v9274_v32 = vld [vmem:[#allocation7_spill] sm:$0xff]  ;;  %v9276_v52 = vld [vmem:[#allocation8_spill] sm:$0xff] }
 0x260   : > { %v3620_v48 = vmul.f32 %v3300_v1, %v9262_v15  ;;  %v3301_v0 = vadd.f32 0.5, %v2981_v19  ;;  %v5779_v34 = vpop.eup %5778  ;;  %5788 = vtanh.f32 %v2344_v46  ;;  %v2346_v4 = vmul.f32 0.5, %v9274_v32  ;;  %v4527_v15 = vpop.xlane.xlu0 %4526  ;;  %v9280_v43 = vld [vmem:[#allocation3_spill] sm:$0xff] }
 0x261   : > { %v3717_v60 = vadd.f32 %v3460_v45, %v3459_v47  ;;  %v3141_v14 = vadd.f32 0.5, %v2821_v24  ;;  %v2822_v11 = vmul.f32 0.5, %v5779_v34  ;;  %5790 = vtanh.f32 %v2345_v12  ;;  %4813 = vst.msk [vmem:[%s7755_s5 + $0x110] sm:$0xff] %vm4778_vm1, %v4527_v15  ;;  %v9281_v46 = vld [vmem:[#allocation43_spill] sm:$0xff] }
 0x262   : > { %v5781_v38 = vpop.eup %5780  ;;  %v3797_v42 = vadd.f32 %v3620_v48, %v3619_v54  ;;  %v3621_v20 = vmul.f32 %v3301_v0, %v9263_v27  ;;  %5792 = vtanh.f32 %v2185_v3  ;;  %v2347_v35 = vmul.f32 0.5, %v9275_v61  ;;  %4740 = vadd.xlane.f32.xlu1 %v3796_v16  ;;  %v9277_v27 = vld [vmem:[#allocation41_spill] sm:$0xff] }
 0x263   : > { %v3461_v39 = vmul.f32 %v3141_v14, %v9264_v51  ;;  %v2982_v41 = vmul.f32 0.5, %v5781_v38  ;;  %4582 = vadd.xlane.f32.xlu0 %v3717_v60  ;;  %v3142_v56 = vadd.f32 0.5, %v2822_v11  ;;  %5794 = vtanh.f32 %v2186_v57  ;;  %v4529_v48 = vpop.xlane.xlu1 %4528  ;;  %v9282_v60 = vld [vmem:[#allocation19_spill] sm:$0xff] }
 0x264   : > { %v2187_v5 = vmul.f32 0.5, %v9276_v52  ;;  %v2188_v62 = vmul.f32 0.5, %v9277_v27  ;;  %5796 = vtanh.f32 %v2346_v4  ;;  %v2348_v28 = vmul.f32 0.5, %v9278_v13  ;;  %v4687_v45 = vpop.xlane.xlu0 %4686  ;;  %4814 = vst.msk [vmem:[%s7755_s5 + $0x118] sm:$0xff] %vm4778_vm1, %v4529_v48  ;;  %v9283_v4 = vld [vmem:[#allocation4_spill] sm:$0xff] }
 0x265   : > { %v5783_v2 = vpop.eup %5782  ;;  %v3302_v17 = vadd.f32 0.5, %v2982_v41  ;;  %v2349_v51 = vmul.f32 0.5, %v8094_v29  ;;  %v3462_v26 = vmul.f32 %v3142_v56, %v9265_v18  ;;  %5798 = vtanh.f32 %v2347_v35  ;;  %4893 = vst.msk [vmem:[%s7755_s5 + $0x390] sm:$0xff] %vm4778_vm1, %v4687_v45  ;;  %v9285_v41 = vld [vmem:[#allocation20_spill] sm:$0xff] }
 0x266   : > { %v5785_v63 = vpop.eup %5784  ;;  %v2983_v8 = vmul.f32 0.5, %v5783_v2  ;;  %v2189_v21 = vmul.f32 0.5, %v9279_v25  ;;  %5800 = vtanh.f32 %v2187_v5  ;;  %v2190_v16 = vmul.f32 0.5, %v9280_v43 }
 0x267   : > { %v5787_v59 = vpop.eup %5786  ;;  %v3622_v54 = vmul.f32 %v3302_v17, %v9266_v23  ;;  %v2823_v22 = vmul.f32 0.5, %v5785_v63  ;;  %4742 = vadd.xlane.f32.xlu0 %v3797_v42  ;;  %v3718_v47 = vadd.f32 %v3462_v26, %v3461_v39  ;;  %5802 = vtanh.f32 %v2188_v62  ;;  %v4689_v5 = vpop.xlane.xlu1 %4688 }
 0x268   : > { %v3303_v1 = vadd.f32 0.5, %v2983_v8  ;;  %v2824_v19 = vmul.f32 0.5, %v5787_v59  ;;  %5804 = vtanh.f32 %v2348_v28  ;;  %v2350_v12 = vmul.f32 0.5, %v9281_v46  ;;  %v4531_v62 = vpop.xlane.xlu0 %4530  ;;  %4894 = vst.msk [vmem:[%s7755_s5 + $0x398] sm:$0xff] %vm4778_vm1, %v4689_v5  ;;  %v9287_v8 = vld [vmem:[#allocation21_spill] sm:$0xff] }
 0x269   : > { %v3798_v18 = vadd.f32 %v3622_v54, %v3621_v20  ;;  %v3143_v24 = vadd.f32 0.5, %v2823_v22  ;;  %5806 = vtanh.f32 %v2349_v51  ;;  %v2351_v3 = vmul.f32 0.5, %v8118_v31  ;;  %4584 = vadd.xlane.f32.xlu1 %v3718_v47  ;;  %4815 = vst.msk [vmem:[%s7755_s5 + $0x120] sm:$0xff] %vm4778_vm1, %v4531_v62 }
 0x26a   : > { %v3623_v23 = vmul.f32 %v3303_v1, %v9267_v49  ;;  %v3144_v0 = vadd.f32 0.5, %v2824_v19  ;;  %v5789_v57 = vpop.eup %5788  ;;  %5808 = vtanh.f32 %v2189_v21  ;;  %v2191_v14 = vmul.f32 0.5, %v9282_v60  ;;  %v9284_v49 = vld [vmem:[#allocation10_spill] sm:$0xff] }
 0x26b   : > { %v3463_v34 = vmul.f32 %v3143_v24, %v9268_v53  ;;  %v2192_v55 = vmul.f32 0.5, %v9283_v4  ;;  %v5791_v38 = vpop.eup %5790  ;;  %v2984_v20 = vmul.f32 0.5, %v5789_v57  ;;  %5810 = vtanh.f32 %v2190_v16  ;;  %v9286_v53 = vld [vmem:[#allocation44_spill] sm:$0xff]  ;;  %v4533_v24 = vpop.xlane.xlu1 %4532 }
 0x26c   : > { %v3464_v42 = vmul.f32 %v3144_v0, %v9269_v9  ;;  %v2352_v11 = vmul.f32 0.5, %v9284_v49  ;;  %v5793_v15 = vpop.eup %5792  ;;  %v2985_v39 = vmul.f32 0.5, %v5791_v38  ;;  %5812 = vtanh.f32 %v2350_v12  ;;  %4816 = vst.msk [vmem:[%s7755_s5 + $0x128] sm:$0xff] %vm4778_vm1, %v4533_v24 }
 0x26d   : > { %v2353_v35 = vmul.f32 0.5, %v9285_v41  ;;  %v2193_v56 = vmul.f32 0.5, %v9286_v53  ;;  %v5795_v2 = vpop.eup %5794  ;;  %v3304_v28 = vadd.f32 0.5, %v2984_v20  ;;  %v2825_v51 = vmul.f32 0.5, %v5793_v15  ;;  %4744 = vadd.xlane.f32.xlu1 %v3798_v18  ;;  %v4691_v18 = vpop.xlane.xlu0 %4690 }
 0x26e   : > { %v3719_v17 = vadd.f32 %v3464_v42, %v3463_v34  ;;  %5814 = vtanh.f32 %v2351_v3  ;;  %v5797_v9 = vpop.eup %5796  ;;  %v3305_v63 = vadd.f32 0.5, %v2985_v39  ;;  %v2826_v26 = vmul.f32 0.5, %v5795_v2  ;;  %4895 = vst.msk [vmem:[%s7755_s5 + $0x3a0] sm:$0xff] %vm4778_vm1, %v4691_v18 }
 0x26f   : > { %5816 = vtanh.f32 %v2191_v14  ;;  %v2194_v21 = vmul.f32 0.5, %v9287_v8  ;;  %v5799_v59 = vpop.eup %5798  ;;  %v3624_v54 = vmul.f32 %v3304_v28, %v9270_v44  ;;  %v3145_v22 = vadd.f32 0.5, %v2825_v51  ;;  %v4693_v5 = vpop.xlane.xlu1 %4692 }
 0x270   : > { %v2986_v16 = vmul.f32 0.5, %v5797_v9  ;;  %5818 = vtanh.f32 %v2192_v55  ;;  %4586 = vadd.xlane.f32.xlu0 %v3719_v17  ;;  %v5801_v47 = vpop.eup %5800  ;;  %v3625_v1 = vmul.f32 %v3305_v63, %v9271_v37  ;;  %v3146_v19 = vadd.f32 0.5, %v2826_v26  ;;  %4896 = vst.msk [vmem:[%s7755_s5 + $0x3a8] sm:$0xff] %vm4778_vm1, %v4693_v5 }
 0x271   : > { %v2987_v45 = vmul.f32 0.5, %v5799_v59  ;;  %5820 = vtanh.f32 %v2352_v11  ;;  %v5803_v12 = vpop.eup %5802  ;;  %v3799_v48 = vadd.f32 %v3624_v54, %v3623_v23  ;;  %v3465_v0 = vmul.f32 %v3145_v22, %v9272_v40  ;;  %v9288_v59 = vld [vmem:[#allocation22_spill] sm:$0xff] }
 0x272   : > { %v3306_v3 = vadd.f32 0.5, %v2986_v16  ;;  %v2827_v44 = vmul.f32 0.5, %v5801_v47  ;;  %v5805_v57 = vpop.eup %5804  ;;  %v3466_v34 = vmul.f32 %v3146_v19, %v9273_v6  ;;  %v2828_v37 = vmul.f32 0.5, %v5803_v12  ;;  %v4535_v6 = vpop.xlane.xlu0 %4534 }
 0x273   : > { %v3307_v14 = vadd.f32 0.5, %v2987_v45  ;;  %5822 = vtanh.f32 %v2353_v35  ;;  %v5807_v55 = vpop.eup %5806  ;;  %v2988_v23 = vmul.f32 0.5, %v5805_v57  ;;  %4817 = vst.msk [vmem:[%s7755_s5 + $0x130] sm:$0xff] %vm4778_vm1, %v4535_v6  ;;  %v2354_v54 = vmul.f32 0.5, %v9288_v59  ;;  %v4537_v45 = vpop.xlane.xlu1 %4536  ;;  %v9291_v6 = vld [vmem:[#allocation24_spill] sm:$0xff] }
 0x274   : > { %v3626_v38 = vmul.f32 %v3306_v3, %v9274_v32  ;;  %v3147_v42 = vadd.f32 0.5, %v2827_v44  ;;  %5824 = vtanh.f32 %v2193_v56  ;;  %4746 = vadd.xlane.f32.xlu0 %v3799_v48  ;;  %v5809_v40 = vpop.eup %5808  ;;  %v3720_v20 = vadd.f32 %v3466_v34, %v3465_v0  ;;  %4818 = vst.msk [vmem:[%s7755_s5 + $0x138] sm:$0xff] %vm4778_vm1, %v4537_v45 }
 0x275   : > { %v3627_v11 = vmul.f32 %v3307_v14, %v9275_v61  ;;  %v3148_v15 = vadd.f32 0.5, %v2828_v37  ;;  %v2989_v39 = vmul.f32 0.5, %v5807_v55  ;;  %v5811_v62 = vpop.eup %5810  ;;  %v3308_v17 = vadd.f32 0.5, %v2988_v23  ;;  %v9289_v14 = vld [vmem:[#allocation45_spill] sm:$0xff]  ;;  %v9290_v23 = vld [vmem:[#allocation23_spill] sm:$0xff] }
 0x276   : > { %v3800_v2 = vadd.f32 %v3626_v38, %v3625_v1  ;;  %v3467_v35 = vmul.f32 %v3147_v42, %v9276_v52  ;;  %v2829_v32 = vmul.f32 0.5, %v5809_v40  ;;  %v5813_v56 = vpop.eup %5812  ;;  %v2830_v9 = vmul.f32 0.5, %v5811_v62  ;;  %4588 = vadd.xlane.f32.xlu1 %v3720_v20 }
 0x277   : > { %v3468_v28 = vmul.f32 %v3148_v15, %v9277_v27  ;;  %v3309_v51 = vadd.f32 0.5, %v2989_v39  ;;  %5826 = vtanh.f32 %v2194_v21  ;;  %v3628_v63 = vmul.f32 %v3308_v17, %v9278_v13  ;;  %v4695_v27 = vpop.xlane.xlu0 %4694 }
 0x278   : > { %v5815_v61 = vpop.eup %5814  ;;  %v3149_v26 = vadd.f32 0.5, %v2829_v32  ;;  %v2990_v52 = vmul.f32 0.5, %v5813_v56  ;;  %v3150_v1 = vadd.f32 0.5, %v2830_v9  ;;  %4897 = vst.msk [vmem:[%s7755_s5 + $0x3b0] sm:$0xff] %vm4778_vm1, %v4695_v27  ;;  %5828 = vtanh.f32 %v2354_v54  ;;  %v9292_v56 = vld [vmem:[#allocation46_spill] sm:$0xff] }
 0x279   : > { %v5817_v22 = vpop.eup %5816  ;;  %v3721_v16 = vadd.f32 %v3468_v28, %v3467_v35  ;;  %v3629_v47 = vmul.f32 %v3309_v51, %v8094_v29  ;;  %v2991_v19 = vmul.f32 0.5, %v5815_v61  ;;  %v3801_v21 = vadd.f32 %v3628_v63, %v3627_v11 }
 0x27a   : > { %v5819_v18 = vpop.eup %5818  ;;  %v3469_v24 = vmul.f32 %v3149_v26, %v9279_v25  ;;  %v3310_v12 = vadd.f32 0.5, %v2990_v52  ;;  %v2831_v13 = vmul.f32 0.5, %v5817_v22  ;;  %v3470_v0 = vmul.f32 %v3150_v1, %v9280_v43  ;;  %4748 = vadd.xlane.f32.xlu1 %v3800_v2  ;;  %v9294_v52 = vld [vmem:[#allocation61_spill] sm:$0xff]  ;;  %v9296_v1 = vld [vmem:[#allocation51_spill] sm:$0xff] }
 0x27b   : > { %v5821_v48 = vpop.eup %5820  ;;  %v3311_v3 = vadd.f32 0.5, %v2991_v19  ;;  %v2832_v44 = vmul.f32 0.5, %v5819_v18  ;;  %4590 = vadd.xlane.f32.xlu0 %v3721_v16  ;;  %v2355_v25 = vmul.f32 0.5, %v9289_v14  ;;  %v2195_v40 = vmul.f32 0.5, %v9290_v23  ;;  %v4697_v61 = vpop.xlane.xlu1 %4696  ;;  %v9295_v16 = vld [vmem:[#allocation48_spill] sm:$0xff]  ;;  %v9297_v19 = vld [vmem:[#allocation49_spill] sm:$0xff] }
 0x27c   : > { %v3630_v29 = vmul.f32 %v3310_v12, %v9281_v46  ;;  %v3151_v57 = vadd.f32 0.5, %v2831_v13  ;;  %v2992_v34 = vmul.f32 0.5, %v5821_v48  ;;  %v3722_v55 = vadd.f32 %v3470_v0, %v3469_v24  ;;  %4898 = vst.msk [vmem:[%s7755_s5 + $0x3b8] sm:$0xff] %vm4778_vm1, %v4697_v61  ;;  %v4539_v45 = vpop.xlane.xlu0 %4538  ;;  %v9299_v24 = vld [vmem:[#allocation50_spill] sm:$0xff]  ;;  %v9300_v13 = vld [vmem:[#allocation52_spill] sm:$0xff]  ;;  %v9310_v61 = vld [vmem:[#allocation57_spill] sm:$0xff] }
 0x27d   : > { %v5823_v37 = vpop.eup %5822  ;;  %v3631_v38 = vmul.f32 %v3311_v3, %v8118_v31  ;;  %v3152_v42 = vadd.f32 0.5, %v2832_v44  ;;  %5830 = vtanh.f32 %v2355_v25  ;;  %v2196_v62 = vmul.f32 0.5, %v9291_v6  ;;  %4819 = vst.msk [vmem:[%s7755_s5 + $0x140] sm:$0xff] %vm4778_vm1, %v4539_v45  ;;  %v9301_v44 = vld [vmem:[#allocation63_spill] sm:$0xff]  ;;  %v9303_v25 = vld [vmem:[#allocation5_spill] sm:$0xff] }
 0x27e   : > { %v5825_v20 = vpop.eup %5824  ;;  %v3802_v43 = vadd.f32 %v3630_v29, %v3629_v47  ;;  %v3471_v11 = vmul.f32 %v3151_v57, %v9282_v60  ;;  %v3312_v15 = vadd.f32 0.5, %v2992_v34  ;;  %v2993_v39 = vmul.f32 0.5, %v5823_v37  ;;  %4592 = vadd.xlane.f32.xlu1 %v3722_v55  ;;  %v9302_v57 = vld [vmem:[#allocation64_spill] sm:$0xff]  ;;  %v9304_v55 = vld [vmem:[#allocation55_spill] sm:$0xff] }
 0x27f   : > { %v3472_v5 = vmul.f32 %v3152_v42, %v9283_v4  ;;  %v2833_v46 = vmul.f32 0.5, %v5825_v20  ;;  %4750 = vadd.xlane.f32.xlu0 %v3801_v21  ;;  %5832 = vtanh.f32 %v2195_v40  ;;  %v2356_v35 = vmul.f32 0.5, %v8172_v58  ;;  %v9305_v20 = vld [vmem:[#allocation54_spill] sm:$0xff] }
 0x280   : > { %v3632_v2 = vmul.f32 %v3312_v15, %v9284_v49  ;;  %v3313_v31 = vadd.f32 0.5, %v2993_v39  ;;  %5834 = vtanh.f32 %v2196_v62  ;;  %v2357_v28 = vmul.f32 0.5, %v9292_v56  ;;  %v9293_v49 = vld [vmem:[#allocation47_spill] sm:$0xff]  ;;  %v9307_v39 = vld [vmem:[#allocation56_spill] sm:$0xff] }
 0x281   : > { %v5827_v17 = vpop.eup %5826  ;;  %v3723_v32 = vadd.f32 %v3472_v5, %v3471_v11  ;;  %v3153_v60 = vadd.f32 0.5, %v2833_v46  ;;  %5836 = vtanh.f32 %v2356_v35  ;;  %v2197_v26 = vmul.f32 0.5, %v9293_v49  ;;  %v9308_v46 = vld [vmem:[#allocation11_spill] sm:$0xff] }
 0x282   : > { %v3803_v4 = vadd.f32 %v3632_v2, %v3631_v38  ;;  %v3633_v51 = vmul.f32 %v3313_v31, %v9285_v41  ;;  %v2834_v9 = vmul.f32 0.5, %v5827_v17  ;;  %5838 = vtanh.f32 %v2357_v28  ;;  %4752 = vadd.xlane.f32.xlu1 %v3802_v43  ;;  %v5829_v18 = vpop.eup %5828  ;;  %v4699_v2 = vpop.xlane.xlu0 %4698 }
 0x283   : > { %v3473_v63 = vmul.f32 %v3153_v60, %v9286_v53  ;;  %v2198_v54 = vmul.f32 0.5, %v9294_v52  ;;  %4594 = vadd.xlane.f32.xlu0 %v3723_v32  ;;  %v2358_v47 = vmul.f32 0.5, %v9295_v16  ;;  %v2359_v41 = vmul.f32 0.5, %v9296_v1  ;;  %v9298_v53 = vld [vmem:[#allocation62_spill] sm:$0xff]  ;;  %4899 = vst.msk [vmem:[%s7755_s5 + $0x3c0] sm:$0xff] %vm4778_vm1, %v4699_v2  ;;  %v4541_v28 = vpop.xlane.xlu1 %4540 }
 0x284   : > { %v3154_v22 = vadd.f32 0.5, %v2834_v9  ;;  %v2199_v27 = vmul.f32 0.5, %v9297_v19  ;;  %5840 = vtanh.f32 %v2197_v26  ;;  %v2200_v21 = vmul.f32 0.5, %v9298_v53  ;;  %v9309_v32 = vld [vmem:[#allocation58_spill] sm:$0xff]  ;;  %4820 = vst.msk [vmem:[%s7755_s5 + $0x148] sm:$0xff] %vm4778_vm1, %v4541_v28 }
 0x285   : > { %v2360_v12 = vmul.f32 0.5, %v9299_v24  ;;  %v2361_v48 = vmul.f32 0.5, %v9300_v13  ;;  %v2994_v3 = vmul.f32 0.5, %v5829_v18  ;;  %5842 = vtanh.f32 %v2198_v54  ;;  %v9311_v18 = vld [vmem:[#allocation59_spill] sm:$0xff]  ;;  %v9312_v2 = vld [vmem:[#allocation26_spill] sm:$0xff] }
 0x286   : > { %v3474_v0 = vmul.f32 %v3154_v22, %v9287_v8  ;;  %v2201_v29 = vmul.f32 0.5, %v9301_v44  ;;  %5844 = vtanh.f32 %v2358_v47  ;;  %v2202_v34 = vmul.f32 0.5, %v9302_v57  ;;  %v9306_v8 = vld [vmem:[#allocation53_spill] sm:$0xff] }
 0x287   : > { %v2362_v37 = vmul.f32 0.5, %v9303_v25  ;;  %v2363_v38 = vmul.f32 0.5, %v9304_v55  ;;  %4754 = vadd.xlane.f32.xlu0 %v3803_v4  ;;  %v3314_v40 = vadd.f32 0.5, %v2994_v3  ;;  %5846 = vtanh.f32 %v2359_v41  ;;  %v5831_v11 = vpop.eup %5830 }
 0x288   : > { %v3724_v42 = vadd.f32 %v3474_v0, %v3473_v63  ;;  %v2203_v43 = vmul.f32 0.5, %v9305_v20  ;;  %5848 = vtanh.f32 %v2199_v27  ;;  %v8564_v15 = vmul.f32 0.5, %v9306_v8 }
 0x289   : > { %v8567_v5 = vmul.f32 0.5, %v9307_v39  ;;  %v8570_v62 = vmul.f32 0.5, %v9308_v46  ;;  %v5833_v31 = vpop.eup %5832  ;;  %v3634_v35 = vmul.f32 %v3314_v40, %v9288_v59  ;;  %v2995_v17 = vmul.f32 0.5, %v5831_v11 }
 0x28a   : > { %5850 = vtanh.f32 %v2200_v21  ;;  %4596 = vadd.xlane.f32.xlu1 %v3724_v42  ;;  %v8574_v60 = vmul.f32 0.5, %v9309_v32  ;;  %v5835_v4 = vpop.eup %5834  ;;  %v2835_v9 = vmul.f32 0.5, %v5833_v31  ;;  %v8579_v63 = vmul.f32 0.5, %v9310_v61 }
 0x28b   : > { %5852 = vtanh.f32 %v2360_v12  ;;  %v8582_v26 = vmul.f32 0.5, %v8285_v36  ;;  %v5837_v59 = vpop.eup %5836  ;;  %v3804_v54 = vadd.f32 %v3634_v35, %v3633_v51  ;;  %v3315_v22 = vadd.f32 0.5, %v2995_v17  ;;  %v4543_v12 = vpop.xlane.xlu0 %4542 }
 0x28c   : > { %v2836_v47 = vmul.f32 0.5, %v5835_v4  ;;  %5854 = vtanh.f32 %v2361_v48  ;;  %v5839_v41 = vpop.eup %5838  ;;  %v3155_v27 = vadd.f32 0.5, %v2835_v9  ;;  %v2996_v45 = vmul.f32 0.5, %v5837_v59  ;;  %v4701_v51 = vpop.xlane.xlu1 %4700  ;;  %4821 = vst.msk [vmem:[%s7755_s5 + $0x150] sm:$0xff] %vm4778_vm1, %v4543_v12 }
 0x28d   : > { %5856 = vtanh.f32 %v2201_v29  ;;  %v8587_v21 = vmul.f32 0.5, %v9311_v18  ;;  %v3635_v0 = vmul.f32 %v3315_v22, %v9289_v14  ;;  %v2997_v42 = vmul.f32 0.5, %v5839_v41  ;;  %4900 = vst.msk [vmem:[%s7755_s5 + $0x3c8] sm:$0xff] %vm4778_vm1, %v4701_v51 }
 0x28e   : > { %v3156_v3 = vadd.f32 0.5, %v2836_v47  ;;  %5858 = vtanh.f32 %v2202_v34  ;;  %4756 = vadd.xlane.f32.xlu1 %v3804_v54  ;;  %v5841_v40 = vpop.eup %5840  ;;  %v3475_v48 = vmul.f32 %v3155_v27, %v9290_v23  ;;  %v3316_v11 = vadd.f32 0.5, %v2996_v45  ;;  %v9313_v23 = vld [vmem:[#allocation60_spill] sm:$0xff] }
 0x28f   : > { %5860 = vtanh.f32 %v2362_v37  ;;  %v8594_v29 = vmul.f32 0.5, %v9312_v2  ;;  %v5843_v31 = vpop.eup %5842  ;;  %v3317_v35 = vadd.f32 0.5, %v2997_v42  ;;  %v2837_v34 = vmul.f32 0.5, %v5841_v40  ;;  %v4703_v9 = vpop.xlane.xlu0 %4702 }
 0x290   : > { %v3476_v14 = vmul.f32 %v3156_v3, %v9291_v6  ;;  %5862 = vtanh.f32 %v2363_v38  ;;  %v5845_v17 = vpop.eup %5844  ;;  %v3636_v28 = vmul.f32 %v3316_v11, %v8172_v58  ;;  %v2838_v4 = vmul.f32 0.5, %v5843_v31  ;;  %4901 = vst.msk [vmem:[%s7755_s5 + $0x3d0] sm:$0xff] %vm4778_vm1, %v4703_v9  ;;  %v4545_v6 = vpop.xlane.xlu1 %4544 }
 0x291   : > { %5864 = vtanh.f32 %v2203_v43  ;;  %v8601_v37 = vmul.f32 0.5, %v9313_v23  ;;  %v5847_v59 = vpop.eup %5846  ;;  %v3637_v22 = vmul.f32 %v3317_v35, %v9292_v56  ;;  %v3157_v47 = vadd.f32 0.5, %v2837_v34  ;;  %4822 = vst.msk [vmem:[%s7755_s5 + $0x158] sm:$0xff] %vm4778_vm1, %v4545_v6 }
 0x292   : > { %v3725_v54 = vadd.f32 %v3476_v14, %v3475_v48  ;;  %v2998_v41 = vmul.f32 0.5, %v5845_v17  ;;  %v5849_v38 = vpop.eup %5848  ;;  %v3805_v27 = vadd.f32 %v3636_v28, %v3635_v0  ;;  %v3158_v45 = vadd.f32 0.5, %v2838_v4 }
 0x293   : > { %v2999_v58 = vmul.f32 0.5, %v5847_v59  ;;  %5866 = vtanh.f32 %v8564_v15  ;;  %v3477_v12 = vmul.f32 %v3157_v47, %v9293_v49  ;;  %v2839_v42 = vmul.f32 0.5, %v5849_v38  ;;  %v4547_v15 = vpop.xlane.xlu0 %4546 }
 0x294   : > { %v5851_v43 = vpop.eup %5850  ;;  %v3318_v3 = vadd.f32 0.5, %v2998_v41  ;;  %5868 = vtanh.f32 %v8567_v5  ;;  %4598 = vadd.xlane.f32.xlu0 %v3725_v54  ;;  %v3478_v51 = vmul.f32 %v3158_v45, %v9294_v52  ;;  %v4705_v14 = vpop.xlane.xlu1 %4704  ;;  %4823 = vst.msk [vmem:[%s7755_s5 + $0x160] sm:$0xff] %vm4778_vm1, %v4547_v15 }
 0x295   : > { %v5853_v56 = vpop.eup %5852  ;;  %v3319_v40 = vadd.f32 0.5, %v2999_v58  ;;  %v2840_v0 = vmul.f32 0.5, %v5851_v43  ;;  %5870 = vtanh.f32 %v8570_v62  ;;  %v3159_v31 = vadd.f32 0.5, %v2839_v42  ;;  %4902 = vst.msk [vmem:[%s7755_s5 + $0x3d8] sm:$0xff] %vm4778_vm1, %v4705_v14 }
 0x296   : > { %v5855_v48 = vpop.eup %5854  ;;  %v3638_v11 = vmul.f32 %v3318_v3, %v9295_v16  ;;  %v3000_v49 = vmul.f32 0.5, %v5853_v56  ;;  %5872 = vtanh.f32 %v8574_v60  ;;  %v3726_v35 = vadd.f32 %v3478_v51, %v3477_v12  ;;  %v9314_v51 = vld [vmem:[#allocation65_spill] sm:$0xff] }
 0x297   : > { %v5857_v5 = vpop.eup %5856  ;;  %v3639_v52 = vmul.f32 %v3319_v40, %v9296_v1  ;;  %v3160_v34 = vadd.f32 0.5, %v2840_v0  ;;  %v3001_v17 = vmul.f32 0.5, %v5855_v48  ;;  %v3479_v4 = vmul.f32 %v3159_v31, %v9297_v19  ;;  %v4707_v1 = vpop.xlane.xlu0 %4706 }
 0x298   : > { %v5859_v62 = vpop.eup %5858  ;;  %v3806_v28 = vadd.f32 %v3638_v11, %v3637_v22  ;;  %v3320_v16 = vadd.f32 0.5, %v3000_v49  ;;  %v2841_v9 = vmul.f32 0.5, %v5857_v5  ;;  %4758 = vadd.xlane.f32.xlu0 %v3805_v27  ;;  %5874 = vtanh.f32 %v8579_v63  ;;  %4600 = vadd.xlane.f32.xlu1 %v3726_v35  ;;  %4903 = vst.msk [vmem:[%s7755_s5 + $0x3e0] sm:$0xff] %vm4778_vm1, %v4707_v1  ;;  %v4549_v19 = vpop.xlane.xlu1 %4548 }
 0x299   : > { %v5861_v60 = vpop.eup %5860  ;;  %v3480_v59 = vmul.f32 %v3160_v34, %v9298_v53  ;;  %v3321_v54 = vadd.f32 0.5, %v3001_v17  ;;  %v2842_v47 = vmul.f32 0.5, %v5859_v62  ;;  %5876 = vtanh.f32 %v8582_v26  ;;  %4824 = vst.msk [vmem:[%s7755_s5 + $0x168] sm:$0xff] %vm4778_vm1, %v4549_v19  ;;  %v9315_v17 = vld [vmem:[#allocation66_spill] sm:$0xff] }
 0x29a   : > { %v5863_v41 = vpop.eup %5862  ;;  %v3640_v6 = vmul.f32 %v3320_v16, %v9299_v24  ;;  %v3161_v22 = vadd.f32 0.5, %v2841_v9  ;;  %v3002_v38 = vmul.f32 0.5, %v5861_v60  ;;  %5878 = vtanh.f32 %v8587_v21 }
 0x29b   : > { %v5865_v27 = vpop.eup %5864  ;;  %v3727_v45 = vadd.f32 %v3480_v59, %v3479_v4  ;;  %v3641_v53 = vmul.f32 %v3321_v54, %v9300_v13  ;;  %v3162_v58 = vadd.f32 0.5, %v2842_v47  ;;  %v3003_v43 = vmul.f32 0.5, %v5863_v41 }
 0x29c   : > { %v3807_v63 = vadd.f32 %v3640_v6, %v3639_v52  ;;  %v3481_v12 = vmul.f32 %v3161_v22, %v9301_v44  ;;  %v3322_v3 = vadd.f32 0.5, %v3002_v38  ;;  %v2843_v24 = vmul.f32 0.5, %v5865_v27  ;;  %4760 = vadd.xlane.f32.xlu1 %v3806_v28  ;;  %v9316_v27 = vld [vmem:[#allocation67_spill] sm:$0xff] }
 0x29d   : > { %v5867_v42 = vpop.eup %5866  ;;  %v3482_v56 = vmul.f32 %v3162_v58, %v9302_v57  ;;  %v3323_v26 = vadd.f32 0.5, %v3003_v43  ;;  %v2368_v40 = vmul.f32 0.5, %v9314_v51  ;;  %4602 = vadd.xlane.f32.xlu0 %v3727_v45  ;;  %5880 = vtanh.f32 %v8594_v29  ;;  %v9318_v43 = vld [vmem:[#allocation71_spill] sm:$0xff] }
 0x29e   : > { %v5869_v13 = vpop.eup %5868  ;;  %v3642_v0 = vmul.f32 %v3322_v3, %v9303_v25  ;;  %v3163_v15 = vadd.f32 0.5, %v2843_v24  ;;  %v2844_v48 = vmul.f32 0.5, %v5867_v42  ;;  %5882 = vtanh.f32 %v8601_v37  ;;  %v4709_v9 = vpop.xlane.xlu1 %4708  ;;  %v9319_v24 = vld [vmem:[#allocation69_spill] sm:$0xff] }
 0x29f   : > { %v5871_v44 = vpop.eup %5870  ;;  %v3728_v11 = vadd.f32 %v3482_v56, %v3481_v12  ;;  %v3643_v31 = vmul.f32 %v3323_v26, %v9304_v55  ;;  %v3004_v49 = vmul.f32 0.5, %v5869_v13  ;;  %5884 = vtanh.f32 %v2368_v40  ;;  %4904 = vst.msk [vmem:[%s7755_s5 + $0x3e8] sm:$0xff] %vm4778_vm1, %v4709_v9  ;;  %v9320_v13 = vld [vmem:[#allocation70_spill] sm:$0xff] }
 0x2a0   : > { %v5873_v57 = vpop.eup %5872  ;;  %v3808_v21 = vadd.f32 %v3642_v0, %v3641_v53  ;;  %v3483_v14 = vmul.f32 %v3163_v15, %v9305_v20  ;;  %v3164_v5 = vadd.f32 0.5, %v2844_v48  ;;  %v3005_v35 = vmul.f32 0.5, %v5871_v44  ;;  %v4551_v38 = vpop.xlane.xlu0 %4550  ;;  %v9317_v53 = vld [vmem:[#allocation68_spill] sm:$0xff] }
 0x2a1   : > { %v3324_v52 = vadd.f32 0.5, %v3004_v49  ;;  %v2845_v34 = vmul.f32 0.5, %v5873_v57  ;;  %v2369_v25 = vmul.f32 0.5, %v8330_v10  ;;  %4762 = vadd.xlane.f32.xlu0 %v3807_v63  ;;  %4604 = vadd.xlane.f32.xlu1 %v3728_v11  ;;  %v2209_v62 = vmul.f32 0.5, %v9315_v17  ;;  %4825 = vst.msk [vmem:[%s7755_s5 + $0x170] sm:$0xff] %vm4778_vm1, %v4551_v38  ;;  %v9321_v49 = vld [vmem:[#allocation72_spill] sm:$0xff] }
 0x2a2   : > { %v3484_v29 = vmul.f32 %v3164_v5, %v9306_v8  ;;  %v3325_v55 = vadd.f32 0.5, %v3005_v35  ;;  %v2210_v37 = vmul.f32 0.5, %v8319_v33  ;;  %v5875_v28 = vpop.eup %5874  ;;  %v2370_v16 = vmul.f32 0.5, %v8333_v7 }
 0x2a3   : > { %v3644_v20 = vmul.f32 %v3324_v52, %v9307_v39  ;;  %v3165_v4 = vadd.f32 0.5, %v2845_v34  ;;  %5886 = vtanh.f32 %v2369_v25  ;;  %v5877_v60 = vpop.eup %5876  ;;  %v2846_v47 = vmul.f32 0.5, %v5875_v28 }
 0x2a4   : > { %v3729_v59 = vadd.f32 %v3484_v29, %v3483_v14  ;;  %v3645_v54 = vmul.f32 %v3325_v55, %v9308_v46  ;;  %5888 = vtanh.f32 %v2209_v62  ;;  %v3006_v41 = vmul.f32 0.5, %v5877_v60  ;;  %v5879_v46 = vpop.eup %5878 }
 0x2a5   : > { %v3809_v8 = vadd.f32 %v3644_v20, %v3643_v31  ;;  %v3485_v1 = vmul.f32 %v3165_v4, %v9309_v32  ;;  %5890 = vtanh.f32 %v2210_v37  ;;  %4764 = vadd.xlane.f32.xlu1 %v3808_v21  ;;  %v3166_v39 = vadd.f32 0.5, %v2846_v47 }
 0x2a6   : > { %5892 = vtanh.f32 %v2370_v16  ;;  %v2371_v6 = vmul.f32 0.5, %v8347_v50  ;;  %v2211_v22 = vmul.f32 0.5, %v8335_v30  ;;  %4606 = vadd.xlane.f32.xlu0 %v3729_v59  ;;  %v3326_v19 = vadd.f32 0.5, %v3006_v41 }
 0x2a7   : > { %v2212_v45 = vmul.f32 0.5, %v9316_v27  ;;  %v2372_v58 = vmul.f32 0.5, %v9317_v53  ;;  %v2373_v63 = vmul.f32 0.5, %v9318_v43  ;;  %v5881_v32 = vpop.eup %5880  ;;  %v3486_v12 = vmul.f32 %v3166_v39, %v9310_v61 }
 0x2a8   : > { %v3007_v3 = vmul.f32 0.5, %v5879_v46  ;;  %5894 = vtanh.f32 %v2371_v6  ;;  %v2213_v42 = vmul.f32 0.5, %v9319_v24  ;;  %v5883_v56 = vpop.eup %5882  ;;  %v3646_v26 = vmul.f32 %v3326_v19, %v8285_v36 }
 0x2a9   : > { %v2847_v40 = vmul.f32 0.5, %v5881_v32  ;;  %5896 = vtanh.f32 %v2211_v22  ;;  %v2214_v0 = vmul.f32 0.5, %v9320_v13  ;;  %v3730_v15 = vadd.f32 %v3486_v12, %v3485_v1  ;;  %v5885_v11 = vpop.eup %5884  ;;  %v4711_v21 = vpop.xlane.xlu0 %4710 }
 0x2aa   : > { %v3327_v48 = vadd.f32 0.5, %v3007_v3  ;;  %v2848_v44 = vmul.f32 0.5, %v5883_v56  ;;  %5898 = vtanh.f32 %v2212_v45  ;;  %4766 = vadd.xlane.f32.xlu0 %v3809_v8  ;;  %v3810_v31 = vadd.f32 %v3646_v26, %v3645_v54  ;;  %4905 = vst.msk [vmem:[%s7755_s5 + $0x3f0] sm:$0xff] %vm4778_vm1, %v4711_v21  ;;  %v4553_v34 = vpop.xlane.xlu1 %4552 }
 0x2ab   : > { %v3167_v61 = vadd.f32 0.5, %v2847_v40  ;;  %5900 = vtanh.f32 %v2372_v58  ;;  %v2374_v57 = vmul.f32 0.5, %v9321_v49  ;;  %v3008_v36 = vmul.f32 0.5, %v5885_v11  ;;  %4608 = vadd.xlane.f32.xlu1 %v3730_v15  ;;  %4826 = vst.msk [vmem:[%s7755_s5 + $0x178] sm:$0xff] %vm4778_vm1, %v4553_v34 }
 0x2ac   : > { %v3168_v14 = vadd.f32 0.5, %v2848_v44  ;;  %5902 = vtanh.f32 %v2373_v63  ;;  %v3647_v35 = vmul.f32 %v3327_v48, %v9311_v18 }
 0x2ad   : > { %v5887_v5 = vpop.eup %5886  ;;  %v3487_v52 = vmul.f32 %v3167_v61, %v9312_v2  ;;  %5904 = vtanh.f32 %v2213_v42  ;;  %v3328_v55 = vadd.f32 0.5, %v3008_v36 }
 0x2ae   : > { %v5889_v25 = vpop.eup %5888  ;;  %v3488_v29 = vmul.f32 %v3168_v14, %v9313_v23  ;;  %v3009_v62 = vmul.f32 0.5, %v5887_v5  ;;  %5906 = vtanh.f32 %v2214_v0  ;;  %v4555_v9 = vpop.xlane.xlu0 %4554 }
 0x2af   : > { %v5891_v37 = vpop.eup %5890  ;;  %v2849_v28 = vmul.f32 0.5, %v5889_v25  ;;  %5908 = vtanh.f32 %v2374_v57  ;;  %v3648_v18 = vmul.f32 %v3328_v55, %v9314_v51  ;;  %4768 = vadd.xlane.f32.xlu1 %v3810_v31  ;;  %v4713_v59 = vpop.xlane.xlu1 %4712  ;;  %4827 = vst.msk [vmem:[%s7755_s5 + $0x180] sm:$0xff] %vm4778_vm1, %v4555_v9 }
 0x2b0   : > { %v5893_v20 = vpop.eup %5892  ;;  %v3731_v4 = vadd.f32 %v3488_v29, %v3487_v52  ;;  %v3329_v2 = vadd.f32 0.5, %v3009_v62  ;;  %v2850_v16 = vmul.f32 0.5, %v5891_v37  ;;  %4906 = vst.msk [vmem:[%s7755_s5 + $0x3f8] sm:$0xff] %vm4778_vm1, %v4713_v59 }
 0x2b1   : > { %v3169_v60 = vadd.f32 0.5, %v2849_v28  ;;  %v3010_v23 = vmul.f32 0.5, %v5893_v20  ;;  %v3811_v47 = vadd.f32 %v3648_v18, %v3647_v35 }
 0x2b2   : > { %v5895_v54 = vpop.eup %5894  ;;  %v3170_v8 = vadd.f32 0.5, %v2850_v16  ;;  %4610 = vadd.xlane.f32.xlu0 %v3731_v4  ;;  %v3649_v41 = vmul.f32 %v3329_v2, %v8330_v10  ;;  %v4715_v19 = vpop.xlane.xlu0 %4714 }
 0x2b3   : > { %v5897_v1 = vpop.eup %5896  ;;  %v3489_v51 = vmul.f32 %v3169_v60, %v9315_v17  ;;  %v3330_v39 = vadd.f32 0.5, %v3010_v23  ;;  %v3011_v6 = vmul.f32 0.5, %v5895_v54  ;;  %4907 = vst.msk [vmem:[%s7755_s5 + $0x400] sm:$0xff] %vm4778_vm1, %v4715_v19  ;;  %v4557_v12 = vpop.xlane.xlu1 %4556 }
 0x2b4   : > { %v5899_v22 = vpop.eup %5898  ;;  %v3490_v38 = vmul.f32 %v3170_v8, %v8319_v33  ;;  %v2851_v46 = vmul.f32 0.5, %v5897_v1  ;;  %4828 = vst.msk [vmem:[%s7755_s5 + $0x188] sm:$0xff] %vm4778_vm1, %v4557_v12 }
 0x2b5   : > { %v5901_v45 = vpop.eup %5900  ;;  %v3650_v58 = vmul.f32 %v3330_v39, %v8333_v7  ;;  %v3331_v63 = vadd.f32 0.5, %v3011_v6  ;;  %v2852_v32 = vmul.f32 0.5, %v5899_v22 }
 0x2b6   : > { %v5903_v3 = vpop.eup %5902  ;;  %v3732_v10 = vadd.f32 %v3490_v38, %v3489_v51  ;;  %v3171_v42 = vadd.f32 0.5, %v2851_v46  ;;  %v3012_v17 = vmul.f32 0.5, %v5901_v45  ;;  %4770 = vadd.xlane.f32.xlu0 %v3811_v47  ;;  %v4559_v11 = vpop.xlane.xlu0 %4558 }
 0x2b7   : > { %v5905_v56 = vpop.eup %5904  ;;  %v3812_v33 = vadd.f32 %v3650_v58, %v3649_v41  ;;  %v3172_v26 = vadd.f32 0.5, %v2852_v32  ;;  %v3013_v40 = vmul.f32 0.5, %v5903_v3  ;;  %v3651_v7 = vmul.f32 %v3331_v63, %v8347_v50  ;;  %v4717_v14 = vpop.xlane.xlu1 %4716  ;;  %4829 = vst.msk [vmem:[%s7755_s5 + $0x190] sm:$0xff] %vm4778_vm1, %v4559_v11 }
 0x2b8   : > { %v5907_v0 = vpop.eup %5906  ;;  %v3491_v15 = vmul.f32 %v3171_v42, %v8335_v30  ;;  %v3332_v48 = vadd.f32 0.5, %v3012_v17  ;;  %v2853_v44 = vmul.f32 0.5, %v5905_v56  ;;  %4612 = vadd.xlane.f32.xlu1 %v3732_v10  ;;  %4908 = vst.msk [vmem:[%s7755_s5 + $0x408] sm:$0xff] %vm4778_vm1, %v4717_v14 }
 0x2b9   : > { %v5909_v31 = vpop.eup %5908  ;;  %v3492_v61 = vmul.f32 %v3172_v26, %v9316_v27  ;;  %v3333_v57 = vadd.f32 0.5, %v3013_v40  ;;  %v2854_v21 = vmul.f32 0.5, %v5907_v0 }
 0x2ba   : > { %v3652_v36 = vmul.f32 %v3332_v48, %v9317_v53  ;;  %v3173_v5 = vadd.f32 0.5, %v2853_v44  ;;  %v3014_v50 = vmul.f32 0.5, %v5909_v31  ;;  %v4719_v29 = vpop.xlane.xlu0 %4718 }
 0x2bb   : > { %v3733_v30 = vadd.f32 %v3492_v61, %v3491_v15  ;;  %v3174_v35 = vadd.f32 0.5, %v2854_v21  ;;  %v3653_v34 = vmul.f32 %v3333_v57, %v9318_v43  ;;  %4909 = vst.msk [vmem:[%s7755_s5 + $0x410] sm:$0xff] %vm4778_vm1, %v4719_v29  ;;  %v4561_v53 = vpop.xlane.xlu1 %4560 }
 0x2bc   : > { %v3813_v52 = vadd.f32 %v3652_v36, %v3651_v7  ;;  %v3493_v27 = vmul.f32 %v3173_v5, %v9319_v24  ;;  %v3334_v25 = vadd.f32 0.5, %v3014_v50  ;;  %4772 = vadd.xlane.f32.xlu1 %v3812_v33  ;;  %4830 = vst.msk [vmem:[%s7755_s5 + $0x198] sm:$0xff] %vm4778_vm1, %v4561_v53 }
 0x2bd   : > { %v3494_v55 = vmul.f32 %v3174_v35, %v9320_v13  ;;  %4614 = vadd.xlane.f32.xlu0 %v3733_v30 }
 0x2be   : > { %v3654_v62 = vmul.f32 %v3334_v25, %v9321_v49  ;;  %v4563_v37 = vpop.xlane.xlu0 %4562 }
 0x2bf   : > { %v3734_v43 = vadd.f32 %v3494_v55, %v3493_v27  ;;  %v4721_v13 = vpop.xlane.xlu1 %4720  ;;  %4831 = vst.msk [vmem:[%s7755_s5 + $0x1a0] sm:$0xff] %vm4778_vm1, %v4563_v37 }
 0x2c0   : > { %v3814_v24 = vadd.f32 %v3654_v62, %v3653_v34  ;;  %4910 = vst.msk [vmem:[%s7755_s5 + $0x418] sm:$0xff] %vm4778_vm1, %v4721_v13 }
 0x2c1   : > { %4774 = vadd.xlane.f32.xlu0 %v3813_v52  ;;  %4616 = vadd.xlane.f32.xlu1 %v3734_v43 }
 0x2c2   : > { %v4723_v28 = vpop.xlane.xlu0 %4722 }
 0x2c3   : > { %4911 = vst.msk [vmem:[%s7755_s5 + $0x420] sm:$0xff] %vm4778_vm1, %v4723_v28  ;;  %v4565_v49 = vpop.xlane.xlu1 %4564 }
 0x2c4   : > { %4832 = vst.msk [vmem:[%s7755_s5 + $0x1a8] sm:$0xff] %vm4778_vm1, %v4565_v49 }
 0x2c5   : > { %4776 = vadd.xlane.f32.xlu1 %v3814_v24 }
 0x2c6   : > { %v4567_v20 = vpop.xlane.xlu0 %4566 }
 0x2c7   : > { %v4725_v4 = vpop.xlane.xlu1 %4724  ;;  %4833 = vst.msk [vmem:[%s7755_s5 + $0x1b0] sm:$0xff] %vm4778_vm1, %v4567_v20 }
 0x2c8   : > { %4912 = vst.msk [vmem:[%s7755_s5 + $0x428] sm:$0xff] %vm4778_vm1, %v4725_v4 }
 0x2ca   : > { %v4727_v18 = vpop.xlane.xlu0 %4726 }
 0x2cb   : > { %4913 = vst.msk [vmem:[%s7755_s5 + $0x430] sm:$0xff] %vm4778_vm1, %v4727_v18  ;;  %v4569_v2 = vpop.xlane.xlu1 %4568 }
 0x2cc   : > { %4834 = vst.msk [vmem:[%s7755_s5 + $0x1b8] sm:$0xff] %vm4778_vm1, %v4569_v2 }
 0x2cf   : > { %v4571_v16 = vpop.xlane.xlu0 %4570  ;;  %v4729_v9 = vpop.xlane.xlu1 %4728 }
 0x2d0   : > { %4835 = vst.msk [vmem:[%s7755_s5 + $0x1c0] sm:$0xff] %vm4778_vm1, %v4571_v16  ;;  %4914 = vst.msk [vmem:[%s7755_s5 + $0x438] sm:$0xff] %vm4778_vm1, %v4729_v9 }
 0x2d3   : > { %v4731_v60 = vpop.xlane.xlu0 %4730  ;;  %v4573_v23 = vpop.xlane.xlu1 %4572 }
 0x2d4   : > { %4915 = vst.msk [vmem:[%s7755_s5 + $0x440] sm:$0xff] %vm4778_vm1, %v4731_v60  ;;  %4836 = vst.msk [vmem:[%s7755_s5 + $0x1c8] sm:$0xff] %vm4778_vm1, %v4573_v23 }
 0x2d7   : > { %v4733_v59 = vpop.xlane.xlu1 %4732 }
 0x2d8   : > { %4916 = vst.msk [vmem:[%s7755_s5 + $0x448] sm:$0xff] %vm4778_vm1, %v4733_v59 }
 0x2dd   : > { %v4575_v54 = vpop.xlane.xlu0 %4574 }
 0x2de   : > { %4837 = vst.msk [vmem:[%s7755_s5 + $0x1d0] sm:$0xff] %vm4778_vm1, %v4575_v54 }
 0x2e1   : > { %v4735_v47 = vpop.xlane.xlu0 %4734 }
 0x2e2   : > { %4917 = vst.msk [vmem:[%s7755_s5 + $0x450] sm:$0xff] %vm4778_vm1, %v4735_v47 }
 0x2e3   : > { %v4577_v8 = vpop.xlane.xlu1 %4576 }
 0x2e4   : > { %4838 = vst.msk [vmem:[%s7755_s5 + $0x1d8] sm:$0xff] %vm4778_vm1, %v4577_v8 }
 0x2e7   : > { %v4737_v1 = vpop.xlane.xlu1 %4736 }
 0x2e8   : > { %v4579_v41 = vpop.xlane.xlu0 %4578  ;;  %4918 = vst.msk [vmem:[%s7755_s5 + $0x458] sm:$0xff] %vm4778_vm1, %v4737_v1 }
 0x2e9   : > { %4839 = vst.msk [vmem:[%s7755_s5 + $0x1e0] sm:$0xff] %vm4778_vm1, %v4579_v41 }
 0x2eb   : > { %v4581_v39 = vpop.xlane.xlu1 %4580 }
 0x2ec   : > { %v4739_v51 = vpop.xlane.xlu0 %4738  ;;  %4840 = vst.msk [vmem:[%s7755_s5 + $0x1e8] sm:$0xff] %vm4778_vm1, %v4581_v39 }
 0x2ed   : > { %4919 = vst.msk [vmem:[%s7755_s5 + $0x460] sm:$0xff] %vm4778_vm1, %v4739_v51 }
 0x2ef   : > { %v4741_v6 = vpop.xlane.xlu1 %4740 }
 0x2f0   : > { %v4583_v22 = vpop.xlane.xlu0 %4582  ;;  %4920 = vst.msk [vmem:[%s7755_s5 + $0x468] sm:$0xff] %vm4778_vm1, %v4741_v6 }
 0x2f1   : > { %4841 = vst.msk [vmem:[%s7755_s5 + $0x1f0] sm:$0xff] %vm4778_vm1, %v4583_v22 }
 0x2f4   : > { %v4743_v38 = vpop.xlane.xlu0 %4742 }
 0x2f5   : > { %4921 = vst.msk [vmem:[%s7755_s5 + $0x470] sm:$0xff] %vm4778_vm1, %v4743_v38 }
 0x2f6   : > { %v4585_v46 = vpop.xlane.xlu1 %4584 }
 0x2f7   : > { %4842 = vst.msk [vmem:[%s7755_s5 + $0x1f8] sm:$0xff] %vm4778_vm1, %v4585_v46 }
 0x2fa   : > { %v4745_v19 = vpop.xlane.xlu1 %4744 }
 0x2fb   : > { %4922 = vst.msk [vmem:[%s7755_s5 + $0x478] sm:$0xff] %vm4778_vm1, %v4745_v19 }
 0x2fd   : > { %v4587_v45 = vpop.xlane.xlu0 %4586 }
 0x2fe   : > { %4843 = vst.msk [vmem:[%s7755_s5 + $0x200] sm:$0xff] %vm4778_vm1, %v4587_v45 }
 0x301   : > { %v4747_v58 = vpop.xlane.xlu0 %4746 }
 0x302   : > { %4923 = vst.msk [vmem:[%s7755_s5 + $0x480] sm:$0xff] %vm4778_vm1, %v4747_v58 }
 0x303   : > { %v4589_v63 = vpop.xlane.xlu1 %4588 }
 0x304   : > { %4844 = vst.msk [vmem:[%s7755_s5 + $0x208] sm:$0xff] %vm4778_vm1, %v4589_v63 }
 0x307   : > { %v4749_v32 = vpop.xlane.xlu1 %4748 }
 0x308   : > { %v4591_v12 = vpop.xlane.xlu0 %4590  ;;  %4924 = vst.msk [vmem:[%s7755_s5 + $0x488] sm:$0xff] %vm4778_vm1, %v4749_v32 }
 0x309   : > { %4845 = vst.msk [vmem:[%s7755_s5 + $0x210] sm:$0xff] %vm4778_vm1, %v4591_v12 }
 0x30b   : > { %v4593_v10 = vpop.xlane.xlu1 %4592 }
 0x30c   : > { %v4751_v3 = vpop.xlane.xlu0 %4750  ;;  %4846 = vst.msk [vmem:[%s7755_s5 + $0x218] sm:$0xff] %vm4778_vm1, %v4593_v10 }
 0x30d   : > { %4925 = vst.msk [vmem:[%s7755_s5 + $0x490] sm:$0xff] %vm4778_vm1, %v4751_v3 }
 0x30f   : > { %v4753_v42 = vpop.xlane.xlu1 %4752 }
 0x310   : > { %v4595_v17 = vpop.xlane.xlu0 %4594  ;;  %4926 = vst.msk [vmem:[%s7755_s5 + $0x498] sm:$0xff] %vm4778_vm1, %v4753_v42 }
 0x311   : > { %4847 = vst.msk [vmem:[%s7755_s5 + $0x220] sm:$0xff] %vm4778_vm1, %v4595_v17 }
 0x314   : > { %v4755_v56 = vpop.xlane.xlu0 %4754 }
 0x315   : > { %4927 = vst.msk [vmem:[%s7755_s5 + $0x4a0] sm:$0xff] %vm4778_vm1, %v4755_v56 }
 0x317   : > { %v4597_v33 = vpop.xlane.xlu1 %4596 }
 0x318   : > { %4848 = vst.msk [vmem:[%s7755_s5 + $0x228] sm:$0xff] %vm4778_vm1, %v4597_v33 }
 0x31b   : > { %v4757_v26 = vpop.xlane.xlu1 %4756 }
 0x31c   : > { %4928 = vst.msk [vmem:[%s7755_s5 + $0x4a8] sm:$0xff] %vm4778_vm1, %v4757_v26 }
 0x321   : > { %v4599_v40 = vpop.xlane.xlu0 %4598 }
 0x322   : > { %4849 = vst.msk [vmem:[%s7755_s5 + $0x230] sm:$0xff] %vm4778_vm1, %v4599_v40 }
 0x325   : > { %v4759_v0 = vpop.xlane.xlu0 %4758  ;;  %v4601_v7 = vpop.xlane.xlu1 %4600 }
 0x326   : > { %4929 = vst.msk [vmem:[%s7755_s5 + $0x4b0] sm:$0xff] %vm4778_vm1, %v4759_v0  ;;  %4850 = vst.msk [vmem:[%s7755_s5 + $0x238] sm:$0xff] %vm4778_vm1, %v4601_v7 }
 0x329   : > { %v4761_v15 = vpop.xlane.xlu1 %4760 }
 0x32a   : > { %v4603_v48 = vpop.xlane.xlu0 %4602  ;;  %4930 = vst.msk [vmem:[%s7755_s5 + $0x4b8] sm:$0xff] %vm4778_vm1, %v4761_v15 }
 0x32b   : > { %4851 = vst.msk [vmem:[%s7755_s5 + $0x240] sm:$0xff] %vm4778_vm1, %v4603_v48 }
 0x32e   : > { %v4763_v44 = vpop.xlane.xlu0 %4762  ;;  %v4605_v11 = vpop.xlane.xlu1 %4604 }
 0x32f   : > { %4931 = vst.msk [vmem:[%s7755_s5 + $0x4c0] sm:$0xff] %vm4778_vm1, %v4763_v44  ;;  %4852 = vst.msk [vmem:[%s7755_s5 + $0x248] sm:$0xff] %vm4778_vm1, %v4605_v11 }
 0x332   : > { %v4765_v31 = vpop.xlane.xlu1 %4764 }
 0x333   : > { %4932 = vst.msk [vmem:[%s7755_s5 + $0x4c8] sm:$0xff] %vm4778_vm1, %v4765_v31  ;;  %v4607_v61 = vpop.xlane.xlu0 %4606 }
 0x334   : > { %4853 = vst.msk [vmem:[%s7755_s5 + $0x250] sm:$0xff] %vm4778_vm1, %v4607_v61 }
 0x337   : > { %v4767_v57 = vpop.xlane.xlu0 %4766 }
 0x338   : > { %4933 = vst.msk [vmem:[%s7755_s5 + $0x4d0] sm:$0xff] %vm4778_vm1, %v4767_v57  ;;  %v4609_v21 = vpop.xlane.xlu1 %4608 }
 0x339   : > { %4854 = vst.msk [vmem:[%s7755_s5 + $0x258] sm:$0xff] %vm4778_vm1, %v4609_v21 }
 0x33c   : > { %v4769_v14 = vpop.xlane.xlu1 %4768 }
 0x33d   : > { %4934 = vst.msk [vmem:[%s7755_s5 + $0x4d8] sm:$0xff] %vm4778_vm1, %v4769_v14 }
 0x33f   : > { %v4611_v36 = vpop.xlane.xlu0 %4610 }
 0x340   : > { %4855 = vst.msk [vmem:[%s7755_s5 + $0x260] sm:$0xff] %vm4778_vm1, %v4611_v36 }
 0x343   : > { %v4771_v5 = vpop.xlane.xlu0 %4770 }
 0x344   : > { %4935 = vst.msk [vmem:[%s7755_s5 + $0x4e0] sm:$0xff] %vm4778_vm1, %v4771_v5 }
 0x345   : > { %v4613_v50 = vpop.xlane.xlu1 %4612 }
 0x346   : > { %4856 = vst.msk [vmem:[%s7755_s5 + $0x268] sm:$0xff] %vm4778_vm1, %v4613_v50 }
 0x349   : > { %v4773_v30 = vpop.xlane.xlu1 %4772 }
 0x34a   : > { %4936 = vst.msk [vmem:[%s7755_s5 + $0x4e8] sm:$0xff] %vm4778_vm1, %v4773_v30  ;;  %v4615_v35 = vpop.xlane.xlu0 %4614 }
 0x34b   : > { %4857 = vst.msk [vmem:[%s7755_s5 + $0x270] sm:$0xff] %vm4778_vm1, %v4615_v35 }
 0x34e   : > { %v4775_v52 = vpop.xlane.xlu0 %4774  ;;  %v4617_v34 = vpop.xlane.xlu1 %4616 }
 0x34f   : > { %4937 = vst.msk [vmem:[%s7755_s5 + $0x4f0] sm:$0xff] %vm4778_vm1, %v4775_v52  ;;  %4858 = vst.msk [vmem:[%s7755_s5 + $0x278] sm:$0xff] %vm4778_vm1, %v4617_v34 }
 0x352   : > { %v4777_v27 = vpop.xlane.xlu1 %4776 }
 0x353   : > { %4938 = vst.msk [vmem:[%s7755_s5 + $0x4f8] sm:$0xff] %vm4778_vm1, %v4777_v27 }
 0x354 PF: > { %s12_s13 = sadd.s32 1, %s5948_s13   ;;  %s9322_s9 = smov %s5940_s11 }
 0x355   : > { %p9_p7 = scmp.ge.s32.totalorder %s12_s13, 6   ;;  %s9323_s10 = smov %s5944_s12 }
 0x356   : > { %s9324_s11 = smov %s9327_s14  ;;  %s9325_s12 = smov %s9331_s15 }
 0x357   :  { %11 = sbr.rel (!%p9_p7) target bundleno = 3 (0x3), region = 69 }

</bundles_post_ra>
